<compile_context>
chip_gen: v6e
topology: v6e:2x2x1
jax: 0.10.0
libtpu: 0.0.40
codegen_flags: <defaults>
</compile_context>

<pallas_src>
import functools

import jax
import jax.numpy as jnp
import numpy as np
from jax import lax
from jax.experimental import pallas as pl
from jax.experimental.pallas import tpu as pltpu


def _mdcn_pack_kernel(patches_ref, x4_ref, coords_ref, w_om_ref, b_om_ref,
                      w_dcn_ref, b_dcn_ref, out_ref, offset_ref, *,
                      H, W, K, pad, dil, c_in, c_out):
    """Fused offset/mask conv + modulated deformable conv for one sample and
    one lane-dense tile of output pixels."""
    HWi = H * W
    TQ = out_ref.shape[-1]                              # output-pixel tile
    n_off = 2 * K * K                                   # 18 offset channels

    # ---- conv_offset_mask: one stacked-tap matmul on the MXU ----------------
    offmask = jnp.dot(w_om_ref[...], patches_ref[0],
                      preferred_element_type=jnp.float32) + b_om_ref[...]
    offset = offmask[:n_off, :]                         # (18, TQ)
    mask = 1.0 / (1.0 + jnp.exp(-offmask[n_off:, :]))   # sigmoid, (9, TQ)
    offset_ref[0] = offset.astype(offset_ref.dtype)     # module's 2nd output

    # x4 = input and its 3 circularly shifted copies (flat shifts 1, W, W+1),
    # stacked on sublanes: (4*C_in, HWi).  One matmul per tap fetches all four
    # bilinear corners.
    x4 = x4_ref[0]
    coords = coords_ref[...]                            # (2, TQ) f32
    oy = coords[0:1, :]                                 # out-row * stride
    ox = coords[1:2, :]                                 # out-col * stride

    # Column iota (HWi, 1): tiny live footprint; broadcast against the per-tap
    # base index on the fly (replaces the old (HWi, HWo) iota held live).
    col = lax.broadcasted_iota(jnp.int32, (HWi, 1), 0)

    # Bias hoisted into the accumulator init.
    acc = jnp.zeros((c_out, TQ), jnp.float32) + b_dcn_ref[...]

    for k in range(K * K):                              # unrolled: 9 taps
        kh, kw = k // K, k % K
        dy = offset[2 * k:2 * k + 1, :]                 # (1, TQ)
        dx = offset[2 * k + 1:2 * k + 2, :]
        m_k = mask[k:k + 1, :]

        sy = oy + float(kh * dil - pad) + dy            # sampling positions
        sx = ox + float(kw * dil - pad) + dx
        y0f = jnp.floor(sy)
        x0f = jnp.floor(sx)
        ly = sy - y0f
        lx = sx - x0f
        y0 = y0f.astype(jnp.int32)
        x0 = x0f.astype(jnp.int32)
        y1 = y0 + 1
        x1 = x0 + 1

        vy0 = (y0 >= 0) & (y0 < H)
        vy1 = (y1 >= 0) & (y1 < H)
        vx0 = (x0 >= 0) & (x0 < W)
        vx1 = (x1 >= 0) & (x1 < W)
        hy = 1.0 - ly
        hx = 1.0 - lx
        # Bilinear weight * modulation mask * zero-padding validity per corner
        # (OOB corners contribute exactly 0, matching DCNv2).
        w00 = jnp.where(vy0 & vx0, hy * hx * m_k, 0.0)  # (1, TQ)
        w01 = jnp.where(vy0 & vx1, hy * lx * m_k, 0.0)
        w10 = jnp.where(vy1 & vx0, ly * hx * m_k, 0.0)
        w11 = jnp.where(vy1 & vx1, ly * lx * m_k, 0.0)

        # Base (top-left) corner flat index, wrapped into [0, HWi) so the
        # shifted copies of x pick up the other three corners; any wrapped /
        # OOB corner is nullified by its zero weight above.
        idx00 = y0 * W + x0
        idx00 = jnp.where(idx00 < 0, idx00 + HWi, idx00)

        # One unweighted one-hot per tap (single compare + select pass), then
        # gather-as-matmul on the MXU: g rows hold the 4 corner samples for
        # every input channel.
        onehot = jnp.where(col == idx00, 1.0, 0.0)       # (HWi, TQ) f32
        g = jnp.dot(x4, onehot,
                    preferred_element_type=jnp.float32)  # (4*C_in, TQ)

        # Modulated bilinear sample per input channel (tiny arrays), then the
        # tap's conv weights via a small MXU matmul accumulated into acc.
        v_k = (g[0 * c_in:1 * c_in, :] * w00
               + g[1 * c_in:2 * c_in, :] * w01
               + g[2 * c_in:3 * c_in, :] * w10
               + g[3 * c_in:4 * c_in, :] * w11)          # (C_in, TQ)
        acc = acc + jnp.dot(w_dcn_ref[k], v_k,
                            preferred_element_type=jnp.float32)

    out_ref[0] = acc.astype(out_ref.dtype)


def _pick_hwo_tile(hwo):
    # Single full tile at small sizes; lane-dense 512/256/128-wide tiles (as a
    # second parallel grid axis) once the per-tap (HWi, HWo) intermediates
    # would grow past comfortable VMEM footprints.
    if hwo > 512:
        for t in (512, 256, 128):
            if hwo % t == 0:
                return t
    return hwo


def modulated_deform_conv_pack(input_offset, input_real, w_dcn, b_dcn,
                               w_om, b_om, *, kernel_size=3, stride=1,
                               padding=1, dilation=1):
    """Forward of ModulatedDeformConvPack.  Returns (output, offset).

    input_offset : (N, C, H, W)  f32 — feeds conv_offset_mask
    input_real   : (N, C, H, W)  f32 — deformably sampled input
    w_dcn        : (C_out, C_in, K, K), b_dcn: (C_out,)        (torch layout)
    w_om         : (3*K*K, C, K, K),    b_om: (3*K*K,)          (torch layout)
    """
    N, C_off, H, W = input_offset.shape
    Nr, C_in, Hr, Wr = input_real.shape
    assert (N, H, W) == (Nr, Hr, Wr)
    K = kernel_size
    C_out = w_dcn.shape[0]
    n_om = w_om.shape[0]                          # 3*K*K (deformable_groups=1)
    Ho = (H + 2 * padding - dilation * (K - 1) - 1) // stride + 1
    Wo = (W + 2 * padding - dilation * (K - 1) - 1) // stride + 1
    HWo = Ho * Wo
    HWi = H * W
    f32 = jnp.float32

    # ---- wrapper-side im2col of the offset branch (lane-dense patches) ------
    xp = jnp.pad(input_offset.astype(f32),
                 ((0, 0), (0, 0), (padding, padding), (padding, padding)))
    cols = []
    for kh in range(K):
        for kw in range(K):
            sl = xp[:, :,
                    kh * dilation: kh * dilation + stride * (Ho - 1) + 1: stride,
                    kw * dilation: kw * dilation + stride * (Wo - 1) + 1: stride]
            cols.append(sl.reshape(N, C_off, HWo))
    patches = jnp.concatenate(cols, axis=1)               # (N, K*K*C, HWo)

    # ---- input and its 3 flat-shifted copies (the 4 bilinear corners) -------
    x_flat = input_real.astype(f32).reshape(N, C_in, HWi)
    x4 = jnp.concatenate(
        [jnp.roll(x_flat, -s, axis=-1) for s in (0, 1, W, W + 1)],
        axis=1)                                            # (N, 4*C_in, HWi)

    # ---- per-output-pixel base coordinates (no in-kernel int div/mod) -------
    pix = jnp.arange(HWo, dtype=jnp.int32)
    coords = jnp.stack(
        [(pix // Wo).astype(f32) * float(stride),
         (pix % Wo).astype(f32) * float(stride)], axis=0)  # (2, HWo)

    # ---- kernel-friendly weight layouts (trace-time, no in-kernel transpose)
    w_om_k = jnp.transpose(w_om, (0, 2, 3, 1)).reshape(n_om, K * K * C_off)
    w_om_k = w_om_k.astype(f32)
    b_om_k = b_om.reshape(n_om, 1).astype(f32)
    w_dcn_k = jnp.transpose(w_dcn, (2, 3, 0, 1)).reshape(K * K, C_out, C_in)
    w_dcn_k = w_dcn_k.astype(f32)
    b_dcn_k = b_dcn.reshape(C_out, 1).astype(f32)

    TQ = _pick_hwo_tile(HWo)
    n_q = HWo // TQ

    kernel = functools.partial(_mdcn_pack_kernel, H=H, W=W, K=K,
                               pad=padding, dil=dilation,
                               c_in=C_in, c_out=C_out)

    flops = N * (2 * n_om * (K * K * C_off) * HWo
                 + (K * K) * 2 * (4 * C_in) * HWi * HWo
                 + (K * K) * 2 * C_out * C_in * HWo)
    bytes_accessed = 4 * int(patches.size + x4.size + coords.size
                             + w_om_k.size + b_om_k.size
                             + w_dcn_k.size + b_dcn_k.size
                             + N * C_out * HWo + N * 2 * K * K * HWo)
    cost = pl.CostEstimate(flops=flops, transcendentals=N * K * K * HWo,
                           bytes_accessed=bytes_accessed)

    out_flat, offset_flat = pl.pallas_call(
        kernel,
        out_shape=(
            jax.ShapeDtypeStruct((N, C_out, HWo), input_real.dtype),
            jax.ShapeDtypeStruct((N, 2 * K * K, HWo), input_real.dtype),
        ),
        grid_spec=pltpu.PrefetchScalarGridSpec(
            num_scalar_prefetch=0,
            grid=(N, n_q),
            in_specs=[
                pl.BlockSpec((1, K * K * C_off, TQ), lambda i, q: (i, 0, q)),
                pl.BlockSpec((1, 4 * C_in, HWi), lambda i, q: (i, 0, 0)),
                pl.BlockSpec((2, TQ), lambda i, q: (0, q)),
                pl.BlockSpec((n_om, K * K * C_off), lambda i, q: (0, 0)),
                pl.BlockSpec((n_om, 1), lambda i, q: (0, 0)),
                pl.BlockSpec((K * K, C_out, C_in), lambda i, q: (0, 0, 0)),
                pl.BlockSpec((C_out, 1), lambda i, q: (0, 0)),
            ],
            out_specs=(
                pl.BlockSpec((1, C_out, TQ), lambda i, q: (i, 0, q)),
                pl.BlockSpec((1, 2 * K * K, TQ), lambda i, q: (i, 0, q)),
            ),
        ),
        compiler_params=pltpu.CompilerParams(
            dimension_semantics=("parallel", "parallel")),
        cost_estimate=cost,
    )(patches, x4, coords, w_om_k, b_om_k, w_dcn_k, b_dcn_k)

    out = out_flat.reshape(N, C_out, Ho, Wo)
    offset = offset_flat.reshape(N, 2 * K * K, Ho, Wo)
    return out, offset


# ----------------------------------------------------------------------------
# Pure-JAX reference matching the PyTorch module (DCNv2 forward semantics).
# ----------------------------------------------------------------------------
def _reference_forward(input_offset, input_real, w_dcn, b_dcn, w_om, b_om, *,
                       K=3, stride=1, padding=1, dilation=1):
    hp = lax.Precision.HIGHEST
    om = lax.conv_general_dilated(
        input_offset, w_om, window_strides=(stride, stride),
        padding=[(padding, padding), (padding, padding)],
        rhs_dilation=(dilation, dilation),
        dimension_numbers=('NCHW', 'OIHW', 'NCHW'), precision=hp)
    om = om + b_om.reshape(1, -1, 1, 1)
    o1, o2, m = jnp.split(om, 3, axis=1)
    offset = jnp.concatenate([o1, o2], axis=1)
    mask = 1.0 / (1.0 + jnp.exp(-m))

    N, Cin, H, W = input_real.shape
    Cout = w_dcn.shape[0]
    Ho, Wo = offset.shape[2], offset.shape[3]

    oy = (jnp.arange(Ho) * stride - padding).astype(jnp.float32)
    ox = (jnp.arange(Wo) * stride - padding).astype(jnp.float32)
    n_idx = jnp.arange(N)[:, None, None, None]
    c_idx = jnp.arange(Cin)[None, :, None, None]

    def sample(yi, xi, wgt):
        valid = ((yi >= 0) & (yi < H) & (xi >= 0) & (xi < W)).astype(jnp.float32)
        yc = jnp.clip(yi, 0, H - 1)
        xc = jnp.clip(xi, 0, W - 1)
        v = input_real[n_idx, c_idx, yc[:, None], xc[:, None]]
        return v * (wgt * valid)[:, None]

    out = jnp.zeros((N, Cout, Ho, Wo), jnp.float32)
    for k in range(K * K):
        kh, kw = k // K, k % K
        dy = offset[:, 2 * k]
        dx = offset[:, 2 * k + 1]
        mk = mask[:, k]
        sy = oy[None, :, None] + kh * dilation + dy
        sx = ox[None, None, :] + kw * dilation + dx
        y0 = jnp.floor(sy); x0 = jnp.floor(sx)
        ly = sy - y0; lx = sx - x0
        y0 = y0.astype(jnp.int32); x0 = x0.astype(jnp.int32)
        y1 = y0 + 1; x1 = x0 + 1
        val = (sample(y0, x0, (1 - ly) * (1 - lx))
               + sample(y0, x1, (1 - ly) * lx)
               + sample(y1, x0, ly * (1 - lx))
               + sample(y1, x1, ly * lx))
        val = val * mk[:, None]
        out = out + jnp.einsum('oi,nihw->nohw', w_dcn[:, :, kh, kw], val,
                               precision=hp)
    return out + b_dcn.reshape(1, -1, 1, 1), offset


if __name__ == "__main__":
    N, C_in, C_out, H, W = 2, 4, 4, 16, 16
    K, stride, padding, dilation = 3, 1, 1, 1
    n_om = 3 * K * K                                  # deformable_groups = 1

    key = jax.random.PRNGKey(0)
    k1, k2, k3, k4, k5, k6 = jax.random.split(key, 6)

    input_offset = jax.random.normal(k1, (N, C_in, H, W), jnp.float32)
    input_real = jax.random.normal(k2, (N, C_in, H, W), jnp.float32)

    fan_in = C_in * K * K
    s = 1.0 / np.sqrt(fan_in)
    w_dcn = jax.random.uniform(k3, (C_out, C_in, K, K), jnp.float32, -s, s)
    b_dcn = jax.random.uniform(k4, (C_out,), jnp.float32, -s, s)
    # NOTE: the PyTorch module zero-inits conv_offset_mask (offset=0, mask=0.5);
    # use small random params here so the deformable sampling path is actually
    # exercised — forward semantics are identical for any parameter values.
    w_om = jax.random.uniform(k5, (n_om, C_in, K, K), jnp.float32, -s, s)
    b_om = jax.random.uniform(k6, (n_om,), jnp.float32, -s, s)

    out, offset = modulated_deform_conv_pack(
        input_offset, input_real, w_dcn, b_dcn, w_om, b_om,
        kernel_size=K, stride=stride, padding=padding, dilation=dilation)
    out = jax.block_until_ready(out)
    offset = jax.block_until_ready(offset)

    ref_out, ref_offset = _reference_forward(
        input_offset, input_real, w_dcn, b_dcn, w_om, b_om,
        K=K, stride=stride, padding=padding, dilation=dilation)
    ref_out = jax.block_until_ready(ref_out)

    assert out.shape == (N, C_out, H, W)
    assert offset.shape == (N, 2 * K * K, H, W)
    np.testing.assert_allclose(np.asarray(offset), np.asarray(ref_offset),
                               rtol=1e-4, atol=1e-4)
    np.testing.assert_allclose(np.asarray(out), np.asarray(ref_out),
                               rtol=1e-4, atol=1e-4)
    print("KERNEL_OK")
</pallas_src>

<mosaic_0001>
module attributes {stable_mosaic.version = 11 : i64} {
  func.func @_mdcn_pack_kernel(%arg0: i32, %arg1: i32, %arg2: memref<1x36x256xf32, #tpu.memory_space<vmem>>, %arg3: memref<1x16x256xf32, #tpu.memory_space<vmem>>, %arg4: memref<2x256xf32, #tpu.memory_space<vmem>>, %arg5: memref<27x36xf32, #tpu.memory_space<vmem>>, %arg6: memref<27x1xf32, #tpu.memory_space<vmem>>, %arg7: memref<9x4x4xf32, #tpu.memory_space<vmem>>, %arg8: memref<4x1xf32, #tpu.memory_space<vmem>>, %arg9: memref<1x4x256xf32, #tpu.memory_space<vmem>>, %arg10: memref<1x18x256xf32, #tpu.memory_space<vmem>>) attributes {dimension_semantics = [#tpu.dimension_semantics<parallel>, #tpu.dimension_semantics<parallel>], iteration_bounds = array<i64: 2, 1>, scalar_prefetch = 0 : i64, scratch_operands = 0 : i64, tpu.core_type = #tpu.core_type<tc>, window_params = [{transform_indices = @transform_0, window_bounds = array<i64: 1, 36, 256>}, {transform_indices = @transform_1, window_bounds = array<i64: 1, 16, 256>}, {transform_indices = @transform_2, window_bounds = array<i64: 2, 256>}, {pipeline_mode = #tpu.pipeline_mode<synchronous>, transform_indices = @transform_3, window_bounds = array<i64: 27, 36>}, {pipeline_mode = #tpu.pipeline_mode<synchronous>, transform_indices = @transform_4, window_bounds = array<i64: 27, 1>}, {pipeline_mode = #tpu.pipeline_mode<synchronous>, transform_indices = @transform_5, window_bounds = array<i64: 9, 4, 4>}, {pipeline_mode = #tpu.pipeline_mode<synchronous>, transform_indices = @transform_6, window_bounds = array<i64: 4, 1>}, {transform_indices = @transform_7, window_bounds = array<i64: 1, 4, 256>}, {transform_indices = @transform_8, window_bounds = array<i64: 1, 18, 256>}]} {
    %c0 = arith.constant 0 : index
    %c0_0 = arith.constant 0 : index
    %0 = vector.load %arg5[%c0, %c0_0] : memref<27x36xf32, #tpu.memory_space<vmem>>, vector<27x36xf32>
    %c0_1 = arith.constant 0 : index
    %c0_2 = arith.constant 0 : index
    %c0_3 = arith.constant 0 : index
    %1 = vector.load %arg2[%c0_1, %c0_2, %c0_3] : memref<1x36x256xf32, #tpu.memory_space<vmem>>, vector<1x36x256xf32>
    %2 = vector.shape_cast %1 : vector<1x36x256xf32> to vector<36x256xf32>
    %cst = arith.constant dense<0.000000e+00> : vector<27x256xf32>
    %3 = tpu.matmul %0, %2, %cst {dimension_numbers = #tpu.dot_dimension_numbers<[1], [0], [0], [1], [0, 0, 1, 1], [], []>} : vector<27x36xf32>, vector<36x256xf32>, vector<27x256xf32> -> vector<27x256xf32>
    %c0_4 = arith.constant 0 : index
    %c0_5 = arith.constant 0 : index
    %4 = vector.load %arg6[%c0_4, %c0_5] : memref<27x1xf32, #tpu.memory_space<vmem>>, vector<27x1xf32>
    %5 = vector.broadcast %4 : vector<27x1xf32> to vector<27x256xf32>
    %6 = arith.addf %3, %5 : vector<27x256xf32>
    %7 = vector.extract_strided_slice %6 {offsets = [0, 0], sizes = [18, 256], strides = [1, 1]} : vector<27x256xf32> to vector<18x256xf32>
    %8 = vector.extract_strided_slice %6 {offsets = [18, 0], sizes = [9, 256], strides = [1, 1]} : vector<27x256xf32> to vector<9x256xf32>
    %cst_6 = arith.constant 0.000000e+00 : f32
    %9 = vector.broadcast %cst_6 : f32 to vector<9x256xf32>
    %10 = arith.subf %9, %8 : vector<9x256xf32>
    %11 = math.exp %10 : vector<9x256xf32>
    %cst_7 = arith.constant 1.000000e+00 : f32
    %12 = vector.broadcast %cst_7 : f32 to vector<9x256xf32>
    %13 = arith.addf %12, %11 : vector<9x256xf32>
    %cst_8 = arith.constant 1.000000e+00 : f32
    %14 = vector.broadcast %cst_8 : f32 to vector<9x256xf32>
    %15 = arith.divf %14, %13 : vector<9x256xf32>
    %c0_9 = arith.constant 0 : index
    %c0_10 = arith.constant 0 : index
    %c0_11 = arith.constant 0 : index
    %16 = vector.load %arg10[%c0_9, %c0_10, %c0_11] : memref<1x18x256xf32, #tpu.memory_space<vmem>>, vector<1x18x256xf32>
    %17 = vector.shape_cast %16 : vector<1x18x256xf32> to vector<18x256xf32>
    %18 = vector.shape_cast %7 : vector<18x256xf32> to vector<1x18x256xf32>
    tpu.vector_store %arg10[%c0_9, %c0_10, %c0_11], %18 {strides = array<i32>} : memref<1x18x256xf32, #tpu.memory_space<vmem>>, vector<1x18x256xf32>,
    %c0_12 = arith.constant 0 : index
    %c0_13 = arith.constant 0 : index
    %c0_14 = arith.constant 0 : index
    %19 = vector.load %arg3[%c0_12, %c0_13, %c0_14] : memref<1x16x256xf32, #tpu.memory_space<vmem>>, vector<1x16x256xf32>
    %20 = vector.shape_cast %19 : vector<1x16x256xf32> to vector<16x256xf32>
    %c0_15 = arith.constant 0 : index
    %c0_16 = arith.constant 0 : index
    %21 = vector.load %arg4[%c0_15, %c0_16] : memref<2x256xf32, #tpu.memory_space<vmem>>, vector<2x256xf32>
    %22 = vector.extract_strided_slice %21 {offsets = [0, 0], sizes = [1, 256], strides = [1, 1]} : vector<2x256xf32> to vector<1x256xf32>
    %23 = vector.extract_strided_slice %21 {offsets = [1, 0], sizes = [1, 256], strides = [1, 1]} : vector<2x256xf32> to vector<1x256xf32>
    %24 = tpu.iota {dimensions = array<i32: 0>} : vector<256x1xi32>
    %cst_17 = arith.constant 0.000000e+00 : f32
    %25 = vector.broadcast %cst_17 : f32 to vector<4x256xf32>
    %c0_18 = arith.constant 0 : index
    %c0_19 = arith.constant 0 : index
    %26 = vector.load %arg8[%c0_18, %c0_19] : memref<4x1xf32, #tpu.memory_space<vmem>>, vector<4x1xf32>
    %27 = vector.broadcast %26 : vector<4x1xf32> to vector<4x256xf32>
    %28 = arith.addf %25, %27 : vector<4x256xf32>
    %29 = vector.extract_strided_slice %7 {offsets = [0, 0], sizes = [1, 256], strides = [1, 1]} : vector<18x256xf32> to vector<1x256xf32>
    %30 = vector.extract_strided_slice %7 {offsets = [1, 0], sizes = [1, 256], strides = [1, 1]} : vector<18x256xf32> to vector<1x256xf32>
    %31 = vector.extract_strided_slice %15 {offsets = [0, 0], sizes = [1, 256], strides = [1, 1]} : vector<9x256xf32> to vector<1x256xf32>
    %cst_20 = arith.constant -1.000000e+00 : f32
    %32 = vector.broadcast %cst_20 : f32 to vector<1x256xf32>
    %33 = arith.addf %22, %32 : vector<1x256xf32>
    %34 = arith.addf %33, %29 : vector<1x256xf32>
    %cst_21 = arith.constant -1.000000e+00 : f32
    %35 = vector.broadcast %cst_21 : f32 to vector<1x256xf32>
    %36 = arith.addf %23, %35 : vector<1x256xf32>
    %37 = arith.addf %36, %30 : vector<1x256xf32>
    %38 = math.floor %34 : vector<1x256xf32>
    %39 = math.floor %37 : vector<1x256xf32>
    %40 = arith.subf %34, %38 : vector<1x256xf32>
    %41 = arith.subf %37, %39 : vector<1x256xf32>
    %42 = arith.fptosi %38 : vector<1x256xf32> to vector<1x256xi32>
    %43 = arith.fptosi %39 : vector<1x256xf32> to vector<1x256xi32>
    %c1_i32 = arith.constant 1 : i32
    %44 = vector.broadcast %c1_i32 : i32 to vector<1x256xi32>
    %45 = arith.addi %42, %44 : vector<1x256xi32>
    %c1_i32_22 = arith.constant 1 : i32
    %46 = vector.broadcast %c1_i32_22 : i32 to vector<1x256xi32>
    %47 = arith.addi %43, %46 : vector<1x256xi32>
    %c0_i32 = arith.constant 0 : i32
    %48 = vector.broadcast %c0_i32 : i32 to vector<1x256xi32>
    %49 = arith.cmpi sge, %42, %48 : vector<1x256xi32>
    %c16_i32 = arith.constant 16 : i32
    %50 = vector.broadcast %c16_i32 : i32 to vector<1x256xi32>
    %51 = arith.cmpi slt, %42, %50 : vector<1x256xi32>
    %52 = arith.andi %49, %51 : vector<1x256xi1>
    %c0_i32_23 = arith.constant 0 : i32
    %53 = vector.broadcast %c0_i32_23 : i32 to vector<1x256xi32>
    %54 = arith.cmpi sge, %45, %53 : vector<1x256xi32>
    %c16_i32_24 = arith.constant 16 : i32
    %55 = vector.broadcast %c16_i32_24 : i32 to vector<1x256xi32>
    %56 = arith.cmpi slt, %45, %55 : vector<1x256xi32>
    %57 = arith.andi %54, %56 : vector<1x256xi1>
    %c0_i32_25 = arith.constant 0 : i32
    %58 = vector.broadcast %c0_i32_25 : i32 to vector<1x256xi32>
    %59 = arith.cmpi sge, %43, %58 : vector<1x256xi32>
    %c16_i32_26 = arith.constant 16 : i32
    %60 = vector.broadcast %c16_i32_26 : i32 to vector<1x256xi32>
    %61 = arith.cmpi slt, %43, %60 : vector<1x256xi32>
    %62 = arith.andi %59, %61 : vector<1x256xi1>
    %c0_i32_27 = arith.constant 0 : i32
    %63 = vector.broadcast %c0_i32_27 : i32 to vector<1x256xi32>
    %64 = arith.cmpi sge, %47, %63 : vector<1x256xi32>
    %c16_i32_28 = arith.constant 16 : i32
    %65 = vector.broadcast %c16_i32_28 : i32 to vector<1x256xi32>
    %66 = arith.cmpi slt, %47, %65 : vector<1x256xi32>
    %67 = arith.andi %64, %66 : vector<1x256xi1>
    %cst_29 = arith.constant 1.000000e+00 : f32
    %68 = vector.broadcast %cst_29 : f32 to vector<1x256xf32>
    %69 = arith.subf %68, %40 : vector<1x256xf32>
    %cst_30 = arith.constant 1.000000e+00 : f32
    %70 = vector.broadcast %cst_30 : f32 to vector<1x256xf32>
    %71 = arith.subf %70, %41 : vector<1x256xf32>
    %72 = arith.andi %52, %62 : vector<1x256xi1>
    %73 = arith.mulf %69, %71 : vector<1x256xf32>
    %74 = arith.mulf %73, %31 : vector<1x256xf32>
    %cst_31 = arith.constant 0.000000e+00 : f32
    %75 = vector.broadcast %cst_31 : f32 to vector<1x256xf32>
    %76 = arith.select %72, %74, %75 : vector<1x256xi1>, vector<1x256xf32>
    %77 = arith.andi %52, %67 : vector<1x256xi1>
    %78 = arith.mulf %69, %41 : vector<1x256xf32>
    %79 = arith.mulf %78, %31 : vector<1x256xf32>
    %cst_32 = arith.constant 0.000000e+00 : f32
    %80 = vector.broadcast %cst_32 : f32 to vector<1x256xf32>
    %81 = arith.select %77, %79, %80 : vector<1x256xi1>, vector<1x256xf32>
    %82 = arith.andi %57, %62 : vector<1x256xi1>
    %83 = arith.mulf %40, %71 : vector<1x256xf32>
    %84 = arith.mulf %83, %31 : vector<1x256xf32>
    %cst_33 = arith.constant 0.000000e+00 : f32
    %85 = vector.broadcast %cst_33 : f32 to vector<1x256xf32>
    %86 = arith.select %82, %84, %85 : vector<1x256xi1>, vector<1x256xf32>
    %87 = arith.andi %57, %67 : vector<1x256xi1>
    %88 = arith.mulf %40, %41 : vector<1x256xf32>
    %89 = arith.mulf %88, %31 : vector<1x256xf32>
    %cst_34 = arith.constant 0.000000e+00 : f32
    %90 = vector.broadcast %cst_34 : f32 to vector<1x256xf32>
    %91 = arith.select %87, %89, %90 : vector<1x256xi1>, vector<1x256xf32>
    %c16_i32_35 = arith.constant 16 : i32
    %92 = vector.broadcast %c16_i32_35 : i32 to vector<1x256xi32>
    %93 = arith.muli %42, %92 : vector<1x256xi32>
    %94 = arith.addi %93, %43 : vector<1x256xi32>
    %c0_i32_36 = arith.constant 0 : i32
    %95 = vector.broadcast %c0_i32_36 : i32 to vector<1x256xi32>
    %96 = arith.cmpi slt, %94, %95 : vector<1x256xi32>
    %c256_i32 = arith.constant 256 : i32
    %97 = vector.broadcast %c256_i32 : i32 to vector<1x256xi32>
    %98 = arith.addi %94, %97 : vector<1x256xi32>
    %99 = arith.select %96, %98, %94 : vector<1x256xi1>, vector<1x256xi32>
    %100 = vector.broadcast %24 : vector<256x1xi32> to vector<256x256xi32>
    %101 = vector.broadcast %99 : vector<1x256xi32> to vector<256x256xi32>
    %102 = arith.cmpi eq, %100, %101 : vector<256x256xi32>
    %cst_37 = arith.constant 1.000000e+00 : f32
    %cst_38 = arith.constant 0.000000e+00 : f32
    %103 = vector.broadcast %cst_37 : f32 to vector<256x256xf32>
    %104 = vector.broadcast %cst_38 : f32 to vector<256x256xf32>
    %105 = arith.select %102, %103, %104 : vector<256x256xi1>, vector<256x256xf32>
    %cst_39 = arith.constant dense<0.000000e+00> : vector<16x256xf32>
    %106 = tpu.matmul %20, %105, %cst_39 {dimension_numbers = #tpu.dot_dimension_numbers<[1], [0], [0], [1], [0, 0, 1, 1], [], []>} : vector<16x256xf32>, vector<256x256xf32>, vector<16x256xf32> -> vector<16x256xf32>
    %107 = vector.extract_strided_slice %106 {offsets = [0, 0], sizes = [4, 256], strides = [1, 1]} : vector<16x256xf32> to vector<4x256xf32>
    %108 = vector.broadcast %76 : vector<1x256xf32> to vector<4x256xf32>
    %109 = arith.mulf %107, %108 : vector<4x256xf32>
    %110 = vector.extract_strided_slice %106 {offsets = [4, 0], sizes = [4, 256], strides = [1, 1]} : vector<16x256xf32> to vector<4x256xf32>
    %111 = vector.broadcast %81 : vector<1x256xf32> to vector<4x256xf32>
    %112 = arith.mulf %110, %111 : vector<4x256xf32>
    %113 = arith.addf %109, %112 : vector<4x256xf32>
    %114 = vector.extract_strided_slice %106 {offsets = [8, 0], sizes = [4, 256], strides = [1, 1]} : vector<16x256xf32> to vector<4x256xf32>
    %115 = vector.broadcast %86 : vector<1x256xf32> to vector<4x256xf32>
    %116 = arith.mulf %114, %115 : vector<4x256xf32>
    %117 = arith.addf %113, %116 : vector<4x256xf32>
    %118 = vector.extract_strided_slice %106 {offsets = [12, 0], sizes = [4, 256], strides = [1, 1]} : vector<16x256xf32> to vector<4x256xf32>
    %119 = vector.broadcast %91 : vector<1x256xf32> to vector<4x256xf32>
    %120 = arith.mulf %118, %119 : vector<4x256xf32>
    %121 = arith.addf %117, %120 : vector<4x256xf32>
    %c0_40 = arith.constant 0 : index
    %c0_41 = arith.constant 0 : index
    %c0_42 = arith.constant 0 : index
    %122 = vector.load %arg7[%c0_40, %c0_41, %c0_42] : memref<9x4x4xf32, #tpu.memory_space<vmem>>, vector<1x4x4xf32>
    %123 = vector.shape_cast %122 : vector<1x4x4xf32> to vector<4x4xf32>
    %cst_43 = arith.constant dense<0.000000e+00> : vector<4x256xf32>
    %124 = tpu.matmul %123, %121, %cst_43 {dimension_numbers = #tpu.dot_dimension_numbers<[1], [0], [0], [1], [0, 0, 1, 1], [], []>} : vector<4x4xf32>, vector<4x256xf32>, vector<4x256xf32> -> vector<4x256xf32>
    %125 = arith.addf %28, %124 : vector<4x256xf32>
    %126 = vector.extract_strided_slice %7 {offsets = [2, 0], sizes = [1, 256], strides = [1, 1]} : vector<18x256xf32> to vector<1x256xf32>
    %127 = vector.extract_strided_slice %7 {offsets = [3, 0], sizes = [1, 256], strides = [1, 1]} : vector<18x256xf32> to vector<1x256xf32>
    %128 = vector.extract_strided_slice %15 {offsets = [1, 0], sizes = [1, 256], strides = [1, 1]} : vector<9x256xf32> to vector<1x256xf32>
    %cst_44 = arith.constant -1.000000e+00 : f32
    %129 = vector.broadcast %cst_44 : f32 to vector<1x256xf32>
    %130 = arith.addf %22, %129 : vector<1x256xf32>
    %131 = arith.addf %130, %126 : vector<1x256xf32>
    %cst_45 = arith.constant 0.000000e+00 : f32
    %132 = vector.broadcast %cst_45 : f32 to vector<1x256xf32>
    %133 = arith.addf %23, %132 : vector<1x256xf32>
    %134 = arith.addf %133, %127 : vector<1x256xf32>
    %135 = math.floor %131 : vector<1x256xf32>
    %136 = math.floor %134 : vector<1x256xf32>
    %137 = arith.subf %131, %135 : vector<1x256xf32>
    %138 = arith.subf %134, %136 : vector<1x256xf32>
    %139 = arith.fptosi %135 : vector<1x256xf32> to vector<1x256xi32>
    %140 = arith.fptosi %136 : vector<1x256xf32> to vector<1x256xi32>
    %c1_i32_46 = arith.constant 1 : i32
    %141 = vector.broadcast %c1_i32_46 : i32 to vector<1x256xi32>
    %142 = arith.addi %139, %141 : vector<1x256xi32>
    %c1_i32_47 = arith.constant 1 : i32
    %143 = vector.broadcast %c1_i32_47 : i32 to vector<1x256xi32>
    %144 = arith.addi %140, %143 : vector<1x256xi32>
    %c0_i32_48 = arith.constant 0 : i32
    %145 = vector.broadcast %c0_i32_48 : i32 to vector<1x256xi32>
    %146 = arith.cmpi sge, %139, %145 : vector<1x256xi32>
    %c16_i32_49 = arith.constant 16 : i32
    %147 = vector.broadcast %c16_i32_49 : i32 to vector<1x256xi32>
    %148 = arith.cmpi slt, %139, %147 : vector<1x256xi32>
    %149 = arith.andi %146, %148 : vector<1x256xi1>
    %c0_i32_50 = arith.constant 0 : i32
    %150 = vector.broadcast %c0_i32_50 : i32 to vector<1x256xi32>
    %151 = arith.cmpi sge, %142, %150 : vector<1x256xi32>
    %c16_i32_51 = arith.constant 16 : i32
    %152 = vector.broadcast %c16_i32_51 : i32 to vector<1x256xi32>
    %153 = arith.cmpi slt, %142, %152 : vector<1x256xi32>
    %154 = arith.andi %151, %153 : vector<1x256xi1>
    %c0_i32_52 = arith.constant 0 : i32
    %155 = vector.broadcast %c0_i32_52 : i32 to vector<1x256xi32>
    %156 = arith.cmpi sge, %140, %155 : vector<1x256xi32>
    %c16_i32_53 = arith.constant 16 : i32
    %157 = vector.broadcast %c16_i32_53 : i32 to vector<1x256xi32>
    %158 = arith.cmpi slt, %140, %157 : vector<1x256xi32>
    %159 = arith.andi %156, %158 : vector<1x256xi1>
    %c0_i32_54 = arith.constant 0 : i32
    %160 = vector.broadcast %c0_i32_54 : i32 to vector<1x256xi32>
    %161 = arith.cmpi sge, %144, %160 : vector<1x256xi32>
    %c16_i32_55 = arith.constant 16 : i32
    %162 = vector.broadcast %c16_i32_55 : i32 to vector<1x256xi32>
    %163 = arith.cmpi slt, %144, %162 : vector<1x256xi32>
    %164 = arith.andi %161, %163 : vector<1x256xi1>
    %cst_56 = arith.constant 1.000000e+00 : f32
    %165 = vector.broadcast %cst_56 : f32 to vector<1x256xf32>
    %166 = arith.subf %165, %137 : vector<1x256xf32>
    %cst_57 = arith.constant 1.000000e+00 : f32
    %167 = vector.broadcast %cst_57 : f32 to vector<1x256xf32>
    %168 = arith.subf %167, %138 : vector<1x256xf32>
    %169 = arith.andi %149, %159 : vector<1x256xi1>
    %170 = arith.mulf %166, %168 : vector<1x256xf32>
    %171 = arith.mulf %170, %128 : vector<1x256xf32>
    %cst_58 = arith.constant 0.000000e+00 : f32
    %172 = vector.broadcast %cst_58 : f32 to vector<1x256xf32>
    %173 = arith.select %169, %171, %172 : vector<1x256xi1>, vector<1x256xf32>
    %174 = arith.andi %149, %164 : vector<1x256xi1>
    %175 = arith.mulf %166, %138 : vector<1x256xf32>
    %176 = arith.mulf %175, %128 : vector<1x256xf32>
    %cst_59 = arith.constant 0.000000e+00 : f32
    %177 = vector.broadcast %cst_59 : f32 to vector<1x256xf32>
    %178 = arith.select %174, %176, %177 : vector<1x256xi1>, vector<1x256xf32>
    %179 = arith.andi %154, %159 : vector<1x256xi1>
    %180 = arith.mulf %137, %168 : vector<1x256xf32>
    %181 = arith.mulf %180, %128 : vector<1x256xf32>
    %cst_60 = arith.constant 0.000000e+00 : f32
    %182 = vector.broadcast %cst_60 : f32 to vector<1x256xf32>
    %183 = arith.select %179, %181, %182 : vector<1x256xi1>, vector<1x256xf32>
    %184 = arith.andi %154, %164 : vector<1x256xi1>
    %185 = arith.mulf %137, %138 : vector<1x256xf32>
    %186 = arith.mulf %185, %128 : vector<1x256xf32>
    %cst_61 = arith.constant 0.000000e+00 : f32
    %187 = vector.broadcast %cst_61 : f32 to vector<1x256xf32>
    %188 = arith.select %184, %186, %187 : vector<1x256xi1>, vector<1x256xf32>
    %c16_i32_62 = arith.constant 16 : i32
    %189 = vector.broadcast %c16_i32_62 : i32 to vector<1x256xi32>
    %190 = arith.muli %139, %189 : vector<1x256xi32>
    %191 = arith.addi %190, %140 : vector<1x256xi32>
    %c0_i32_63 = arith.constant 0 : i32
    %192 = vector.broadcast %c0_i32_63 : i32 to vector<1x256xi32>
    %193 = arith.cmpi slt, %191, %192 : vector<1x256xi32>
    %c256_i32_64 = arith.constant 256 : i32
    %194 = vector.broadcast %c256_i32_64 : i32 to vector<1x256xi32>
    %195 = arith.addi %191, %194 : vector<1x256xi32>
    %196 = arith.select %193, %195, %191 : vector<1x256xi1>, vector<1x256xi32>
    %197 = vector.broadcast %24 : vector<256x1xi32> to vector<256x256xi32>
    %198 = vector.broadcast %196 : vector<1x256xi32> to vector<256x256xi32>
    %199 = arith.cmpi eq, %197, %198 : vector<256x256xi32>
    %cst_65 = arith.constant 1.000000e+00 : f32
    %cst_66 = arith.constant 0.000000e+00 : f32
    %200 = vector.broadcast %cst_65 : f32 to vector<256x256xf32>
    %201 = vector.broadcast %cst_66 : f32 to vector<256x256xf32>
    %202 = arith.select %199, %200, %201 : vector<256x256xi1>, vector<256x256xf32>
    %cst_67 = arith.constant dense<0.000000e+00> : vector<16x256xf32>
    %203 = tpu.matmul %20, %202, %cst_67 {dimension_numbers = #tpu.dot_dimension_numbers<[1], [0], [0], [1], [0, 0, 1, 1], [], []>} : vector<16x256xf32>, vector<256x256xf32>, vector<16x256xf32> -> vector<16x256xf32>
    %204 = vector.extract_strided_slice %203 {offsets = [0, 0], sizes = [4, 256], strides = [1, 1]} : vector<16x256xf32> to vector<4x256xf32>
    %205 = vector.broadcast %173 : vector<1x256xf32> to vector<4x256xf32>
    %206 = arith.mulf %204, %205 : vector<4x256xf32>
    %207 = vector.extract_strided_slice %203 {offsets = [4, 0], sizes = [4, 256], strides = [1, 1]} : vector<16x256xf32> to vector<4x256xf32>
    %208 = vector.broadcast %178 : vector<1x256xf32> to vector<4x256xf32>
    %209 = arith.mulf %207, %208 : vector<4x256xf32>
    %210 = arith.addf %206, %209 : vector<4x256xf32>
    %211 = vector.extract_strided_slice %203 {offsets = [8, 0], sizes = [4, 256], strides = [1, 1]} : vector<16x256xf32> to vector<4x256xf32>
    %212 = vector.broadcast %183 : vector<1x256xf32> to vector<4x256xf32>
    %213 = arith.mulf %211, %212 : vector<4x256xf32>
    %214 = arith.addf %210, %213 : vector<4x256xf32>
    %215 = vector.extract_strided_slice %203 {offsets = [12, 0], sizes = [4, 256], strides = [1, 1]} : vector<16x256xf32> to vector<4x256xf32>
    %216 = vector.broadcast %188 : vector<1x256xf32> to vector<4x256xf32>
    %217 = arith.mulf %215, %216 : vector<4x256xf32>
    %218 = arith.addf %214, %217 : vector<4x256xf32>
    %c1 = arith.constant 1 : index
    %c0_68 = arith.constant 0 : index
    %c0_69 = arith.constant 0 : index
    %219 = vector.load %arg7[%c1, %c0_68, %c0_69] : memref<9x4x4xf32, #tpu.memory_space<vmem>>, vector<1x4x4xf32>
    %220 = vector.shape_cast %219 : vector<1x4x4xf32> to vector<4x4xf32>
    %cst_70 = arith.constant dense<0.000000e+00> : vector<4x256xf32>
    %221 = tpu.matmul %220, %218, %cst_70 {dimension_numbers = #tpu.dot_dimension_numbers<[1], [0], [0], [1], [0, 0, 1, 1], [], []>} : vector<4x4xf32>, vector<4x256xf32>, vector<4x256xf32> -> vector<4x256xf32>
    %222 = arith.addf %125, %221 : vector<4x256xf32>
    %223 = vector.extract_strided_slice %7 {offsets = [4, 0], sizes = [1, 256], strides = [1, 1]} : vector<18x256xf32> to vector<1x256xf32>
    %224 = vector.extract_strided_slice %7 {offsets = [5, 0], sizes = [1, 256], strides = [1, 1]} : vector<18x256xf32> to vector<1x256xf32>
    %225 = vector.extract_strided_slice %15 {offsets = [2, 0], sizes = [1, 256], strides = [1, 1]} : vector<9x256xf32> to vector<1x256xf32>
    %cst_71 = arith.constant -1.000000e+00 : f32
    %226 = vector.broadcast %cst_71 : f32 to vector<1x256xf32>
    %227 = arith.addf %22, %226 : vector<1x256xf32>
    %228 = arith.addf %227, %223 : vector<1x256xf32>
    %cst_72 = arith.constant 1.000000e+00 : f32
    %229 = vector.broadcast %cst_72 : f32 to vector<1x256xf32>
    %230 = arith.addf %23, %229 : vector<1x256xf32>
    %231 = arith.addf %230, %224 : vector<1x256xf32>
    %232 = math.floor %228 : vector<1x256xf32>
    %233 = math.floor %231 : vector<1x256xf32>
    %234 = arith.subf %228, %232 : vector<1x256xf32>
    %235 = arith.subf %231, %233 : vector<1x256xf32>
    %236 = arith.fptosi %232 : vector<1x256xf32> to vector<1x256xi32>
    %237 = arith.fptosi %233 : vector<1x256xf32> to vector<1x256xi32>
    %c1_i32_73 = arith.constant 1 : i32
    %238 = vector.broadcast %c1_i32_73 : i32 to vector<1x256xi32>
    %239 = arith.addi %236, %238 : vector<1x256xi32>
    %c1_i32_74 = arith.constant 1 : i32
    %240 = vector.broadcast %c1_i32_74 : i32 to vector<1x256xi32>
    %241 = arith.addi %237, %240 : vector<1x256xi32>
    %c0_i32_75 = arith.constant 0 : i32
    %242 = vector.broadcast %c0_i32_75 : i32 to vector<1x256xi32>
    %243 = arith.cmpi sge, %236, %242 : vector<1x256xi32>
    %c16_i32_76 = arith.constant 16 : i32
    %244 = vector.broadcast %c16_i32_76 : i32 to vector<1x256xi32>
    %245 = arith.cmpi slt, %236, %244 : vector<1x256xi32>
    %246 = arith.andi %243, %245 : vector<1x256xi1>
    %c0_i32_77 = arith.constant 0 : i32
    %247 = vector.broadcast %c0_i32_77 : i32 to vector<1x256xi32>
    %248 = arith.cmpi sge, %239, %247 : vector<1x256xi32>
    %c16_i32_78 = arith.constant 16 : i32
    %249 = vector.broadcast %c16_i32_78 : i32 to vector<1x256xi32>
    %250 = arith.cmpi slt, %239, %249 : vector<1x256xi32>
    %251 = arith.andi %248, %250 : vector<1x256xi1>
    %c0_i32_79 = arith.constant 0 : i32
    %252 = vector.broadcast %c0_i32_79 : i32 to vector<1x256xi32>
    %253 = arith.cmpi sge, %237, %252 : vector<1x256xi32>
    %c16_i32_80 = arith.constant 16 : i32
    %254 = vector.broadcast %c16_i32_80 : i32 to vector<1x256xi32>
    %255 = arith.cmpi slt, %237, %254 : vector<1x256xi32>
    %256 = arith.andi %253, %255 : vector<1x256xi1>
    %c0_i32_81 = arith.constant 0 : i32
    %257 = vector.broadcast %c0_i32_81 : i32 to vector<1x256xi32>
    %258 = arith.cmpi sge, %241, %257 : vector<1x256xi32>
    %c16_i32_82 = arith.constant 16 : i32
    %259 = vector.broadcast %c16_i32_82 : i32 to vector<1x256xi32>
    %260 = arith.cmpi slt, %241, %259 : vector<1x256xi32>
    %261 = arith.andi %258, %260 : vector<1x256xi1>
    %cst_83 = arith.constant 1.000000e+00 : f32
    %262 = vector.broadcast %cst_83 : f32 to vector<1x256xf32>
    %263 = arith.subf %262, %234 : vector<1x256xf32>
    %cst_84 = arith.constant 1.000000e+00 : f32
    %264 = vector.broadcast %cst_84 : f32 to vector<1x256xf32>
    %265 = arith.subf %264, %235 : vector<1x256xf32>
    %266 = arith.andi %246, %256 : vector<1x256xi1>
    %267 = arith.mulf %263, %265 : vector<1x256xf32>
    %268 = arith.mulf %267, %225 : vector<1x256xf32>
    %cst_85 = arith.constant 0.000000e+00 : f32
    %269 = vector.broadcast %cst_85 : f32 to vector<1x256xf32>
    %270 = arith.select %266, %268, %269 : vector<1x256xi1>, vector<1x256xf32>
    %271 = arith.andi %246, %261 : vector<1x256xi1>
    %272 = arith.mulf %263, %235 : vector<1x256xf32>
    %273 = arith.mulf %272, %225 : vector<1x256xf32>
    %cst_86 = arith.constant 0.000000e+00 : f32
    %274 = vector.broadcast %cst_86 : f32 to vector<1x256xf32>
    %275 = arith.select %271, %273, %274 : vector<1x256xi1>, vector<1x256xf32>
    %276 = arith.andi %251, %256 : vector<1x256xi1>
    %277 = arith.mulf %234, %265 : vector<1x256xf32>
    %278 = arith.mulf %277, %225 : vector<1x256xf32>
    %cst_87 = arith.constant 0.000000e+00 : f32
    %279 = vector.broadcast %cst_87 : f32 to vector<1x256xf32>
    %280 = arith.select %276, %278, %279 : vector<1x256xi1>, vector<1x256xf32>
    %281 = arith.andi %251, %261 : vector<1x256xi1>
    %282 = arith.mulf %234, %235 : vector<1x256xf32>
    %283 = arith.mulf %282, %225 : vector<1x256xf32>
    %cst_88 = arith.constant 0.000000e+00 : f32
    %284 = vector.broadcast %cst_88 : f32 to vector<1x256xf32>
    %285 = arith.select %281, %283, %284 : vector<1x256xi1>, vector<1x256xf32>
    %c16_i32_89 = arith.constant 16 : i32
    %286 = vector.broadcast %c16_i32_89 : i32 to vector<1x256xi32>
    %287 = arith.muli %236, %286 : vector<1x256xi32>
    %288 = arith.addi %287, %237 : vector<1x256xi32>
    %c0_i32_90 = arith.constant 0 : i32
    %289 = vector.broadcast %c0_i32_90 : i32 to vector<1x256xi32>
    %290 = arith.cmpi slt, %288, %289 : vector<1x256xi32>
    %c256_i32_91 = arith.constant 256 : i32
    %291 = vector.broadcast %c256_i32_91 : i32 to vector<1x256xi32>
    %292 = arith.addi %288, %291 : vector<1x256xi32>
    %293 = arith.select %290, %292, %288 : vector<1x256xi1>, vector<1x256xi32>
    %294 = vector.broadcast %24 : vector<256x1xi32> to vector<256x256xi32>
    %295 = vector.broadcast %293 : vector<1x256xi32> to vector<256x256xi32>
    %296 = arith.cmpi eq, %294, %295 : vector<256x256xi32>
    %cst_92 = arith.constant 1.000000e+00 : f32
    %cst_93 = arith.constant 0.000000e+00 : f32
    %297 = vector.broadcast %cst_92 : f32 to vector<256x256xf32>
    %298 = vector.broadcast %cst_93 : f32 to vector<256x256xf32>
    %299 = arith.select %296, %297, %298 : vector<256x256xi1>, vector<256x256xf32>
    %cst_94 = arith.constant dense<0.000000e+00> : vector<16x256xf32>
    %300 = tpu.matmul %20, %299, %cst_94 {dimension_numbers = #tpu.dot_dimension_numbers<[1], [0], [0], [1], [0, 0, 1, 1], [], []>} : vector<16x256xf32>, vector<256x256xf32>, vector<16x256xf32> -> vector<16x256xf32>
    %301 = vector.extract_strided_slice %300 {offsets = [0, 0], sizes = [4, 256], strides = [1, 1]} : vector<16x256xf32> to vector<4x256xf32>
    %302 = vector.broadcast %270 : vector<1x256xf32> to vector<4x256xf32>
    %303 = arith.mulf %301, %302 : vector<4x256xf32>
    %304 = vector.extract_strided_slice %300 {offsets = [4, 0], sizes = [4, 256], strides = [1, 1]} : vector<16x256xf32> to vector<4x256xf32>
    %305 = vector.broadcast %275 : vector<1x256xf32> to vector<4x256xf32>
    %306 = arith.mulf %304, %305 : vector<4x256xf32>
    %307 = arith.addf %303, %306 : vector<4x256xf32>
    %308 = vector.extract_strided_slice %300 {offsets = [8, 0], sizes = [4, 256], strides = [1, 1]} : vector<16x256xf32> to vector<4x256xf32>
    %309 = vector.broadcast %280 : vector<1x256xf32> to vector<4x256xf32>
    %310 = arith.mulf %308, %309 : vector<4x256xf32>
    %311 = arith.addf %307, %310 : vector<4x256xf32>
    %312 = vector.extract_strided_slice %300 {offsets = [12, 0], sizes = [4, 256], strides = [1, 1]} : vector<16x256xf32> to vector<4x256xf32>
    %313 = vector.broadcast %285 : vector<1x256xf32> to vector<4x256xf32>
    %314 = arith.mulf %312, %313 : vector<4x256xf32>
    %315 = arith.addf %311, %314 : vector<4x256xf32>
    %c2 = arith.constant 2 : index
    %c0_95 = arith.constant 0 : index
    %c0_96 = arith.constant 0 : index
    %316 = vector.load %arg7[%c2, %c0_95, %c0_96] : memref<9x4x4xf32, #tpu.memory_space<vmem>>, vector<1x4x4xf32>
    %317 = vector.shape_cast %316 : vector<1x4x4xf32> to vector<4x4xf32>
    %cst_97 = arith.constant dense<0.000000e+00> : vector<4x256xf32>
    %318 = tpu.matmul %317, %315, %cst_97 {dimension_numbers = #tpu.dot_dimension_numbers<[1], [0], [0], [1], [0, 0, 1, 1], [], []>} : vector<4x4xf32>, vector<4x256xf32>, vector<4x256xf32> -> vector<4x256xf32>
    %319 = arith.addf %222, %318 : vector<4x256xf32>
    %320 = vector.extract_strided_slice %7 {offsets = [6, 0], sizes = [1, 256], strides = [1, 1]} : vector<18x256xf32> to vector<1x256xf32>
    %321 = vector.extract_strided_slice %7 {offsets = [7, 0], sizes = [1, 256], strides = [1, 1]} : vector<18x256xf32> to vector<1x256xf32>
    %322 = vector.extract_strided_slice %15 {offsets = [3, 0], sizes = [1, 256], strides = [1, 1]} : vector<9x256xf32> to vector<1x256xf32>
    %cst_98 = arith.constant 0.000000e+00 : f32
    %323 = vector.broadcast %cst_98 : f32 to vector<1x256xf32>
    %324 = arith.addf %22, %323 : vector<1x256xf32>
    %325 = arith.addf %324, %320 : vector<1x256xf32>
    %cst_99 = arith.constant -1.000000e+00 : f32
    %326 = vector.broadcast %cst_99 : f32 to vector<1x256xf32>
    %327 = arith.addf %23, %326 : vector<1x256xf32>
    %328 = arith.addf %327, %321 : vector<1x256xf32>
    %329 = math.floor %325 : vector<1x256xf32>
    %330 = math.floor %328 : vector<1x256xf32>
    %331 = arith.subf %325, %329 : vector<1x256xf32>
    %332 = arith.subf %328, %330 : vector<1x256xf32>
    %333 = arith.fptosi %329 : vector<1x256xf32> to vector<1x256xi32>
    %334 = arith.fptosi %330 : vector<1x256xf32> to vector<1x256xi32>
    %c1_i32_100 = arith.constant 1 : i32
    %335 = vector.broadcast %c1_i32_100 : i32 to vector<1x256xi32>
    %336 = arith.addi %333, %335 : vector<1x256xi32>
    %c1_i32_101 = arith.constant 1 : i32
    %337 = vector.broadcast %c1_i32_101 : i32 to vector<1x256xi32>
    %338 = arith.addi %334, %337 : vector<1x256xi32>
    %c0_i32_102 = arith.constant 0 : i32
    %339 = vector.broadcast %c0_i32_102 : i32 to vector<1x256xi32>
    %340 = arith.cmpi sge, %333, %339 : vector<1x256xi32>
    %c16_i32_103 = arith.constant 16 : i32
    %341 = vector.broadcast %c16_i32_103 : i32 to vector<1x256xi32>
    %342 = arith.cmpi slt, %333, %341 : vector<1x256xi32>
    %343 = arith.andi %340, %342 : vector<1x256xi1>
    %c0_i32_104 = arith.constant 0 : i32
    %344 = vector.broadcast %c0_i32_104 : i32 to vector<1x256xi32>
    %345 = arith.cmpi sge, %336, %344 : vector<1x256xi32>
    %c16_i32_105 = arith.constant 16 : i32
    %346 = vector.broadcast %c16_i32_105 : i32 to vector<1x256xi32>
    %347 = arith.cmpi slt, %336, %346 : vector<1x256xi32>
    %348 = arith.andi %345, %347 : vector<1x256xi1>
    %c0_i32_106 = arith.constant 0 : i32
    %349 = vector.broadcast %c0_i32_106 : i32 to vector<1x256xi32>
    %350 = arith.cmpi sge, %334, %349 : vector<1x256xi32>
    %c16_i32_107 = arith.constant 16 : i32
    %351 = vector.broadcast %c16_i32_107 : i32 to vector<1x256xi32>
    %352 = arith.cmpi slt, %334, %351 : vector<1x256xi32>
    %353 = arith.andi %350, %352 : vector<1x256xi1>
    %c0_i32_108 = arith.constant 0 : i32
    %354 = vector.broadcast %c0_i32_108 : i32 to vector<1x256xi32>
    %355 = arith.cmpi sge, %338, %354 : vector<1x256xi32>
    %c16_i32_109 = arith.constant 16 : i32
    %356 = vector.broadcast %c16_i32_109 : i32 to vector<1x256xi32>
    %357 = arith.cmpi slt, %338, %356 : vector<1x256xi32>
    %358 = arith.andi %355, %357 : vector<1x256xi1>
    %cst_110 = arith.constant 1.000000e+00 : f32
    %359 = vector.broadcast %cst_110 : f32 to vector<1x256xf32>
    %360 = arith.subf %359, %331 : vector<1x256xf32>
    %cst_111 = arith.constant 1.000000e+00 : f32
    %361 = vector.broadcast %cst_111 : f32 to vector<1x256xf32>
    %362 = arith.subf %361, %332 : vector<1x256xf32>
    %363 = arith.andi %343, %353 : vector<1x256xi1>
    %364 = arith.mulf %360, %362 : vector<1x256xf32>
    %365 = arith.mulf %364, %322 : vector<1x256xf32>
    %cst_112 = arith.constant 0.000000e+00 : f32
    %366 = vector.broadcast %cst_112 : f32 to vector<1x256xf32>
    %367 = arith.select %363, %365, %366 : vector<1x256xi1>, vector<1x256xf32>
    %368 = arith.andi %343, %358 : vector<1x256xi1>
    %369 = arith.mulf %360, %332 : vector<1x256xf32>
    %370 = arith.mulf %369, %322 : vector<1x256xf32>
    %cst_113 = arith.constant 0.000000e+00 : f32
    %371 = vector.broadcast %cst_113 : f32 to vector<1x256xf32>
    %372 = arith.select %368, %370, %371 : vector<1x256xi1>, vector<1x256xf32>
    %373 = arith.andi %348, %353 : vector<1x256xi1>
    %374 = arith.mulf %331, %362 : vector<1x256xf32>
    %375 = arith.mulf %374, %322 : vector<1x256xf32>
    %cst_114 = arith.constant 0.000000e+00 : f32
    %376 = vector.broadcast %cst_114 : f32 to vector<1x256xf32>
    %377 = arith.select %373, %375, %376 : vector<1x256xi1>, vector<1x256xf32>
    %378 = arith.andi %348, %358 : vector<1x256xi1>
    %379 = arith.mulf %331, %332 : vector<1x256xf32>
    %380 = arith.mulf %379, %322 : vector<1x256xf32>
    %cst_115 = arith.constant 0.000000e+00 : f32
    %381 = vector.broadcast %cst_115 : f32 to vector<1x256xf32>
    %382 = arith.select %378, %380, %381 : vector<1x256xi1>, vector<1x256xf32>
    %c16_i32_116 = arith.constant 16 : i32
    %383 = vector.broadcast %c16_i32_116 : i32 to vector<1x256xi32>
    %384 = arith.muli %333, %383 : vector<1x256xi32>
    %385 = arith.addi %384, %334 : vector<1x256xi32>
    %c0_i32_117 = arith.constant 0 : i32
    %386 = vector.broadcast %c0_i32_117 : i32 to vector<1x256xi32>
    %387 = arith.cmpi slt, %385, %386 : vector<1x256xi32>
    %c256_i32_118 = arith.constant 256 : i32
    %388 = vector.broadcast %c256_i32_118 : i32 to vector<1x256xi32>
    %389 = arith.addi %385, %388 : vector<1x256xi32>
    %390 = arith.select %387, %389, %385 : vector<1x256xi1>, vector<1x256xi32>
    %391 = vector.broadcast %24 : vector<256x1xi32> to vector<256x256xi32>
    %392 = vector.broadcast %390 : vector<1x256xi32> to vector<256x256xi32>
    %393 = arith.cmpi eq, %391, %392 : vector<256x256xi32>
    %cst_119 = arith.constant 1.000000e+00 : f32
    %cst_120 = arith.constant 0.000000e+00 : f32
    %394 = vector.broadcast %cst_119 : f32 to vector<256x256xf32>
    %395 = vector.broadcast %cst_120 : f32 to vector<256x256xf32>
    %396 = arith.select %393, %394, %395 : vector<256x256xi1>, vector<256x256xf32>
    %cst_121 = arith.constant dense<0.000000e+00> : vector<16x256xf32>
    %397 = tpu.matmul %20, %396, %cst_121 {dimension_numbers = #tpu.dot_dimension_numbers<[1], [0], [0], [1], [0, 0, 1, 1], [], []>} : vector<16x256xf32>, vector<256x256xf32>, vector<16x256xf32> -> vector<16x256xf32>
    %398 = vector.extract_strided_slice %397 {offsets = [0, 0], sizes = [4, 256], strides = [1, 1]} : vector<16x256xf32> to vector<4x256xf32>
    %399 = vector.broadcast %367 : vector<1x256xf32> to vector<4x256xf32>
    %400 = arith.mulf %398, %399 : vector<4x256xf32>
    %401 = vector.extract_strided_slice %397 {offsets = [4, 0], sizes = [4, 256], strides = [1, 1]} : vector<16x256xf32> to vector<4x256xf32>
    %402 = vector.broadcast %372 : vector<1x256xf32> to vector<4x256xf32>
    %403 = arith.mulf %401, %402 : vector<4x256xf32>
    %404 = arith.addf %400, %403 : vector<4x256xf32>
    %405 = vector.extract_strided_slice %397 {offsets = [8, 0], sizes = [4, 256], strides = [1, 1]} : vector<16x256xf32> to vector<4x256xf32>
    %406 = vector.broadcast %377 : vector<1x256xf32> to vector<4x256xf32>
    %407 = arith.mulf %405, %406 : vector<4x256xf32>
    %408 = arith.addf %404, %407 : vector<4x256xf32>
    %409 = vector.extract_strided_slice %397 {offsets = [12, 0], sizes = [4, 256], strides = [1, 1]} : vector<16x256xf32> to vector<4x256xf32>
    %410 = vector.broadcast %382 : vector<1x256xf32> to vector<4x256xf32>
    %411 = arith.mulf %409, %410 : vector<4x256xf32>
    %412 = arith.addf %408, %411 : vector<4x256xf32>
    %c3 = arith.constant 3 : index
    %c0_122 = arith.constant 0 : index
    %c0_123 = arith.constant 0 : index
    %413 = vector.load %arg7[%c3, %c0_122, %c0_123] : memref<9x4x4xf32, #tpu.memory_space<vmem>>, vector<1x4x4xf32>
    %414 = vector.shape_cast %413 : vector<1x4x4xf32> to vector<4x4xf32>
    %cst_124 = arith.constant dense<0.000000e+00> : vector<4x256xf32>
    %415 = tpu.matmul %414, %412, %cst_124 {dimension_numbers = #tpu.dot_dimension_numbers<[1], [0], [0], [1], [0, 0, 1, 1], [], []>} : vector<4x4xf32>, vector<4x256xf32>, vector<4x256xf32> -> vector<4x256xf32>
    %416 = arith.addf %319, %415 : vector<4x256xf32>
    %417 = vector.extract_strided_slice %7 {offsets = [8, 0], sizes = [1, 256], strides = [1, 1]} : vector<18x256xf32> to vector<1x256xf32>
    %418 = vector.extract_strided_slice %7 {offsets = [9, 0], sizes = [1, 256], strides = [1, 1]} : vector<18x256xf32> to vector<1x256xf32>
    %419 = vector.extract_strided_slice %15 {offsets = [4, 0], sizes = [1, 256], strides = [1, 1]} : vector<9x256xf32> to vector<1x256xf32>
    %cst_125 = arith.constant 0.000000e+00 : f32
    %420 = vector.broadcast %cst_125 : f32 to vector<1x256xf32>
    %421 = arith.addf %22, %420 : vector<1x256xf32>
    %422 = arith.addf %421, %417 : vector<1x256xf32>
    %cst_126 = arith.constant 0.000000e+00 : f32
    %423 = vector.broadcast %cst_126 : f32 to vector<1x256xf32>
    %424 = arith.addf %23, %423 : vector<1x256xf32>
    %425 = arith.addf %424, %418 : vector<1x256xf32>
    %426 = math.floor %422 : vector<1x256xf32>
    %427 = math.floor %425 : vector<1x256xf32>
    %428 = arith.subf %422, %426 : vector<1x256xf32>
    %429 = arith.subf %425, %427 : vector<1x256xf32>
    %430 = arith.fptosi %426 : vector<1x256xf32> to vector<1x256xi32>
    %431 = arith.fptosi %427 : vector<1x256xf32> to vector<1x256xi32>
    %c1_i32_127 = arith.constant 1 : i32
    %432 = vector.broadcast %c1_i32_127 : i32 to vector<1x256xi32>
    %433 = arith.addi %430, %432 : vector<1x256xi32>
    %c1_i32_128 = arith.constant 1 : i32
    %434 = vector.broadcast %c1_i32_128 : i32 to vector<1x256xi32>
    %435 = arith.addi %431, %434 : vector<1x256xi32>
    %c0_i32_129 = arith.constant 0 : i32
    %436 = vector.broadcast %c0_i32_129 : i32 to vector<1x256xi32>
    %437 = arith.cmpi sge, %430, %436 : vector<1x256xi32>
    %c16_i32_130 = arith.constant 16 : i32
    %438 = vector.broadcast %c16_i32_130 : i32 to vector<1x256xi32>
    %439 = arith.cmpi slt, %430, %438 : vector<1x256xi32>
    %440 = arith.andi %437, %439 : vector<1x256xi1>
    %c0_i32_131 = arith.constant 0 : i32
    %441 = vector.broadcast %c0_i32_131 : i32 to vector<1x256xi32>
    %442 = arith.cmpi sge, %433, %441 : vector<1x256xi32>
    %c16_i32_132 = arith.constant 16 : i32
    %443 = vector.broadcast %c16_i32_132 : i32 to vector<1x256xi32>
    %444 = arith.cmpi slt, %433, %443 : vector<1x256xi32>
    %445 = arith.andi %442, %444 : vector<1x256xi1>
    %c0_i32_133 = arith.constant 0 : i32
    %446 = vector.broadcast %c0_i32_133 : i32 to vector<1x256xi32>
    %447 = arith.cmpi sge, %431, %446 : vector<1x256xi32>
    %c16_i32_134 = arith.constant 16 : i32
    %448 = vector.broadcast %c16_i32_134 : i32 to vector<1x256xi32>
    %449 = arith.cmpi slt, %431, %448 : vector<1x256xi32>
    %450 = arith.andi %447, %449 : vector<1x256xi1>
    %c0_i32_135 = arith.constant 0 : i32
    %451 = vector.broadcast %c0_i32_135 : i32 to vector<1x256xi32>
    %452 = arith.cmpi sge, %435, %451 : vector<1x256xi32>
    %c16_i32_136 = arith.constant 16 : i32
    %453 = vector.broadcast %c16_i32_136 : i32 to vector<1x256xi32>
    %454 = arith.cmpi slt, %435, %453 : vector<1x256xi32>
    %455 = arith.andi %452, %454 : vector<1x256xi1>
    %cst_137 = arith.constant 1.000000e+00 : f32
    %456 = vector.broadcast %cst_137 : f32 to vector<1x256xf32>
    %457 = arith.subf %456, %428 : vector<1x256xf32>
    %cst_138 = arith.constant 1.000000e+00 : f32
    %458 = vector.broadcast %cst_138 : f32 to vector<1x256xf32>
    %459 = arith.subf %458, %429 : vector<1x256xf32>
    %460 = arith.andi %440, %450 : vector<1x256xi1>
    %461 = arith.mulf %457, %459 : vector<1x256xf32>
    %462 = arith.mulf %461, %419 : vector<1x256xf32>
    %cst_139 = arith.constant 0.000000e+00 : f32
    %463 = vector.broadcast %cst_139 : f32 to vector<1x256xf32>
    %464 = arith.select %460, %462, %463 : vector<1x256xi1>, vector<1x256xf32>
    %465 = arith.andi %440, %455 : vector<1x256xi1>
    %466 = arith.mulf %457, %429 : vector<1x256xf32>
    %467 = arith.mulf %466, %419 : vector<1x256xf32>
    %cst_140 = arith.constant 0.000000e+00 : f32
    %468 = vector.broadcast %cst_140 : f32 to vector<1x256xf32>
    %469 = arith.select %465, %467, %468 : vector<1x256xi1>, vector<1x256xf32>
    %470 = arith.andi %445, %450 : vector<1x256xi1>
    %471 = arith.mulf %428, %459 : vector<1x256xf32>
    %472 = arith.mulf %471, %419 : vector<1x256xf32>
    %cst_141 = arith.constant 0.000000e+00 : f32
    %473 = vector.broadcast %cst_141 : f32 to vector<1x256xf32>
    %474 = arith.select %470, %472, %473 : vector<1x256xi1>, vector<1x256xf32>
    %475 = arith.andi %445, %455 : vector<1x256xi1>
    %476 = arith.mulf %428, %429 : vector<1x256xf32>
    %477 = arith.mulf %476, %419 : vector<1x256xf32>
    %cst_142 = arith.constant 0.000000e+00 : f32
    %478 = vector.broadcast %cst_142 : f32 to vector<1x256xf32>
    %479 = arith.select %475, %477, %478 : vector<1x256xi1>, vector<1x256xf32>
    %c16_i32_143 = arith.constant 16 : i32
    %480 = vector.broadcast %c16_i32_143 : i32 to vector<1x256xi32>
    %481 = arith.muli %430, %480 : vector<1x256xi32>
    %482 = arith.addi %481, %431 : vector<1x256xi32>
    %c0_i32_144 = arith.constant 0 : i32
    %483 = vector.broadcast %c0_i32_144 : i32 to vector<1x256xi32>
    %484 = arith.cmpi slt, %482, %483 : vector<1x256xi32>
    %c256_i32_145 = arith.constant 256 : i32
    %485 = vector.broadcast %c256_i32_145 : i32 to vector<1x256xi32>
    %486 = arith.addi %482, %485 : vector<1x256xi32>
    %487 = arith.select %484, %486, %482 : vector<1x256xi1>, vector<1x256xi32>
    %488 = vector.broadcast %24 : vector<256x1xi32> to vector<256x256xi32>
    %489 = vector.broadcast %487 : vector<1x256xi32> to vector<256x256xi32>
    %490 = arith.cmpi eq, %488, %489 : vector<256x256xi32>
    %cst_146 = arith.constant 1.000000e+00 : f32
    %cst_147 = arith.constant 0.000000e+00 : f32
    %491 = vector.broadcast %cst_146 : f32 to vector<256x256xf32>
    %492 = vector.broadcast %cst_147 : f32 to vector<256x256xf32>
    %493 = arith.select %490, %491, %492 : vector<256x256xi1>, vector<256x256xf32>
    %cst_148 = arith.constant dense<0.000000e+00> : vector<16x256xf32>
    %494 = tpu.matmul %20, %493, %cst_148 {dimension_numbers = #tpu.dot_dimension_numbers<[1], [0], [0], [1], [0, 0, 1, 1], [], []>} : vector<16x256xf32>, vector<256x256xf32>, vector<16x256xf32> -> vector<16x256xf32>
    %495 = vector.extract_strided_slice %494 {offsets = [0, 0], sizes = [4, 256], strides = [1, 1]} : vector<16x256xf32> to vector<4x256xf32>
    %496 = vector.broadcast %464 : vector<1x256xf32> to vector<4x256xf32>
    %497 = arith.mulf %495, %496 : vector<4x256xf32>
    %498 = vector.extract_strided_slice %494 {offsets = [4, 0], sizes = [4, 256], strides = [1, 1]} : vector<16x256xf32> to vector<4x256xf32>
    %499 = vector.broadcast %469 : vector<1x256xf32> to vector<4x256xf32>
    %500 = arith.mulf %498, %499 : vector<4x256xf32>
    %501 = arith.addf %497, %500 : vector<4x256xf32>
    %502 = vector.extract_strided_slice %494 {offsets = [8, 0], sizes = [4, 256], strides = [1, 1]} : vector<16x256xf32> to vector<4x256xf32>
    %503 = vector.broadcast %474 : vector<1x256xf32> to vector<4x256xf32>
    %504 = arith.mulf %502, %503 : vector<4x256xf32>
    %505 = arith.addf %501, %504 : vector<4x256xf32>
    %506 = vector.extract_strided_slice %494 {offsets = [12, 0], sizes = [4, 256], strides = [1, 1]} : vector<16x256xf32> to vector<4x256xf32>
    %507 = vector.broadcast %479 : vector<1x256xf32> to vector<4x256xf32>
    %508 = arith.mulf %506, %507 : vector<4x256xf32>
    %509 = arith.addf %505, %508 : vector<4x256xf32>
    %c4 = arith.constant 4 : index
    %c0_149 = arith.constant 0 : index
    %c0_150 = arith.constant 0 : index
    %510 = vector.load %arg7[%c4, %c0_149, %c0_150] : memref<9x4x4xf32, #tpu.memory_space<vmem>>, vector<1x4x4xf32>
    %511 = vector.shape_cast %510 : vector<1x4x4xf32> to vector<4x4xf32>
    %cst_151 = arith.constant dense<0.000000e+00> : vector<4x256xf32>
    %512 = tpu.matmul %511, %509, %cst_151 {dimension_numbers = #tpu.dot_dimension_numbers<[1], [0], [0], [1], [0, 0, 1, 1], [], []>} : vector<4x4xf32>, vector<4x256xf32>, vector<4x256xf32> -> vector<4x256xf32>
    %513 = arith.addf %416, %512 : vector<4x256xf32>
    %514 = vector.extract_strided_slice %7 {offsets = [10, 0], sizes = [1, 256], strides = [1, 1]} : vector<18x256xf32> to vector<1x256xf32>
    %515 = vector.extract_strided_slice %7 {offsets = [11, 0], sizes = [1, 256], strides = [1, 1]} : vector<18x256xf32> to vector<1x256xf32>
    %516 = vector.extract_strided_slice %15 {offsets = [5, 0], sizes = [1, 256], strides = [1, 1]} : vector<9x256xf32> to vector<1x256xf32>
    %cst_152 = arith.constant 0.000000e+00 : f32
    %517 = vector.broadcast %cst_152 : f32 to vector<1x256xf32>
    %518 = arith.addf %22, %517 : vector<1x256xf32>
    %519 = arith.addf %518, %514 : vector<1x256xf32>
    %cst_153 = arith.constant 1.000000e+00 : f32
    %520 = vector.broadcast %cst_153 : f32 to vector<1x256xf32>
    %521 = arith.addf %23, %520 : vector<1x256xf32>
    %522 = arith.addf %521, %515 : vector<1x256xf32>
    %523 = math.floor %519 : vector<1x256xf32>
    %524 = math.floor %522 : vector<1x256xf32>
    %525 = arith.subf %519, %523 : vector<1x256xf32>
    %526 = arith.subf %522, %524 : vector<1x256xf32>
    %527 = arith.fptosi %523 : vector<1x256xf32> to vector<1x256xi32>
    %528 = arith.fptosi %524 : vector<1x256xf32> to vector<1x256xi32>
    %c1_i32_154 = arith.constant 1 : i32
    %529 = vector.broadcast %c1_i32_154 : i32 to vector<1x256xi32>
    %530 = arith.addi %527, %529 : vector<1x256xi32>
    %c1_i32_155 = arith.constant 1 : i32
    %531 = vector.broadcast %c1_i32_155 : i32 to vector<1x256xi32>
    %532 = arith.addi %528, %531 : vector<1x256xi32>
    %c0_i32_156 = arith.constant 0 : i32
    %533 = vector.broadcast %c0_i32_156 : i32 to vector<1x256xi32>
    %534 = arith.cmpi sge, %527, %533 : vector<1x256xi32>
    %c16_i32_157 = arith.constant 16 : i32
    %535 = vector.broadcast %c16_i32_157 : i32 to vector<1x256xi32>
    %536 = arith.cmpi slt, %527, %535 : vector<1x256xi32>
    %537 = arith.andi %534, %536 : vector<1x256xi1>
    %c0_i32_158 = arith.constant 0 : i32
    %538 = vector.broadcast %c0_i32_158 : i32 to vector<1x256xi32>
    %539 = arith.cmpi sge, %530, %538 : vector<1x256xi32>
    %c16_i32_159 = arith.constant 16 : i32
    %540 = vector.broadcast %c16_i32_159 : i32 to vector<1x256xi32>
    %541 = arith.cmpi slt, %530, %540 : vector<1x256xi32>
    %542 = arith.andi %539, %541 : vector<1x256xi1>
    %c0_i32_160 = arith.constant 0 : i32
    %543 = vector.broadcast %c0_i32_160 : i32 to vector<1x256xi32>
    %544 = arith.cmpi sge, %528, %543 : vector<1x256xi32>
    %c16_i32_161 = arith.constant 16 : i32
    %545 = vector.broadcast %c16_i32_161 : i32 to vector<1x256xi32>
    %546 = arith.cmpi slt, %528, %545 : vector<1x256xi32>
    %547 = arith.andi %544, %546 : vector<1x256xi1>
    %c0_i32_162 = arith.constant 0 : i32
    %548 = vector.broadcast %c0_i32_162 : i32 to vector<1x256xi32>
    %549 = arith.cmpi sge, %532, %548 : vector<1x256xi32>
    %c16_i32_163 = arith.constant 16 : i32
    %550 = vector.broadcast %c16_i32_163 : i32 to vector<1x256xi32>
    %551 = arith.cmpi slt, %532, %550 : vector<1x256xi32>
    %552 = arith.andi %549, %551 : vector<1x256xi1>
    %cst_164 = arith.constant 1.000000e+00 : f32
    %553 = vector.broadcast %cst_164 : f32 to vector<1x256xf32>
    %554 = arith.subf %553, %525 : vector<1x256xf32>
    %cst_165 = arith.constant 1.000000e+00 : f32
    %555 = vector.broadcast %cst_165 : f32 to vector<1x256xf32>
    %556 = arith.subf %555, %526 : vector<1x256xf32>
    %557 = arith.andi %537, %547 : vector<1x256xi1>
    %558 = arith.mulf %554, %556 : vector<1x256xf32>
    %559 = arith.mulf %558, %516 : vector<1x256xf32>
    %cst_166 = arith.constant 0.000000e+00 : f32
    %560 = vector.broadcast %cst_166 : f32 to vector<1x256xf32>
    %561 = arith.select %557, %559, %560 : vector<1x256xi1>, vector<1x256xf32>
    %562 = arith.andi %537, %552 : vector<1x256xi1>
    %563 = arith.mulf %554, %526 : vector<1x256xf32>
    %564 = arith.mulf %563, %516 : vector<1x256xf32>
    %cst_167 = arith.constant 0.000000e+00 : f32
    %565 = vector.broadcast %cst_167 : f32 to vector<1x256xf32>
    %566 = arith.select %562, %564, %565 : vector<1x256xi1>, vector<1x256xf32>
    %567 = arith.andi %542, %547 : vector<1x256xi1>
    %568 = arith.mulf %525, %556 : vector<1x256xf32>
    %569 = arith.mulf %568, %516 : vector<1x256xf32>
    %cst_168 = arith.constant 0.000000e+00 : f32
    %570 = vector.broadcast %cst_168 : f32 to vector<1x256xf32>
    %571 = arith.select %567, %569, %570 : vector<1x256xi1>, vector<1x256xf32>
    %572 = arith.andi %542, %552 : vector<1x256xi1>
    %573 = arith.mulf %525, %526 : vector<1x256xf32>
    %574 = arith.mulf %573, %516 : vector<1x256xf32>
    %cst_169 = arith.constant 0.000000e+00 : f32
    %575 = vector.broadcast %cst_169 : f32 to vector<1x256xf32>
    %576 = arith.select %572, %574, %575 : vector<1x256xi1>, vector<1x256xf32>
    %c16_i32_170 = arith.constant 16 : i32
    %577 = vector.broadcast %c16_i32_170 : i32 to vector<1x256xi32>
    %578 = arith.muli %527, %577 : vector<1x256xi32>
    %579 = arith.addi %578, %528 : vector<1x256xi32>
    %c0_i32_171 = arith.constant 0 : i32
    %580 = vector.broadcast %c0_i32_171 : i32 to vector<1x256xi32>
    %581 = arith.cmpi slt, %579, %580 : vector<1x256xi32>
    %c256_i32_172 = arith.constant 256 : i32
    %582 = vector.broadcast %c256_i32_172 : i32 to vector<1x256xi32>
    %583 = arith.addi %579, %582 : vector<1x256xi32>
    %584 = arith.select %581, %583, %579 : vector<1x256xi1>, vector<1x256xi32>
    %585 = vector.broadcast %24 : vector<256x1xi32> to vector<256x256xi32>
    %586 = vector.broadcast %584 : vector<1x256xi32> to vector<256x256xi32>
    %587 = arith.cmpi eq, %585, %586 : vector<256x256xi32>
    %cst_173 = arith.constant 1.000000e+00 : f32
    %cst_174 = arith.constant 0.000000e+00 : f32
    %588 = vector.broadcast %cst_173 : f32 to vector<256x256xf32>
    %589 = vector.broadcast %cst_174 : f32 to vector<256x256xf32>
    %590 = arith.select %587, %588, %589 : vector<256x256xi1>, vector<256x256xf32>
    %cst_175 = arith.constant dense<0.000000e+00> : vector<16x256xf32>
    %591 = tpu.matmul %20, %590, %cst_175 {dimension_numbers = #tpu.dot_dimension_numbers<[1], [0], [0], [1], [0, 0, 1, 1], [], []>} : vector<16x256xf32>, vector<256x256xf32>, vector<16x256xf32> -> vector<16x256xf32>
    %592 = vector.extract_strided_slice %591 {offsets = [0, 0], sizes = [4, 256], strides = [1, 1]} : vector<16x256xf32> to vector<4x256xf32>
    %593 = vector.broadcast %561 : vector<1x256xf32> to vector<4x256xf32>
    %594 = arith.mulf %592, %593 : vector<4x256xf32>
    %595 = vector.extract_strided_slice %591 {offsets = [4, 0], sizes = [4, 256], strides = [1, 1]} : vector<16x256xf32> to vector<4x256xf32>
    %596 = vector.broadcast %566 : vector<1x256xf32> to vector<4x256xf32>
    %597 = arith.mulf %595, %596 : vector<4x256xf32>
    %598 = arith.addf %594, %597 : vector<4x256xf32>
    %599 = vector.extract_strided_slice %591 {offsets = [8, 0], sizes = [4, 256], strides = [1, 1]} : vector<16x256xf32> to vector<4x256xf32>
    %600 = vector.broadcast %571 : vector<1x256xf32> to vector<4x256xf32>
    %601 = arith.mulf %599, %600 : vector<4x256xf32>
    %602 = arith.addf %598, %601 : vector<4x256xf32>
    %603 = vector.extract_strided_slice %591 {offsets = [12, 0], sizes = [4, 256], strides = [1, 1]} : vector<16x256xf32> to vector<4x256xf32>
    %604 = vector.broadcast %576 : vector<1x256xf32> to vector<4x256xf32>
    %605 = arith.mulf %603, %604 : vector<4x256xf32>
    %606 = arith.addf %602, %605 : vector<4x256xf32>
    %c5 = arith.constant 5 : index
    %c0_176 = arith.constant 0 : index
    %c0_177 = arith.constant 0 : index
    %607 = vector.load %arg7[%c5, %c0_176, %c0_177] : memref<9x4x4xf32, #tpu.memory_space<vmem>>, vector<1x4x4xf32>
    %608 = vector.shape_cast %607 : vector<1x4x4xf32> to vector<4x4xf32>
    %cst_178 = arith.constant dense<0.000000e+00> : vector<4x256xf32>
    %609 = tpu.matmul %608, %606, %cst_178 {dimension_numbers = #tpu.dot_dimension_numbers<[1], [0], [0], [1], [0, 0, 1, 1], [], []>} : vector<4x4xf32>, vector<4x256xf32>, vector<4x256xf32> -> vector<4x256xf32>
    %610 = arith.addf %513, %609 : vector<4x256xf32>
    %611 = vector.extract_strided_slice %7 {offsets = [12, 0], sizes = [1, 256], strides = [1, 1]} : vector<18x256xf32> to vector<1x256xf32>
    %612 = vector.extract_strided_slice %7 {offsets = [13, 0], sizes = [1, 256], strides = [1, 1]} : vector<18x256xf32> to vector<1x256xf32>
    %613 = vector.extract_strided_slice %15 {offsets = [6, 0], sizes = [1, 256], strides = [1, 1]} : vector<9x256xf32> to vector<1x256xf32>
    %cst_179 = arith.constant 1.000000e+00 : f32
    %614 = vector.broadcast %cst_179 : f32 to vector<1x256xf32>
    %615 = arith.addf %22, %614 : vector<1x256xf32>
    %616 = arith.addf %615, %611 : vector<1x256xf32>
    %cst_180 = arith.constant -1.000000e+00 : f32
    %617 = vector.broadcast %cst_180 : f32 to vector<1x256xf32>
    %618 = arith.addf %23, %617 : vector<1x256xf32>
    %619 = arith.addf %618, %612 : vector<1x256xf32>
    %620 = math.floor %616 : vector<1x256xf32>
    %621 = math.floor %619 : vector<1x256xf32>
    %622 = arith.subf %616, %620 : vector<1x256xf32>
    %623 = arith.subf %619, %621 : vector<1x256xf32>
    %624 = arith.fptosi %620 : vector<1x256xf32> to vector<1x256xi32>
    %625 = arith.fptosi %621 : vector<1x256xf32> to vector<1x256xi32>
    %c1_i32_181 = arith.constant 1 : i32
    %626 = vector.broadcast %c1_i32_181 : i32 to vector<1x256xi32>
    %627 = arith.addi %624, %626 : vector<1x256xi32>
    %c1_i32_182 = arith.constant 1 : i32
    %628 = vector.broadcast %c1_i32_182 : i32 to vector<1x256xi32>
    %629 = arith.addi %625, %628 : vector<1x256xi32>
    %c0_i32_183 = arith.constant 0 : i32
    %630 = vector.broadcast %c0_i32_183 : i32 to vector<1x256xi32>
    %631 = arith.cmpi sge, %624, %630 : vector<1x256xi32>
    %c16_i32_184 = arith.constant 16 : i32
    %632 = vector.broadcast %c16_i32_184 : i32 to vector<1x256xi32>
    %633 = arith.cmpi slt, %624, %632 : vector<1x256xi32>
    %634 = arith.andi %631, %633 : vector<1x256xi1>
    %c0_i32_185 = arith.constant 0 : i32
    %635 = vector.broadcast %c0_i32_185 : i32 to vector<1x256xi32>
    %636 = arith.cmpi sge, %627, %635 : vector<1x256xi32>
    %c16_i32_186 = arith.constant 16 : i32
    %637 = vector.broadcast %c16_i32_186 : i32 to vector<1x256xi32>
    %638 = arith.cmpi slt, %627, %637 : vector<1x256xi32>
    %639 = arith.andi %636, %638 : vector<1x256xi1>
    %c0_i32_187 = arith.constant 0 : i32
    %640 = vector.broadcast %c0_i32_187 : i32 to vector<1x256xi32>
    %641 = arith.cmpi sge, %625, %640 : vector<1x256xi32>
    %c16_i32_188 = arith.constant 16 : i32
    %642 = vector.broadcast %c16_i32_188 : i32 to vector<1x256xi32>
    %643 = arith.cmpi slt, %625, %642 : vector<1x256xi32>
    %644 = arith.andi %641, %643 : vector<1x256xi1>
    %c0_i32_189 = arith.constant 0 : i32
    %645 = vector.broadcast %c0_i32_189 : i32 to vector<1x256xi32>
    %646 = arith.cmpi sge, %629, %645 : vector<1x256xi32>
    %c16_i32_190 = arith.constant 16 : i32
    %647 = vector.broadcast %c16_i32_190 : i32 to vector<1x256xi32>
    %648 = arith.cmpi slt, %629, %647 : vector<1x256xi32>
    %649 = arith.andi %646, %648 : vector<1x256xi1>
    %cst_191 = arith.constant 1.000000e+00 : f32
    %650 = vector.broadcast %cst_191 : f32 to vector<1x256xf32>
    %651 = arith.subf %650, %622 : vector<1x256xf32>
    %cst_192 = arith.constant 1.000000e+00 : f32
    %652 = vector.broadcast %cst_192 : f32 to vector<1x256xf32>
    %653 = arith.subf %652, %623 : vector<1x256xf32>
    %654 = arith.andi %634, %644 : vector<1x256xi1>
    %655 = arith.mulf %651, %653 : vector<1x256xf32>
    %656 = arith.mulf %655, %613 : vector<1x256xf32>
    %cst_193 = arith.constant 0.000000e+00 : f32
    %657 = vector.broadcast %cst_193 : f32 to vector<1x256xf32>
    %658 = arith.select %654, %656, %657 : vector<1x256xi1>, vector<1x256xf32>
    %659 = arith.andi %634, %649 : vector<1x256xi1>
    %660 = arith.mulf %651, %623 : vector<1x256xf32>
    %661 = arith.mulf %660, %613 : vector<1x256xf32>
    %cst_194 = arith.constant 0.000000e+00 : f32
    %662 = vector.broadcast %cst_194 : f32 to vector<1x256xf32>
    %663 = arith.select %659, %661, %662 : vector<1x256xi1>, vector<1x256xf32>
    %664 = arith.andi %639, %644 : vector<1x256xi1>
    %665 = arith.mulf %622, %653 : vector<1x256xf32>
    %666 = arith.mulf %665, %613 : vector<1x256xf32>
    %cst_195 = arith.constant 0.000000e+00 : f32
    %667 = vector.broadcast %cst_195 : f32 to vector<1x256xf32>
    %668 = arith.select %664, %666, %667 : vector<1x256xi1>, vector<1x256xf32>
    %669 = arith.andi %639, %649 : vector<1x256xi1>
    %670 = arith.mulf %622, %623 : vector<1x256xf32>
    %671 = arith.mulf %670, %613 : vector<1x256xf32>
    %cst_196 = arith.constant 0.000000e+00 : f32
    %672 = vector.broadcast %cst_196 : f32 to vector<1x256xf32>
    %673 = arith.select %669, %671, %672 : vector<1x256xi1>, vector<1x256xf32>
    %c16_i32_197 = arith.constant 16 : i32
    %674 = vector.broadcast %c16_i32_197 : i32 to vector<1x256xi32>
    %675 = arith.muli %624, %674 : vector<1x256xi32>
    %676 = arith.addi %675, %625 : vector<1x256xi32>
    %c0_i32_198 = arith.constant 0 : i32
    %677 = vector.broadcast %c0_i32_198 : i32 to vector<1x256xi32>
    %678 = arith.cmpi slt, %676, %677 : vector<1x256xi32>
    %c256_i32_199 = arith.constant 256 : i32
    %679 = vector.broadcast %c256_i32_199 : i32 to vector<1x256xi32>
    %680 = arith.addi %676, %679 : vector<1x256xi32>
    %681 = arith.select %678, %680, %676 : vector<1x256xi1>, vector<1x256xi32>
    %682 = vector.broadcast %24 : vector<256x1xi32> to vector<256x256xi32>
    %683 = vector.broadcast %681 : vector<1x256xi32> to vector<256x256xi32>
    %684 = arith.cmpi eq, %682, %683 : vector<256x256xi32>
    %cst_200 = arith.constant 1.000000e+00 : f32
    %cst_201 = arith.constant 0.000000e+00 : f32
    %685 = vector.broadcast %cst_200 : f32 to vector<256x256xf32>
    %686 = vector.broadcast %cst_201 : f32 to vector<256x256xf32>
    %687 = arith.select %684, %685, %686 : vector<256x256xi1>, vector<256x256xf32>
    %cst_202 = arith.constant dense<0.000000e+00> : vector<16x256xf32>
    %688 = tpu.matmul %20, %687, %cst_202 {dimension_numbers = #tpu.dot_dimension_numbers<[1], [0], [0], [1], [0, 0, 1, 1], [], []>} : vector<16x256xf32>, vector<256x256xf32>, vector<16x256xf32> -> vector<16x256xf32>
    %689 = vector.extract_strided_slice %688 {offsets = [0, 0], sizes = [4, 256], strides = [1, 1]} : vector<16x256xf32> to vector<4x256xf32>
    %690 = vector.broadcast %658 : vector<1x256xf32> to vector<4x256xf32>
    %691 = arith.mulf %689, %690 : vector<4x256xf32>
    %692 = vector.extract_strided_slice %688 {offsets = [4, 0], sizes = [4, 256], strides = [1, 1]} : vector<16x256xf32> to vector<4x256xf32>
    %693 = vector.broadcast %663 : vector<1x256xf32> to vector<4x256xf32>
    %694 = arith.mulf %692, %693 : vector<4x256xf32>
    %695 = arith.addf %691, %694 : vector<4x256xf32>
    %696 = vector.extract_strided_slice %688 {offsets = [8, 0], sizes = [4, 256], strides = [1, 1]} : vector<16x256xf32> to vector<4x256xf32>
    %697 = vector.broadcast %668 : vector<1x256xf32> to vector<4x256xf32>
    %698 = arith.mulf %696, %697 : vector<4x256xf32>
    %699 = arith.addf %695, %698 : vector<4x256xf32>
    %700 = vector.extract_strided_slice %688 {offsets = [12, 0], sizes = [4, 256], strides = [1, 1]} : vector<16x256xf32> to vector<4x256xf32>
    %701 = vector.broadcast %673 : vector<1x256xf32> to vector<4x256xf32>
    %702 = arith.mulf %700, %701 : vector<4x256xf32>
    %703 = arith.addf %699, %702 : vector<4x256xf32>
    %c6 = arith.constant 6 : index
    %c0_203 = arith.constant 0 : index
    %c0_204 = arith.constant 0 : index
    %704 = vector.load %arg7[%c6, %c0_203, %c0_204] : memref<9x4x4xf32, #tpu.memory_space<vmem>>, vector<1x4x4xf32>
    %705 = vector.shape_cast %704 : vector<1x4x4xf32> to vector<4x4xf32>
    %cst_205 = arith.constant dense<0.000000e+00> : vector<4x256xf32>
    %706 = tpu.matmul %705, %703, %cst_205 {dimension_numbers = #tpu.dot_dimension_numbers<[1], [0], [0], [1], [0, 0, 1, 1], [], []>} : vector<4x4xf32>, vector<4x256xf32>, vector<4x256xf32> -> vector<4x256xf32>
    %707 = arith.addf %610, %706 : vector<4x256xf32>
    %708 = vector.extract_strided_slice %7 {offsets = [14, 0], sizes = [1, 256], strides = [1, 1]} : vector<18x256xf32> to vector<1x256xf32>
    %709 = vector.extract_strided_slice %7 {offsets = [15, 0], sizes = [1, 256], strides = [1, 1]} : vector<18x256xf32> to vector<1x256xf32>
    %710 = vector.extract_strided_slice %15 {offsets = [7, 0], sizes = [1, 256], strides = [1, 1]} : vector<9x256xf32> to vector<1x256xf32>
    %cst_206 = arith.constant 1.000000e+00 : f32
    %711 = vector.broadcast %cst_206 : f32 to vector<1x256xf32>
    %712 = arith.addf %22, %711 : vector<1x256xf32>
    %713 = arith.addf %712, %708 : vector<1x256xf32>
    %cst_207 = arith.constant 0.000000e+00 : f32
    %714 = vector.broadcast %cst_207 : f32 to vector<1x256xf32>
    %715 = arith.addf %23, %714 : vector<1x256xf32>
    %716 = arith.addf %715, %709 : vector<1x256xf32>
    %717 = math.floor %713 : vector<1x256xf32>
    %718 = math.floor %716 : vector<1x256xf32>
    %719 = arith.subf %713, %717 : vector<1x256xf32>
    %720 = arith.subf %716, %718 : vector<1x256xf32>
    %721 = arith.fptosi %717 : vector<1x256xf32> to vector<1x256xi32>
    %722 = arith.fptosi %718 : vector<1x256xf32> to vector<1x256xi32>
    %c1_i32_208 = arith.constant 1 : i32
    %723 = vector.broadcast %c1_i32_208 : i32 to vector<1x256xi32>
    %724 = arith.addi %721, %723 : vector<1x256xi32>
    %c1_i32_209 = arith.constant 1 : i32
    %725 = vector.broadcast %c1_i32_209 : i32 to vector<1x256xi32>
    %726 = arith.addi %722, %725 : vector<1x256xi32>
    %c0_i32_210 = arith.constant 0 : i32
    %727 = vector.broadcast %c0_i32_210 : i32 to vector<1x256xi32>
    %728 = arith.cmpi sge, %721, %727 : vector<1x256xi32>
    %c16_i32_211 = arith.constant 16 : i32
    %729 = vector.broadcast %c16_i32_211 : i32 to vector<1x256xi32>
    %730 = arith.cmpi slt, %721, %729 : vector<1x256xi32>
    %731 = arith.andi %728, %730 : vector<1x256xi1>
    %c0_i32_212 = arith.constant 0 : i32
    %732 = vector.broadcast %c0_i32_212 : i32 to vector<1x256xi32>
    %733 = arith.cmpi sge, %724, %732 : vector<1x256xi32>
    %c16_i32_213 = arith.constant 16 : i32
    %734 = vector.broadcast %c16_i32_213 : i32 to vector<1x256xi32>
    %735 = arith.cmpi slt, %724, %734 : vector<1x256xi32>
    %736 = arith.andi %733, %735 : vector<1x256xi1>
    %c0_i32_214 = arith.constant 0 : i32
    %737 = vector.broadcast %c0_i32_214 : i32 to vector<1x256xi32>
    %738 = arith.cmpi sge, %722, %737 : vector<1x256xi32>
    %c16_i32_215 = arith.constant 16 : i32
    %739 = vector.broadcast %c16_i32_215 : i32 to vector<1x256xi32>
    %740 = arith.cmpi slt, %722, %739 : vector<1x256xi32>
    %741 = arith.andi %738, %740 : vector<1x256xi1>
    %c0_i32_216 = arith.constant 0 : i32
    %742 = vector.broadcast %c0_i32_216 : i32 to vector<1x256xi32>
    %743 = arith.cmpi sge, %726, %742 : vector<1x256xi32>
    %c16_i32_217 = arith.constant 16 : i32
    %744 = vector.broadcast %c16_i32_217 : i32 to vector<1x256xi32>
    %745 = arith.cmpi slt, %726, %744 : vector<1x256xi32>
    %746 = arith.andi %743, %745 : vector<1x256xi1>
    %cst_218 = arith.constant 1.000000e+00 : f32
    %747 = vector.broadcast %cst_218 : f32 to vector<1x256xf32>
    %748 = arith.subf %747, %719 : vector<1x256xf32>
    %cst_219 = arith.constant 1.000000e+00 : f32
    %749 = vector.broadcast %cst_219 : f32 to vector<1x256xf32>
    %750 = arith.subf %749, %720 : vector<1x256xf32>
    %751 = arith.andi %731, %741 : vector<1x256xi1>
    %752 = arith.mulf %748, %750 : vector<1x256xf32>
    %753 = arith.mulf %752, %710 : vector<1x256xf32>
    %cst_220 = arith.constant 0.000000e+00 : f32
    %754 = vector.broadcast %cst_220 : f32 to vector<1x256xf32>
    %755 = arith.select %751, %753, %754 : vector<1x256xi1>, vector<1x256xf32>
    %756 = arith.andi %731, %746 : vector<1x256xi1>
    %757 = arith.mulf %748, %720 : vector<1x256xf32>
    %758 = arith.mulf %757, %710 : vector<1x256xf32>
    %cst_221 = arith.constant 0.000000e+00 : f32
    %759 = vector.broadcast %cst_221 : f32 to vector<1x256xf32>
    %760 = arith.select %756, %758, %759 : vector<1x256xi1>, vector<1x256xf32>
    %761 = arith.andi %736, %741 : vector<1x256xi1>
    %762 = arith.mulf %719, %750 : vector<1x256xf32>
    %763 = arith.mulf %762, %710 : vector<1x256xf32>
    %cst_222 = arith.constant 0.000000e+00 : f32
    %764 = vector.broadcast %cst_222 : f32 to vector<1x256xf32>
    %765 = arith.select %761, %763, %764 : vector<1x256xi1>, vector<1x256xf32>
    %766 = arith.andi %736, %746 : vector<1x256xi1>
    %767 = arith.mulf %719, %720 : vector<1x256xf32>
    %768 = arith.mulf %767, %710 : vector<1x256xf32>
    %cst_223 = arith.constant 0.000000e+00 : f32
    %769 = vector.broadcast %cst_223 : f32 to vector<1x256xf32>
    %770 = arith.select %766, %768, %769 : vector<1x256xi1>, vector<1x256xf32>
    %c16_i32_224 = arith.constant 16 : i32
    %771 = vector.broadcast %c16_i32_224 : i32 to vector<1x256xi32>
    %772 = arith.muli %721, %771 : vector<1x256xi32>
    %773 = arith.addi %772, %722 : vector<1x256xi32>
    %c0_i32_225 = arith.constant 0 : i32
    %774 = vector.broadcast %c0_i32_225 : i32 to vector<1x256xi32>
    %775 = arith.cmpi slt, %773, %774 : vector<1x256xi32>
    %c256_i32_226 = arith.constant 256 : i32
    %776 = vector.broadcast %c256_i32_226 : i32 to vector<1x256xi32>
    %777 = arith.addi %773, %776 : vector<1x256xi32>
    %778 = arith.select %775, %777, %773 : vector<1x256xi1>, vector<1x256xi32>
    %779 = vector.broadcast %24 : vector<256x1xi32> to vector<256x256xi32>
    %780 = vector.broadcast %778 : vector<1x256xi32> to vector<256x256xi32>
    %781 = arith.cmpi eq, %779, %780 : vector<256x256xi32>
    %cst_227 = arith.constant 1.000000e+00 : f32
    %cst_228 = arith.constant 0.000000e+00 : f32
    %782 = vector.broadcast %cst_227 : f32 to vector<256x256xf32>
    %783 = vector.broadcast %cst_228 : f32 to vector<256x256xf32>
    %784 = arith.select %781, %782, %783 : vector<256x256xi1>, vector<256x256xf32>
    %cst_229 = arith.constant dense<0.000000e+00> : vector<16x256xf32>
    %785 = tpu.matmul %20, %784, %cst_229 {dimension_numbers = #tpu.dot_dimension_numbers<[1], [0], [0], [1], [0, 0, 1, 1], [], []>} : vector<16x256xf32>, vector<256x256xf32>, vector<16x256xf32> -> vector<16x256xf32>
    %786 = vector.extract_strided_slice %785 {offsets = [0, 0], sizes = [4, 256], strides = [1, 1]} : vector<16x256xf32> to vector<4x256xf32>
    %787 = vector.broadcast %755 : vector<1x256xf32> to vector<4x256xf32>
    %788 = arith.mulf %786, %787 : vector<4x256xf32>
    %789 = vector.extract_strided_slice %785 {offsets = [4, 0], sizes = [4, 256], strides = [1, 1]} : vector<16x256xf32> to vector<4x256xf32>
    %790 = vector.broadcast %760 : vector<1x256xf32> to vector<4x256xf32>
    %791 = arith.mulf %789, %790 : vector<4x256xf32>
    %792 = arith.addf %788, %791 : vector<4x256xf32>
    %793 = vector.extract_strided_slice %785 {offsets = [8, 0], sizes = [4, 256], strides = [1, 1]} : vector<16x256xf32> to vector<4x256xf32>
    %794 = vector.broadcast %765 : vector<1x256xf32> to vector<4x256xf32>
    %795 = arith.mulf %793, %794 : vector<4x256xf32>
    %796 = arith.addf %792, %795 : vector<4x256xf32>
    %797 = vector.extract_strided_slice %785 {offsets = [12, 0], sizes = [4, 256], strides = [1, 1]} : vector<16x256xf32> to vector<4x256xf32>
    %798 = vector.broadcast %770 : vector<1x256xf32> to vector<4x256xf32>
    %799 = arith.mulf %797, %798 : vector<4x256xf32>
    %800 = arith.addf %796, %799 : vector<4x256xf32>
    %c7 = arith.constant 7 : index
    %c0_230 = arith.constant 0 : index
    %c0_231 = arith.constant 0 : index
    %801 = vector.load %arg7[%c7, %c0_230, %c0_231] : memref<9x4x4xf32, #tpu.memory_space<vmem>>, vector<1x4x4xf32>
    %802 = vector.shape_cast %801 : vector<1x4x4xf32> to vector<4x4xf32>
    %cst_232 = arith.constant dense<0.000000e+00> : vector<4x256xf32>
    %803 = tpu.matmul %802, %800, %cst_232 {dimension_numbers = #tpu.dot_dimension_numbers<[1], [0], [0], [1], [0, 0, 1, 1], [], []>} : vector<4x4xf32>, vector<4x256xf32>, vector<4x256xf32> -> vector<4x256xf32>
    %804 = arith.addf %707, %803 : vector<4x256xf32>
    %805 = vector.extract_strided_slice %7 {offsets = [16, 0], sizes = [1, 256], strides = [1, 1]} : vector<18x256xf32> to vector<1x256xf32>
    %806 = vector.extract_strided_slice %7 {offsets = [17, 0], sizes = [1, 256], strides = [1, 1]} : vector<18x256xf32> to vector<1x256xf32>
    %807 = vector.extract_strided_slice %15 {offsets = [8, 0], sizes = [1, 256], strides = [1, 1]} : vector<9x256xf32> to vector<1x256xf32>
    %cst_233 = arith.constant 1.000000e+00 : f32
    %808 = vector.broadcast %cst_233 : f32 to vector<1x256xf32>
    %809 = arith.addf %22, %808 : vector<1x256xf32>
    %810 = arith.addf %809, %805 : vector<1x256xf32>
    %cst_234 = arith.constant 1.000000e+00 : f32
    %811 = vector.broadcast %cst_234 : f32 to vector<1x256xf32>
    %812 = arith.addf %23, %811 : vector<1x256xf32>
    %813 = arith.addf %812, %806 : vector<1x256xf32>
    %814 = math.floor %810 : vector<1x256xf32>
    %815 = math.floor %813 : vector<1x256xf32>
    %816 = arith.subf %810, %814 : vector<1x256xf32>
    %817 = arith.subf %813, %815 : vector<1x256xf32>
    %818 = arith.fptosi %814 : vector<1x256xf32> to vector<1x256xi32>
    %819 = arith.fptosi %815 : vector<1x256xf32> to vector<1x256xi32>
    %c1_i32_235 = arith.constant 1 : i32
    %820 = vector.broadcast %c1_i32_235 : i32 to vector<1x256xi32>
    %821 = arith.addi %818, %820 : vector<1x256xi32>
    %c1_i32_236 = arith.constant 1 : i32
    %822 = vector.broadcast %c1_i32_236 : i32 to vector<1x256xi32>
    %823 = arith.addi %819, %822 : vector<1x256xi32>
    %c0_i32_237 = arith.constant 0 : i32
    %824 = vector.broadcast %c0_i32_237 : i32 to vector<1x256xi32>
    %825 = arith.cmpi sge, %818, %824 : vector<1x256xi32>
    %c16_i32_238 = arith.constant 16 : i32
    %826 = vector.broadcast %c16_i32_238 : i32 to vector<1x256xi32>
    %827 = arith.cmpi slt, %818, %826 : vector<1x256xi32>
    %828 = arith.andi %825, %827 : vector<1x256xi1>
    %c0_i32_239 = arith.constant 0 : i32
    %829 = vector.broadcast %c0_i32_239 : i32 to vector<1x256xi32>
    %830 = arith.cmpi sge, %821, %829 : vector<1x256xi32>
    %c16_i32_240 = arith.constant 16 : i32
    %831 = vector.broadcast %c16_i32_240 : i32 to vector<1x256xi32>
    %832 = arith.cmpi slt, %821, %831 : vector<1x256xi32>
    %833 = arith.andi %830, %832 : vector<1x256xi1>
    %c0_i32_241 = arith.constant 0 : i32
    %834 = vector.broadcast %c0_i32_241 : i32 to vector<1x256xi32>
    %835 = arith.cmpi sge, %819, %834 : vector<1x256xi32>
    %c16_i32_242 = arith.constant 16 : i32
    %836 = vector.broadcast %c16_i32_242 : i32 to vector<1x256xi32>
    %837 = arith.cmpi slt, %819, %836 : vector<1x256xi32>
    %838 = arith.andi %835, %837 : vector<1x256xi1>
    %c0_i32_243 = arith.constant 0 : i32
    %839 = vector.broadcast %c0_i32_243 : i32 to vector<1x256xi32>
    %840 = arith.cmpi sge, %823, %839 : vector<1x256xi32>
    %c16_i32_244 = arith.constant 16 : i32
    %841 = vector.broadcast %c16_i32_244 : i32 to vector<1x256xi32>
    %842 = arith.cmpi slt, %823, %841 : vector<1x256xi32>
    %843 = arith.andi %840, %842 : vector<1x256xi1>
    %cst_245 = arith.constant 1.000000e+00 : f32
    %844 = vector.broadcast %cst_245 : f32 to vector<1x256xf32>
    %845 = arith.subf %844, %816 : vector<1x256xf32>
    %cst_246 = arith.constant 1.000000e+00 : f32
    %846 = vector.broadcast %cst_246 : f32 to vector<1x256xf32>
    %847 = arith.subf %846, %817 : vector<1x256xf32>
    %848 = arith.andi %828, %838 : vector<1x256xi1>
    %849 = arith.mulf %845, %847 : vector<1x256xf32>
    %850 = arith.mulf %849, %807 : vector<1x256xf32>
    %cst_247 = arith.constant 0.000000e+00 : f32
    %851 = vector.broadcast %cst_247 : f32 to vector<1x256xf32>
    %852 = arith.select %848, %850, %851 : vector<1x256xi1>, vector<1x256xf32>
    %853 = arith.andi %828, %843 : vector<1x256xi1>
    %854 = arith.mulf %845, %817 : vector<1x256xf32>
    %855 = arith.mulf %854, %807 : vector<1x256xf32>
    %cst_248 = arith.constant 0.000000e+00 : f32
    %856 = vector.broadcast %cst_248 : f32 to vector<1x256xf32>
    %857 = arith.select %853, %855, %856 : vector<1x256xi1>, vector<1x256xf32>
    %858 = arith.andi %833, %838 : vector<1x256xi1>
    %859 = arith.mulf %816, %847 : vector<1x256xf32>
    %860 = arith.mulf %859, %807 : vector<1x256xf32>
    %cst_249 = arith.constant 0.000000e+00 : f32
    %861 = vector.broadcast %cst_249 : f32 to vector<1x256xf32>
    %862 = arith.select %858, %860, %861 : vector<1x256xi1>, vector<1x256xf32>
    %863 = arith.andi %833, %843 : vector<1x256xi1>
    %864 = arith.mulf %816, %817 : vector<1x256xf32>
    %865 = arith.mulf %864, %807 : vector<1x256xf32>
    %cst_250 = arith.constant 0.000000e+00 : f32
    %866 = vector.broadcast %cst_250 : f32 to vector<1x256xf32>
    %867 = arith.select %863, %865, %866 : vector<1x256xi1>, vector<1x256xf32>
    %c16_i32_251 = arith.constant 16 : i32
    %868 = vector.broadcast %c16_i32_251 : i32 to vector<1x256xi32>
    %869 = arith.muli %818, %868 : vector<1x256xi32>
    %870 = arith.addi %869, %819 : vector<1x256xi32>
    %c0_i32_252 = arith.constant 0 : i32
    %871 = vector.broadcast %c0_i32_252 : i32 to vector<1x256xi32>
    %872 = arith.cmpi slt, %870, %871 : vector<1x256xi32>
    %c256_i32_253 = arith.constant 256 : i32
    %873 = vector.broadcast %c256_i32_253 : i32 to vector<1x256xi32>
    %874 = arith.addi %870, %873 : vector<1x256xi32>
    %875 = arith.select %872, %874, %870 : vector<1x256xi1>, vector<1x256xi32>
    %876 = vector.broadcast %24 : vector<256x1xi32> to vector<256x256xi32>
    %877 = vector.broadcast %875 : vector<1x256xi32> to vector<256x256xi32>
    %878 = arith.cmpi eq, %876, %877 : vector<256x256xi32>
    %cst_254 = arith.constant 1.000000e+00 : f32
    %cst_255 = arith.constant 0.000000e+00 : f32
    %879 = vector.broadcast %cst_254 : f32 to vector<256x256xf32>
    %880 = vector.broadcast %cst_255 : f32 to vector<256x256xf32>
    %881 = arith.select %878, %879, %880 : vector<256x256xi1>, vector<256x256xf32>
    %cst_256 = arith.constant dense<0.000000e+00> : vector<16x256xf32>
    %882 = tpu.matmul %20, %881, %cst_256 {dimension_numbers = #tpu.dot_dimension_numbers<[1], [0], [0], [1], [0, 0, 1, 1], [], []>} : vector<16x256xf32>, vector<256x256xf32>, vector<16x256xf32> -> vector<16x256xf32>
    %883 = vector.extract_strided_slice %882 {offsets = [0, 0], sizes = [4, 256], strides = [1, 1]} : vector<16x256xf32> to vector<4x256xf32>
    %884 = vector.broadcast %852 : vector<1x256xf32> to vector<4x256xf32>
    %885 = arith.mulf %883, %884 : vector<4x256xf32>
    %886 = vector.extract_strided_slice %882 {offsets = [4, 0], sizes = [4, 256], strides = [1, 1]} : vector<16x256xf32> to vector<4x256xf32>
    %887 = vector.broadcast %857 : vector<1x256xf32> to vector<4x256xf32>
    %888 = arith.mulf %886, %887 : vector<4x256xf32>
    %889 = arith.addf %885, %888 : vector<4x256xf32>
    %890 = vector.extract_strided_slice %882 {offsets = [8, 0], sizes = [4, 256], strides = [1, 1]} : vector<16x256xf32> to vector<4x256xf32>
    %891 = vector.broadcast %862 : vector<1x256xf32> to vector<4x256xf32>
    %892 = arith.mulf %890, %891 : vector<4x256xf32>
    %893 = arith.addf %889, %892 : vector<4x256xf32>
    %894 = vector.extract_strided_slice %882 {offsets = [12, 0], sizes = [4, 256], strides = [1, 1]} : vector<16x256xf32> to vector<4x256xf32>
    %895 = vector.broadcast %867 : vector<1x256xf32> to vector<4x256xf32>
    %896 = arith.mulf %894, %895 : vector<4x256xf32>
    %897 = arith.addf %893, %896 : vector<4x256xf32>
    %c8 = arith.constant 8 : index
    %c0_257 = arith.constant 0 : index
    %c0_258 = arith.constant 0 : index
    %898 = vector.load %arg7[%c8, %c0_257, %c0_258] : memref<9x4x4xf32, #tpu.memory_space<vmem>>, vector<1x4x4xf32>
    %899 = vector.shape_cast %898 : vector<1x4x4xf32> to vector<4x4xf32>
    %cst_259 = arith.constant dense<0.000000e+00> : vector<4x256xf32>
    %900 = tpu.matmul %899, %897, %cst_259 {dimension_numbers = #tpu.dot_dimension_numbers<[1], [0], [0], [1], [0, 0, 1, 1], [], []>} : vector<4x4xf32>, vector<4x256xf32>, vector<4x256xf32> -> vector<4x256xf32>
    %901 = arith.addf %804, %900 : vector<4x256xf32>
    %c0_260 = arith.constant 0 : index
    %c0_261 = arith.constant 0 : index
    %c0_262 = arith.constant 0 : index
    %902 = vector.load %arg9[%c0_260, %c0_261, %c0_262] : memref<1x4x256xf32, #tpu.memory_space<vmem>>, vector<1x4x256xf32>
    %903 = vector.shape_cast %902 : vector<1x4x256xf32> to vector<4x256xf32>
    %904 = vector.shape_cast %901 : vector<4x256xf32> to vector<1x4x256xf32>
    tpu.vector_store %arg9[%c0_260, %c0_261, %c0_262], %904 {strides = array<i32>} : memref<1x4x256xf32, #tpu.memory_space<vmem>>, vector<1x4x256xf32>,
    return
  }
  func.func @transform_0(%arg0: i32, %arg1: i32) -> (i32, i32, i32) {
    %c0_i32 = arith.constant 0 : i32
    %c0_i32_0 = arith.constant 0 : i32
    return %arg0, %c0_i32, %arg1 : i32, i32, i32
  }
  func.func @transform_1(%arg0: i32, %arg1: i32) -> (i32, i32, i32) {
    %c0_i32 = arith.constant 0 : i32
    %c0_i32_0 = arith.constant 0 : i32
    %c0_i32_1 = arith.constant 0 : i32
    return %arg0, %c0_i32, %c0_i32_0 : i32, i32, i32
  }
  func.func @transform_2(%arg0: i32, %arg1: i32) -> (i32, i32) {
    %c0_i32 = arith.constant 0 : i32
    %c0_i32_0 = arith.constant 0 : i32
    return %c0_i32, %arg1 : i32, i32
  }
  func.func @transform_3(%arg0: i32, %arg1: i32) -> (i32, i32) {
    %c0_i32 = arith.constant 0 : i32
    %c0_i32_0 = arith.constant 0 : i32
    %c0_i32_1 = arith.constant 0 : i32
    return %c0_i32, %c0_i32_0 : i32, i32
  }
  func.func @transform_4(%arg0: i32, %arg1: i32) -> (i32, i32) {
    %c0_i32 = arith.constant 0 : i32
    %c0_i32_0 = arith.constant 0 : i32
    %c0_i32_1 = arith.constant 0 : i32
    return %c0_i32, %c0_i32_0 : i32, i32
  }
  func.func @transform_5(%arg0: i32, %arg1: i32) -> (i32, i32, i32) {
    %c0_i32 = arith.constant 0 : i32
    %c0_i32_0 = arith.constant 0 : i32
    %c0_i32_1 = arith.constant 0 : i32
    %c0_i32_2 = arith.constant 0 : i32
    return %c0_i32, %c0_i32_0, %c0_i32_1 : i32, i32, i32
  }
  func.func @transform_6(%arg0: i32, %arg1: i32) -> (i32, i32) {
    %c0_i32 = arith.constant 0 : i32
    %c0_i32_0 = arith.constant 0 : i32
    %c0_i32_1 = arith.constant 0 : i32
    return %c0_i32, %c0_i32_0 : i32, i32
  }
  func.func @transform_7(%arg0: i32, %arg1: i32) -> (i32, i32, i32) {
    %c0_i32 = arith.constant 0 : i32
    %c0_i32_0 = arith.constant 0 : i32
    return %arg0, %c0_i32, %arg1 : i32, i32, i32
  }
  func.func @transform_8(%arg0: i32, %arg1: i32) -> (i32, i32, i32) {
    %c0_i32 = arith.constant 0 : i32
    %c0_i32_0 = arith.constant 0 : i32
    return %arg0, %c0_i32, %arg1 : i32, i32, i32
  }
}

</mosaic_0001>

<bundles_post_ra>
// kernel: tpu_custom_call.1
= control target key start
LH: loop header
LB: loop body
LE: loop exit
PB: predicated region body
PF: predicated region fallthrough
CT: control target
= control target key end

     0   :  { %14 = vsyncpa [#allocation3], 0  ;;  %s9097_s0 = inlined_call_operand.vmem [shape: f32[2,36,256], index: 0, kind: input, shape index: {}]   ;;  %s9098_s1 = inlined_call_operand.vmem [shape: f32[2,16,256], index: 1, kind: input, shape index: {}]   ;;  %s9099_s2 = inlined_call_operand.vmem [shape: f32[2,256], index: 2, kind: input, shape index: {}]   ;;  %s9100_s3 = inlined_call_operand.vmem [shape: f32[27,36], index: 3, kind: input, shape index: {}]   ;;  %s9101_s4 = inlined_call_operand.vmem [shape: f32[27,1], index: 4, kind: input, shape index: {}]   ;;  %s9102_s5 = inlined_call_operand.vmem [shape: f32[9,4,4], index: 5, kind: input, shape index: {}]   ;;  %s9103_s6 = inlined_call_operand.vmem [shape: f32[4,1], index: 6, kind: input, shape index: {}]   ;;  %s9104_s7 = inlined_call_operand.hbm [shape: f32[2,4,256], index: 7, kind: output, shape index: {0}]   ;;  %s9105_s8 = inlined_call_operand.vmem [shape: f32[2,18,256], index: 8, kind: output, shape index: {1}]  }
   0x1   :  { %16 = vsyncpa [#allocation3 + $0x1], 0  ;;  %s6011_s27 = smov 0   ;;  %s6013_s28 = smov 0  }
   0x2   :  { %s6015_s29 = smov 0   ;;  %s6017_s30 = smov 0  }
   0x3   :  { %s6019_s9 = smov 0   ;;  %s6021_s10 = smov 0  }
   0x4 LB: > { %s5102_s11 = sadd.s32 4294967295, %s5959_s10   ;;  %s5103_s12 = sadd.s32 4294967294, %s5959_s10   ;;  %s5959_s10 = sphi %s6021_s10, %s22_s10   ;;  %s5955_s9 = sphi %s6019_s9, %s9397_s9   ;;  %s5951_s30 = sphi %s6017_s30, %s9396_s30   ;;  %s5947_s29 = sphi %s6015_s29, %s9395_s29   ;;  %s5943_s28 = sphi %s6013_s28, %s9394_s28   ;;  %s5939_s27 = sphi %s6011_s27, %s9393_s27  }
   0x5   : > { %s34_s13 = sadd.s32 1, %s5955_s9  ;;  %s207_s14 = sadd.s32 1, %s5947_s29 }
   0x6   : > { %p36_p0 = scmp.ge.s32.totalorder %s34_s13, 2  ;;  %p217_p1 = scmp.ne.s32.totalorder %s5947_s29, %s5943_s28 }
   0x7   : > { %p218_p2 = scmp.eq.s32.totalorder %s5102_s11, 1  ;;  %p223_p3 = scmp.ne.s32.totalorder %s5943_s28, %s5939_s27 }
   0x8   : > { %s9399_s13 = smov (%p36_p0, %s34_s13), 0  ;;  %p224_p5 = scmp.eq.s32.totalorder %s5103_s12, 1 }
   0x9   : > { %p6051_p4 = por %p218_p2, %p217_p1  ;;  %s202_s16 = ssub.s32 %s5955_s9, %s9399_s13 }
   0xa   : > { %p5107_p6 = scmp.ge.s32.totalorder %s5959_s10, 1  ;;  %p205_p7 = scmp.eq.s32.totalorder %s202_s16, 0 }
   0xb   : > { %p6058_p8 = por %p224_p5, %p223_p3  ;;  %p312_p9 = scmp.lt.s32.totalorder %s5959_s10, 3 }
   0xc   : > { %s6064_s18 = scalar_select %p205_p7, %s5947_s29, %s207_s14  }
   0xd   : > { %p313_p10 = pnand %p5107_p6, %p312_p9 }
   0xf   : > { %316 = sbr.rel (%p313_p10) target bundleno = 1844 (0x734), region = 48 }
  0x14   : > { %p370_p11 = scmp.lt.s32.totalorder %s5951_s30, 1  ;;  %v9110_v0 = vmov 0.0   ;;  %v415_v1 = vld [vmem:[%s9101_s4] sm:$0xff]  ;;  %v9112_v2 = vmov 0   ;;  %v416_v3 = vld [vmem:[%s9101_s4 + $0x8] sm:$0xff]  ;;  %v417_v4 = vld [vmem:[%s9101_s4 + $0x10] sm:$0xff]  ;;  %v583_v22 = vlaneseq }
  0x15   : > { %523 = vmatprep.mubr.f32.mxu0 %v9110_v0  ;;  %5855 = vset.pattern.permute.xlu0 %v9112_v2  ;;  %v418_v5 = vld [vmem:[%s9101_s4 + $0x18] sm:$0x7]  ;;  %vm452_vm0 = vcmask 1043456   ;;  %v616_v10 = vld [vmem:[%s9103_s6] sm:$0xf]  ;;  %vm439_vm1 = vcmask 293888  }
  0x16   : > { %s6072_s21 = scalar_select %p370_p11, %s5951_s30, 1  ;;  %5856 = vset.pattern.permute.xlu1 %v9112_v2  ;;  %421 = vperm.xlu0 %5855, %v415_v1   ;;  %v401_v17 = vld [vmem:[%s9100_s3] sm:$0xff]  ;;  %v402_v18 = vld [vmem:[%s9100_s3 + $0x8] sm:$0xff]  ;;  %v403_v19 = vld [vmem:[%s9100_s3 + $0x10] sm:$0xff]  ;;  %v5963_v23 = vmov 1983009808  }
  0x17   : > { %426 = vperm.xlu1 %5856, %v416_v3   ;;  %v404_v20 = vld [vmem:[%s9100_s3 + $0x18] sm:$0x7]  ;;  %v628_v24 = vunpack.c.l.s4 %v5963_v23  ;;  %v6121_v25 = vshrl.u32 %v583_v22, 7  ;;  %v582_v30 = vld [vmem:[%s9099_s2] sm:$0xf]  ;;  %s5965_s25 = smov [#allocation2]  }
  0x18   : > { %s5764_s24 = smul.u32 80, %s6072_s21  ;;  %v6135_v34 = vadd.f32 -1.0, %v582_v30  ;;  %v6138_v39 = vadd.f32 1.0, %v582_v30  ;;  %s5887_s26 = sshll.u32 %s5965_s25, 4  ;;  %s5888_s26 = int_to_ptr.vmem [resolvable:$false] %s5887_s26 }
  0x19   : > { %v629_v26 = vunpack.c.0.s8 %v628_v24  ;;  %v6432_v2 = vadd.s32 240, %v6121_v25 }
  0x1a   : > { %s377_s19 = scalar_lea.vmem %s9097_s0, %s5764_s24  ;;  %431 = vperm.xlu0 %5855, %v417_v4   ;;  %s5765_s24 = smul.u32 48, %s6072_s21 }
  0x1b   : > { %v414_v6 = vld [vmem:[%s377_s19 + $0x48] sm:$0xf]  ;;  %v413_v7 = vld [vmem:[%s377_s19 + $0x40] sm:$0xf]  ;;  %v412_v8 = vld [vmem:[%s377_s19 + $0x38] sm:$0xff]  ;;  %436 = vperm.xlu1 %5856, %v418_v5   ;;  %v6133_v33 = vsub.s32 %v629_v26, %v6121_v25 }
  0x1c   : > { %5113 = vmatprep.subr.msk.mxu0 %vm452_vm0, %v414_v6  ;;  %v411_v9 = vld [vmem:[%s377_s19 + $0x30] sm:$0xff]  ;;  %v410_v11 = vld [vmem:[%s377_s19 + $0x28] sm:$0xff]  ;;  %v409_v12 = vld [vmem:[%s377_s19 + $0x20] sm:$0xff]  ;;  %s6126_s11 = scalar_lea.vmem %s9105_s8, %s5765_s24 }
  0x1d   : > { %5114 = vmatpush1.msk.msra.mxu0 %vm452_vm0, %v413_v7  ;;  %v408_v13 = vld [vmem:[%s377_s19 + $0x18] sm:$0xff]  ;;  %v407_v14 = vld [vmem:[%s377_s19 + $0x10] sm:$0xff]  ;;  %v406_v15 = vld [vmem:[%s377_s19 + $0x8] sm:$0xff]  ;;  %9192 = vst [vmem:[#allocation5_spill] sm:$0xff] %v6133_v33 }
  0x1e   : > { %483 = vmatprep.subr.mxu0 %v412_v8  ;;  %619 = vperm.xlu0 %5855, %v616_v10   ;;  %v405_v16 = vld [vmem:[%s377_s19] sm:$0xff]  ;;  %s5762_s19 = sshll.u32 %s6072_s21, 5 }
  0x1f   : > { %484 = vmatpush1.msra.mxu0 %v411_v9  ;;  %s6114_s23 = scalar_lea.vmem %s9098_s1, %s5762_s19 }
  0x20   : > { %485 = vmatprep.subr.mxu0 %v410_v11  ;;  %v6117_v21 = vld [vmem:[%s6114_s23 + $0x8] sm:$0xff] }
  0x21   : > { %486 = vmatpush1.msra.mxu0 %v409_v12  ;;  %906 = vmatprep.mubr.f32.mxu1 %v6117_v21 }
  0x22   : > { %487 = vmatprep.subr.mxu0 %v408_v13 }
  0x23   : > { %488 = vmatpush1.msra.mxu0 %v407_v14 }
  0x24   : > { %489 = vmatprep.subr.mxu0 %v406_v15 }
  0x25   : > { %490 = vmatpush1.msra.mxu0 %v405_v16 }
  0x26   : > { %5115 = vmatmul.mubr.msk.f32.vlgmr.msra.gmra.mxu0 %vm439_vm1, %v401_v17 }
  0x27   : > { %529 = vmatprep.mubr.f32.mxu0 %v9110_v0 }
  0x2a   : > { %5116 = vmatmul.mubr.msk.f32.gmra.mxu0 %vm439_vm1, %v402_v18 }
  0x2b   : > { %535 = vmatprep.mubr.f32.mxu0 %v9110_v0 }
  0x2e   : > { %5117 = vmatmul.mubr.msk.f32.gmra.mxu0 %vm439_vm1, %v403_v19 }
  0x2f   : > { %541 = vmatprep.mubr.f32.mxu0 %v9110_v0 }
  0x32   : > { %5118 = vmatmul.mubr.msk.f32.gmra.mxu0 %vm439_vm1, %v404_v20 }
  0x33   : > { %1096 = vmatprep.mubr.f32.mxu0 %v9110_v0  ;;  %v6423_v0 = vadd.s32 248, %v6121_v25 }
  0x91   : > { %v422_v27 = vpop.permute.xlu0 %421 }
  0x92   : > { %v427_v36 = vpop.permute.xlu1 %426 }
  0x95   : > { %v432_v46 = vpop.permute.xlu0 %431 }
  0xe6   : > { %v525_v28 = vpop.f32.mrf.mxu0 }
  0xe7   : > { %v526_v29 = vadd.f32 %v525_v28, %v422_v27 }
  0xe8   : > { %v527_v31 = vpop.f32.mrf.mxu0 }
  0xe9   : > { %572 = vst [vmem:[%s6126_s11] sm:$0xff] %v526_v29  ;;  %v528_v32 = vadd.f32 %v527_v31, %v422_v27 }
  0xea   : > { %v531_v35 = vpop.f32.mrf.mxu0 }
  0xeb   : > { %573 = vst [vmem:[%s6126_s11 + $0x8] sm:$0xff] %v528_v32  ;;  %v626_v37 = vcombine.low %v526_v29, %v528_v32  ;;  %v1581_v38 = vcombine.high %v526_v29, %v528_v32  ;;  %v532_v40 = vadd.f32 %v531_v35, %v427_v36 }
  0xec   : > { %v533_v41 = vpop.f32.mrf.mxu0 }
  0xed   : > { %v633_v42 = vrot.slane %v626_v37, %v6133_v33  ;;  %v1588_v43 = vrot.slane %v1581_v38, %v6133_v33  ;;  %v534_v44 = vadd.f32 %v533_v41, %v427_v36  ;;  %574 = vst [vmem:[%s6126_s11 + $0x10] sm:$0xff] %v532_v40  ;;  %v6238_v38 = vsub.s32 0, %v6121_v25 }
  0xee   : > { %v537_v45 = vpop.f32.mrf.mxu0  ;;  %v6243_v41 = vsub.s32 2, %v6121_v25 }
  0xef   : > { %v635_v47 = vadd.f32 %v633_v42, %v6135_v34  ;;  %v1105_v48 = vcombine.high %v633_v42, %v633_v42  ;;  %v6145_v49 = vadd.f32 %v1588_v43, %v6135_v34  ;;  %v6148_v50 = vadd.f32 %v6138_v39, %v1588_v43  ;;  %575 = vst [vmem:[%s6126_s11 + $0x18] sm:$0xff] %v534_v44 }
  0xf0   : > { %v2070_v51 = vcombine.high %v1588_v43, %v1588_v43  ;;  %v6151_v52 = vadd.f32 %v537_v45, %v432_v46  ;;  %v2547_v53 = vcombine.low %v532_v40, %v534_v44  ;;  %v3491_v54 = vcombine.high %v532_v40, %v534_v44  ;;  %v539_v18 = vpop.f32.mrf.mxu0 }
  0xf1   : > { %v636_v55 = vfloor.f32 %v635_v47  ;;  %v6154_v56 = vadd.f32 %v1105_v48, %v6135_v34  ;;  %v6156_v57 = vadd.f32 %v1105_v48, %v582_v30  ;;  %v1593_v58 = vfloor.f32 %v6145_v49 }
  0xf2   : > { %v1594_v59 = vfloor.f32 %v6148_v50  ;;  %v6160_v60 = vadd.f32 %v2070_v51, %v582_v30  ;;  %v6163_v61 = vadd.f32 %v2070_v51, %v6135_v34  ;;  %576 = vst [vmem:[%s6126_s11 + $0x20] sm:$0x3] %v6151_v52  ;;  %v2554_v10 = vrot.slane %v2547_v53, %v6133_v33 }
  0xf3   : > { %9193 = vst [vmem:[#allocation6_spill] sm:$0xff] %v6154_v56  ;;  %9194 = vst [vmem:[#allocation7_spill] sm:$0xff] %v6156_v57  ;;  %v6167_v62 = vsub.f32 %v635_v47, %v636_v55  ;;  %v9115_v63 = vfloor.f32 %v6154_v56  ;;  %v9114_v1 = vfloor.f32 %v6156_v57  ;;  %v6174_v3 = vsub.f32 %v6145_v49, %v1593_v58 }
  0xf4   : > { %9195 = vst [vmem:[#allocation8_spill] sm:$0xff] %v6160_v60  ;;  %9196 = vst [vmem:[#allocation9_spill] sm:$0xff] %v6163_v61  ;;  %v6179_v4 = vsub.f32 %v6148_v50, %v1594_v59  ;;  %v9109_v7 = vfloor.f32 %v6160_v60  ;;  %v5766_v8 = vtrunc.f32 %v636_v55  ;;  %v6200_v12 = vadd.f32 %v2554_v10, %v582_v30 }
  0xf5   : > { %9197 = vst [vmem:[#allocation10_spill] sm:$0xff] %v6167_v62  ;;  %v6184_v5 = vsub.f32 %v6154_v56, %v9115_v63  ;;  %v6189_v6 = vsub.f32 %v6156_v57, %v9114_v1  ;;  %v3016_v16 = vcombine.high %v2554_v10, %v2554_v10  ;;  %v548_v22 = vsub.f32 0.0, %v6151_v52 }
  0xf6   : > { %v6195_v9 = vsub.f32 %v6160_v60, %v9109_v7  ;;  %v6198_v11 = vcvt.f32.s32 %v5766_v8  ;;  %v9119_v13 = vfloor.f32 %v6200_v12  ;;  %v3498_v24 = vrot.slane %v3491_v54, %v6133_v33 }
  0xf7   : > { %v6210_v19 = vadd.f32 %v3016_v16, %v582_v30  ;;  %v6214_v23 = vadd.f32 %v3016_v16, %v6138_v39  ;;  %v540_v27 = vadd.f32 %v539_v18, %v432_v46  ;;  %v552_v32 = vmul.f32 1.442695, %v548_v22 }
  0xf8   : > { %9198 = vst [vmem:[#allocation11_spill] sm:$0xff] %v6195_v9  ;;  %v691_v14 = vmul.u32 16, %v6198_v11  ;;  %v5121_v15 = vrot.slane %v6198_v11, 9  ;;  %v6208_v17 = vsub.f32 %v6200_v12, %v9119_v13  ;;  %v6220_v29 = vadd.f32 %v3498_v24, %v6138_v39 }
  0xf9   : > { %9200 = vst [vmem:[#allocation13_spill] sm:$0xff] %v6210_v19  ;;  %9201 = vst [vmem:[#allocation14_spill] sm:$0xff] %v6214_v23  ;;  %v9108_v26 = vfloor.f32 %v6210_v19  ;;  %v9107_v28 = vfloor.f32 %v6214_v23  ;;  %v6234_v36 = vadd.f32 %v3498_v24, %v6135_v34  ;;  %v6240_v40 = vcombine.high %v3498_v24, %v3498_v24 }
  0xfa   : > { %9199 = vst [vmem:[#allocation12_spill] sm:$0xff] %v6208_v17  ;;  %v694_v20 = vadd.s32 %v5121_v15, %v691_v14  ;;  %577 = vst [vmem:[%s6126_s11 + $0x28] sm:$0x3] %v540_v27  ;;  %v9118_v37 = vfloor.f32 %v6220_v29  ;;  %v549_v34 = vsub.f32 0.0, %v540_v27  ;;  %5857 = vpow2.f32 %v552_v32  ;;  %s355_s11 = sand.u32 1, %s5943_s28  }
  0xfb   : > { %v6225_v30 = vsub.f32 %v6210_v19, %v9108_v26  ;;  %v6231_v35 = vsub.f32 %v6214_v23, %v9107_v28  ;;  %9202 = vst [vmem:[#allocation15_spill] sm:$0xff] %v6240_v40  ;;  %v9117_v42 = vfloor.f32 %v6234_v36  ;;  %v6253_v45 = vadd.f32 %v6240_v40, %v6138_v39  ;;  %s5108_s12 = sshll.u32 %s355_s11, 3  ;;  %s4933_s22 = scalar_lea.sflag [#allocation3], %s355_s11 }
  0xfc   : > { %v696_v31 = vadd.s32 256, %v694_v20  ;;  %vm695_vm2 = vcmp.lt.s32.totalorder %v694_v20, 0  ;;  %v6249_v43 = vsub.f32 %v6220_v29, %v9118_v37  ;;  %v554_v53 = vmul.f32 1.442695, %v549_v34  ;;  %s357_s14 = scalar_lea.vmem [#allocation2], %s5108_s12 }
  0xfd   : > { %9203 = vst [vmem:[#allocation16_spill] sm:$0xff] %v6253_v45  ;;  %v6258_v46 = vsub.f32 %v6234_v36, %v9117_v42  ;;  %v9106_v51 = vfloor.f32 %v6253_v45  ;;  %v4458_v55 = vcombine.low %v6151_v52, %v540_v27  ;;  %v6277_v15 = vadd.s32 120, %v6121_v25  ;;  %s4958_s21 = sshll.u32 %s357_s14, 4  ;;  %s4959_s21 = int_to_ptr.vmem [resolvable:$true] %s4958_s21 }
  0xfe   : > { %v697_v44 = vsel %vm695_vm2, %v696_v31, %v694_v20  ;;  %5859 = vpow2.f32 %v554_v53  ;;  %v6283_v18 = vadd.s32 112, %v6121_v25  ;;  %v6291_v52 = vadd.s32 104, %v6121_v25  ;;  %s5883_s24 = scalar_lea.vmem %s4959_s21, 128  ;;  %p5890_p1 = scmp.lt.s32.totalorder %s4959_s21, %s5888_s26 }
  0xff   : > { %v701_v47 = vrot.slane %v697_v44, %v6238_v38  ;;  %v705_v48 = vrot.slane %v697_v44, %v6243_v41  ;;  %v6266_v54 = vsub.f32 %v6253_v45, %v9106_v51  ;;  %v4465_v14 = vrot.slane %v4458_v55, %v6133_v33  ;;  %p5884_p12 = scmp.ne.s32.totalorder %s4959_s21, %s5883_s24 }
 0x100   : > { %v9151_v22 = vmov 1.0   ;;  %v6303_v27 = vadd.s32 96, %v6121_v25  ;;  %v6312_v31 = vadd.s32 88, %v6121_v25  ;;  %v6321_v34 = vadd.s32 80, %v6121_v25 }
 0x101   : > { %9204 = vst [vmem:[#allocation17_spill] sm:$0xff] %v6266_v54  ;;  %v6270_v8 = vrot.slane %v701_v47, %v6238_v38  ;;  %v6273_v10 = vrot.slane %v705_v48, %v6238_v38  ;;  %v6280_v16 = vadd.f32 %v4465_v14, %v6138_v39  ;;  %v6330_v48 = vadd.s32 72, %v6121_v25  ;;  %p5885_p13 = pnand %p5884_p12, %p6051_p4 }
 0x102   : > { %v6339_v53 = vadd.s32 64, %v6121_v25  ;;  %v6348_v55 = vadd.s32 56, %v6121_v25  ;;  %v6357_v14 = vadd.s32 48, %v6121_v25  ;;  %v6395_v51 = vadd.s32 16, %v6121_v25 }
 0x103   : > { %v9116_v20 = vfloor.f32 %v6280_v16  ;;  %vm745_vm3 = vcmp.eq.s32.totalorder %v6277_v15, %v6273_v10  ;;  %vm744_vm4 = vcmp.eq.s32.totalorder %v6277_v15, %v6270_v8  ;;  %vm743_vm5 = vcmp.eq.s32.totalorder %v6283_v18, %v6273_v10  ;;  %p5886_p0 = pneg %p5885_p13 }
 0x104   : > { %5122 = vmatprep.subr.msk.mxu1 %vm745_vm3, %v9151_v22  ;;  %vm742_vm6 = vcmp.eq.s32.totalorder %v6283_v18, %v6270_v8  ;;  %vm741_vm7 = vcmp.eq.s32.totalorder %v6291_v52, %v6273_v10  ;;  %vm740_vm8 = vcmp.eq.s32.totalorder %v6291_v52, %v6270_v8  ;;  %vm739_vm9 = vcmp.eq.s32.totalorder %v6303_v27, %v6273_v10 }
 0x105   : > { %v6297_v39 = vsub.f32 %v6280_v16, %v9116_v20  ;;  %5123 = vmatpush1.msk.msra.mxu1 %vm744_vm4, %v9151_v22  ;;  %vm738_vm10 = vcmp.eq.s32.totalorder %v6303_v27, %v6270_v8  ;;  %vm737_vm11 = vcmp.eq.s32.totalorder %v6312_v31, %v6273_v10  ;;  %vm736_vm12 = vcmp.eq.s32.totalorder %v6312_v31, %v6270_v8 }
 0x106   : > { %5124 = vmatprep.subr.msk.mxu1 %vm743_vm5, %v9151_v22  ;;  %vm735_vm13 = vcmp.eq.s32.totalorder %v6321_v34, %v6273_v10  ;;  %vm734_vm14 = vcmp.eq.s32.totalorder %v6321_v34, %v6270_v8  ;;  %vm733_vm15 = vcmp.eq.s32.totalorder %v6330_v48, %v6273_v10  ;;  %vm732_vm1 = vcmp.eq.s32.totalorder %v6330_v48, %v6270_v8 }
 0x107   : > { %v5858_v24 = vpop.eup %5857  ;;  %9205 = vst [vmem:[#allocation18_spill] sm:$0xff] %v6297_v39  ;;  %5125 = vmatpush1.msk.msra.mxu1 %vm742_vm6, %v9151_v22  ;;  %vm731_vm2 = vcmp.eq.s32.totalorder %v6339_v53, %v6273_v10  ;;  %vm730_vm3 = vcmp.eq.s32.totalorder %v6339_v53, %v6270_v8  ;;  %vm729_vm4 = vcmp.eq.s32.totalorder %v6348_v55, %v6273_v10  ;;  %v6408_v7 = vadd.s32 8, %v6121_v25 }
 0x108   : > { %v560_v32 = vadd.f32 1.0, %v5858_v24  ;;  %5126 = vmatprep.subr.msk.mxu1 %vm741_vm7, %v9151_v22  ;;  %v6366_v24 = vadd.s32 40, %v6121_v25  ;;  %vm728_vm5 = vcmp.eq.s32.totalorder %v6348_v55, %v6270_v8  ;;  %vm727_vm6 = vcmp.eq.s32.totalorder %v6357_v14, %v6273_v10 }
 0x109   : > { %5127 = vmatpush1.msk.msra.mxu1 %vm740_vm8, %v9151_v22  ;;  %vm726_vm7 = vcmp.eq.s32.totalorder %v6357_v14, %v6270_v8  ;;  %v6441_v1 = vadd.s32 232, %v6121_v25  ;;  %v5772_v63 = vtrunc.f32 %v1593_v58  ;;  %v5774_v20 = vtrunc.f32 %v1594_v59 }
 0x10a   : > { %5128 = vmatprep.subr.msk.mxu1 %vm739_vm9, %v9151_v22  ;;  %5861 = vrcp.f32 %v560_v32  ;;  %v6375_v32 = vadd.s32 32, %v6121_v25  ;;  %vm725_vm8 = vcmp.eq.s32.totalorder %v6366_v24, %v6273_v10  ;;  %vm724_vm9 = vcmp.eq.s32.totalorder %v6366_v24, %v6270_v8 }
 0x10b   : > { %v5860_v44 = vpop.eup %5859  ;;  %5129 = vmatpush1.msk.msra.mxu1 %vm738_vm10, %v9151_v22  ;;  %v6454_v26 = vadd.s32 224, %v6121_v25  ;;  %v6463_v49 = vadd.s32 216, %v6121_v25  ;;  %v6465_v50 = vcvt.f32.s32 %v5772_v63  ;;  %v6467_v58 = vcvt.f32.s32 %v5774_v20 }
 0x10c   : > { %v561_v47 = vadd.f32 1.0, %v5860_v44  ;;  %5130 = vmatprep.subr.msk.mxu1 %vm737_vm11, %v9151_v22  ;;  %v6384_v44 = vadd.s32 24, %v6121_v25  ;;  %vm723_vm10 = vcmp.eq.s32.totalorder %v6375_v32, %v6273_v10  ;;  %vm722_vm11 = vcmp.eq.s32.totalorder %v6375_v32, %v6270_v8 }
 0x10d   : > { %5131 = vmatpush1.msk.msra.mxu1 %vm736_vm12, %v9151_v22  ;;  %9206 = vst [vmem:[#allocation19_spill] sm:$0xff] %v6465_v50  ;;  %9207 = vst [vmem:[#allocation20_spill] sm:$0xff] %v6467_v58  ;;  %v6476_v59 = vadd.s32 208, %v6121_v25  ;;  %v6485_v63 = vadd.s32 200, %v6121_v25  ;;  %v1656_v20 = vmul.u32 16, %v6465_v50  ;;  %v5262_v42 = vrot.slane %v6467_v58, 9 }
 0x10e   : > { %5863 = vrcp.f32 %v561_v47  ;;  %5132 = vmatprep.subr.msk.mxu1 %vm735_vm13, %v9151_v22  ;;  %vm721_vm12 = vcmp.eq.s32.totalorder %v6384_v44, %v6273_v10  ;;  %vm720_vm13 = vcmp.eq.s32.totalorder %v6384_v44, %v6270_v8  ;;  %v6496_v37 = vadd.s32 192, %v6121_v25 }
 0x10f   : > { %5133 = vmatpush1.msk.msra.mxu1 %vm734_vm14, %v9151_v22  ;;  %vm719_vm14 = vcmp.eq.s32.totalorder %v6395_v51, %v6273_v10  ;;  %v6505_v13 = vadd.s32 184, %v6121_v25  ;;  %v1659_v54 = vadd.s32 %v5262_v42, %v1656_v20  ;;  %v6514_v45 = vadd.s32 176, %v6121_v25 }
 0x110   : > { %5134 = vmatprep.subr.msk.mxu1 %vm733_vm15, %v9151_v22  ;;  %vm718_vm15 = vcmp.eq.s32.totalorder %v6395_v51, %v6270_v8  ;;  %v6523_v42 = vadd.s32 168, %v6121_v25  ;;  %v6532_v40 = vadd.s32 160, %v6121_v25  ;;  %v6541_v23 = vadd.s32 152, %v6121_v25 }
 0x111   : > { %5135 = vmatpush1.msk.msra.mxu1 %vm732_vm1, %v9151_v22  ;;  %vm717_vm1 = vcmp.eq.s32.totalorder %v6408_v7, %v6273_v10  ;;  %v1661_v20 = vadd.s32 256, %v1659_v54  ;;  %v6550_v9 = vadd.s32 144, %v6121_v25  ;;  %v6572_v39 = vadd.s32 128, %v6121_v25 }
 0x112   : > { %5136 = vmatprep.subr.msk.mxu1 %vm731_vm2, %v9151_v22  ;;  %vm716_vm2 = vcmp.eq.s32.totalorder %v6408_v7, %v6270_v8  ;;  %9208 = vst [vmem:[#allocation21_spill] sm:$0xff] %v6532_v40  ;;  %9209 = vst [vmem:[#allocation22_spill] sm:$0xff] %v6541_v23  ;;  %v1613_v56 = vsub.f32 1.0, %v6174_v3 }
 0x113   : > { %5137 = vmatpush1.msk.msra.mxu1 %vm730_vm3, %v9151_v22  ;;  %vm715_vm3 = vcmp.eq.s32.totalorder %v6121_v25, %v6273_v10  ;;  %9210 = vst [vmem:[#allocation23_spill] sm:$0xff] %v6550_v9  ;;  %9212 = vst [vmem:[#allocation25_spill] sm:$0xff] %v6572_v39 }
 0x114   : > { %5138 = vmatprep.subr.msk.mxu1 %vm729_vm4, %v9151_v22  ;;  %vm714_vm4 = vcmp.eq.s32.totalorder %v6121_v25, %v6270_v8 }
 0x115   : > { %5139 = vmatpush1.msk.msra.mxu1 %vm728_vm5, %v9151_v22  ;;  %vm777_vm5 = vcmp.eq.s32.totalorder %v6423_v0, %v6273_v10 }
 0x116   : > { %5140 = vmatprep.subr.msk.mxu1 %vm727_vm6, %v9151_v22  ;;  %vm776_vm6 = vcmp.eq.s32.totalorder %v6423_v0, %v6270_v8 }
 0x117   : > { %5141 = vmatpush1.msk.msra.mxu1 %vm726_vm7, %v9151_v22  ;;  %v6389_v47 = vpop.eup %5861  ;;  %vm775_vm7 = vcmp.eq.s32.totalorder %v6432_v2, %v6273_v10 }
 0x118   : > { %5142 = vmatprep.subr.msk.mxu1 %vm725_vm8, %v9151_v22  ;;  %vm774_vm8 = vcmp.eq.s32.totalorder %v6432_v2, %v6270_v8 }
 0x119   : > { %5143 = vmatpush1.msk.msra.mxu1 %vm724_vm9, %v9151_v22  ;;  %vm773_vm9 = vcmp.eq.s32.totalorder %v6441_v1, %v6273_v10 }
 0x11a   : > { %5144 = vmatprep.subr.msk.mxu1 %vm723_vm10, %v9151_v22  ;;  %vm772_vm10 = vcmp.eq.s32.totalorder %v6441_v1, %v6270_v8 }
 0x11b   : > { %v6397_v28 = vpop.eup %5863  ;;  %5145 = vmatpush1.msk.msra.mxu1 %vm722_vm11, %v9151_v22  ;;  %vm771_vm11 = vcmp.eq.s32.totalorder %v6454_v26, %v6273_v10 }
 0x11c   : > { %5146 = vmatprep.subr.msk.mxu1 %vm721_vm12, %v9151_v22  ;;  %vm770_vm12 = vcmp.eq.s32.totalorder %v6454_v26, %v6270_v8 }
 0x11d   : > { %5147 = vmatpush1.msk.msra.mxu1 %vm720_vm13, %v9151_v22  ;;  %vm769_vm13 = vcmp.eq.s32.totalorder %v6463_v49, %v6273_v10 }
 0x11e   : > { %5148 = vmatprep.subr.msk.mxu1 %vm719_vm14, %v9151_v22  ;;  %vm768_vm14 = vcmp.eq.s32.totalorder %v6463_v49, %v6270_v8 }
 0x11f   : > { %5149 = vmatpush1.msk.msra.mxu1 %vm718_vm15, %v9151_v22  ;;  %vm767_vm15 = vcmp.eq.s32.totalorder %v6476_v59, %v6273_v10 }
 0x120   : > { %5150 = vmatprep.subr.msk.mxu1 %vm717_vm1, %v9151_v22  ;;  %vm766_vm1 = vcmp.eq.s32.totalorder %v6476_v59, %v6270_v8 }
 0x121   : > { %5151 = vmatpush1.msk.msra.mxu1 %vm716_vm2, %v9151_v22  ;;  %vm765_vm2 = vcmp.eq.s32.totalorder %v6485_v63, %v6273_v10 }
 0x122   : > { %5152 = vmatprep.subr.msk.mxu1 %vm715_vm3, %v9151_v22  ;;  %vm764_vm3 = vcmp.eq.s32.totalorder %v6485_v63, %v6270_v8 }
 0x123   : > { %5153 = vmatpush1.msk.msra.mxu1 %vm714_vm4, %v9151_v22  ;;  %vm763_vm4 = vcmp.eq.s32.totalorder %v6496_v37, %v6273_v10 }
 0x124   : > { %5154 = vmatprep.subr.msk.mxu1 %vm777_vm5, %v9151_v22  ;;  %vm762_vm5 = vcmp.eq.s32.totalorder %v6496_v37, %v6270_v8 }
 0x125   : > { %5155 = vmatpush2.msk.msra.mxu1 %vm776_vm6, %v9151_v22  ;;  %vm761_vm6 = vcmp.eq.s32.totalorder %v6505_v13, %v6273_v10 }
 0x126   : > { %5156 = vmatprep.subr.msk.mxu1 %vm775_vm7, %v9151_v22  ;;  %vm760_vm7 = vcmp.eq.s32.totalorder %v6505_v13, %v6270_v8 }
 0x127   : > { %5157 = vmatpush2.msk.msra.mxu1 %vm774_vm8, %v9151_v22  ;;  %vm1660_vm8 = vcmp.lt.s32.totalorder %v1659_v54, 0 }
 0x128   : > { %5158 = vmatprep.subr.msk.mxu1 %vm773_vm9, %v9151_v22  ;;  %vm759_vm9 = vcmp.eq.s32.totalorder %v6514_v45, %v6273_v10  ;;  %v1662_v19 = vsel %vm1660_vm8, %v1661_v20, %v1659_v54  ;;  %v6560_v20 = vadd.s32 136, %v6121_v25 }
 0x129   : > { %5159 = vmatpush2.msk.msra.mxu1 %vm772_vm10, %v9151_v22  ;;  %vm758_vm10 = vcmp.eq.s32.totalorder %v6514_v45, %v6270_v8  ;;  %v1670_v54 = vrot.slane %v1662_v19, %v6243_v41  ;;  %v1666_v60 = vrot.slane %v1662_v19, %v6238_v38 }
 0x12a   : > { %5160 = vmatprep.subr.msk.mxu1 %vm771_vm11, %v9151_v22  ;;  %vm757_vm11 = vcmp.eq.s32.totalorder %v6523_v42, %v6273_v10  ;;  %9211 = vst [vmem:[#allocation24_spill] sm:$0xff] %v6560_v20 }
 0x12b   : > { %5161 = vmatpush2.msk.msra.mxu1 %vm770_vm12, %v9151_v22  ;;  %vm756_vm12 = vcmp.eq.s32.totalorder %v6523_v42, %v6270_v8  ;;  %v6578_v19 = vrot.slane %v1670_v54, %v6238_v38  ;;  %v6584_v61 = vrot.slane %v1666_v60, %v6238_v38  ;;  %v6593_v54 = vld [vmem:[%s6114_s23] sm:$0xff]  ;;  %v6599_v60 = vld [vmem:[%s6114_s23 + $0x18] sm:$0xff] }
 0x12c   : > { %5162 = vmatprep.subr.msk.mxu1 %vm769_vm13, %v9151_v22  ;;  %vm755_vm13 = vcmp.eq.s32.totalorder %v6532_v40, %v6273_v10 }
 0x12d   : > { %5163 = vmatpush2.msk.msra.mxu1 %vm768_vm14, %v9151_v22  ;;  %vm754_vm14 = vcmp.eq.s32.totalorder %v6532_v40, %v6270_v8  ;;  %vm1710_vm8 = vcmp.eq.s32.totalorder %v6277_v15, %v6578_v19 }
 0x12e   : > { %5164 = vmatprep.subr.msk.mxu1 %vm767_vm15, %v9151_v22  ;;  %vm753_vm15 = vcmp.eq.s32.totalorder %v6541_v23, %v6273_v10 }
 0x12f   : > { %5165 = vmatpush2.msk.msra.mxu1 %vm766_vm1, %v9151_v22  ;;  %vm752_vm1 = vcmp.eq.s32.totalorder %v6541_v23, %v6270_v8 }
 0x130   : > { %5166 = vmatprep.subr.msk.mxu1 %vm765_vm2, %v9151_v22  ;;  %vm751_vm2 = vcmp.eq.s32.totalorder %v6550_v9, %v6273_v10 }
 0x131   : > { %5167 = vmatpush2.msk.msra.mxu1 %vm764_vm3, %v9151_v22  ;;  %vm750_vm3 = vcmp.eq.s32.totalorder %v6550_v9, %v6270_v8 }
 0x132   : > { %5168 = vmatprep.subr.msk.mxu1 %vm763_vm4, %v9151_v22  ;;  %vm749_vm4 = vcmp.eq.s32.totalorder %v6560_v20, %v6273_v10 }
 0x133   : > { %5169 = vmatpush2.msk.msra.mxu1 %vm762_vm5, %v9151_v22  ;;  %vm748_vm5 = vcmp.eq.s32.totalorder %v6560_v20, %v6270_v8 }
 0x134   : > { %5170 = vmatprep.subr.msk.mxu1 %vm761_vm6, %v9151_v22  ;;  %vm747_vm6 = vcmp.eq.s32.totalorder %v6572_v39, %v6273_v10  ;;  %v9213_v10 = vfloor.f32 %v6200_v12 }
 0x135   : > { %5171 = vmatpush2.msk.msra.mxu1 %vm760_vm7, %v9151_v22  ;;  %vm746_vm7 = vcmp.eq.s32.totalorder %v6572_v39, %v6270_v8  ;;  %v6613_v8 = vld [vmem:[%s6114_s23 + $0x10] sm:$0xff] }
 0x136   : > { %5172 = vmatprep.subr.msk.mxu1 %vm759_vm9, %v9151_v22  ;;  %vm1709_vm9 = vcmp.eq.s32.totalorder %v6277_v15, %v6584_v61  ;;  %v5780_v17 = vtrunc.f32 %v9213_v10 }
 0x137   : > { %5173 = vmatpush2.msk.msra.mxu1 %vm758_vm10, %v9151_v22  ;;  %vm1708_vm10 = vcmp.eq.s32.totalorder %v6283_v18, %v6578_v19 }
 0x138   : > { %5174 = vmatprep.subr.msk.mxu1 %vm757_vm11, %v9151_v22  ;;  %vm1707_vm11 = vcmp.eq.s32.totalorder %v6283_v18, %v6584_v61  ;;  %v6721_v12 = vcvt.f32.s32 %v5780_v17 }
 0x139   : > { %5175 = vmatpush2.msk.msra.mxu1 %vm756_vm12, %v9151_v22  ;;  %vm1706_vm12 = vcmp.eq.s32.totalorder %v6291_v52, %v6578_v19 }
 0x13a   : > { %5176 = vmatprep.subr.msk.mxu1 %vm755_vm13, %v9151_v22  ;;  %vm1705_vm13 = vcmp.eq.s32.totalorder %v6291_v52, %v6584_v61  ;;  %9214 = vst [vmem:[#allocation26_spill] sm:$0xff] %v6721_v12  ;;  %v2602_v10 = vmul.u32 16, %v6721_v12  ;;  %v5404_v50 = vrot.slane %v6721_v12, 9  ;;  %v1642_v12 = vrot.slane %v6179_v4, 7 }
 0x13b   : > { %5177 = vmatpush2.msk.msra.mxu1 %vm754_vm14, %v9151_v22  ;;  %vm1704_vm14 = vcmp.eq.s32.totalorder %v6303_v27, %v6578_v19 }
 0x13c   : > { %5178 = vmatprep.subr.msk.mxu1 %vm753_vm15, %v9151_v22  ;;  %vm1703_vm15 = vcmp.eq.s32.totalorder %v6303_v27, %v6584_v61  ;;  %v2605_v17 = vadd.s32 %v5404_v50, %v2602_v10  ;;  %v1614_v10 = vsub.f32 1.0, %v6179_v4  ;;  %v1643_v62 = vrot.slane %v1642_v12, 2 }
 0x13d   : > { %5179 = vmatpush2.msk.msra.mxu1 %vm752_vm1, %v9151_v22  ;;  %vm1702_vm1 = vcmp.eq.s32.totalorder %v6312_v31, %v6578_v19 }
 0x13e   : > { %5180 = vmatprep.subr.msk.mxu1 %vm751_vm2, %v9151_v22  ;;  %vm1701_vm2 = vcmp.eq.s32.totalorder %v6312_v31, %v6584_v61  ;;  %v2607_v50 = vadd.s32 256, %v2605_v17  ;;  %v1621_v58 = vrot.slane %v1614_v10, 7 }
 0x13f   : > { %5181 = vmatpush2.msk.msra.mxu1 %vm750_vm3, %v9151_v22  ;;  %vm1700_vm3 = vcmp.eq.s32.totalorder %v6321_v34, %v6578_v19 }
 0x140   : > { %5182 = vmatprep.subr.msk.mxu1 %vm749_vm4, %v9151_v22  ;;  %vm1699_vm4 = vcmp.eq.s32.totalorder %v6321_v34, %v6584_v61  ;;  %v1622_v4 = vrot.slane %v1621_v58, 2 }
 0x141   : > { %5183 = vmatpush2.msk.msra.mxu1 %vm748_vm5, %v9151_v22  ;;  %vm1698_vm5 = vcmp.eq.s32.totalorder %v6330_v48, %v6578_v19 }
 0x142   : > { %5184 = vmatprep.subr.msk.mxu1 %vm747_vm6, %v9151_v22  ;;  %vm1697_vm6 = vcmp.eq.s32.totalorder %v6330_v48, %v6584_v61  ;;  %v6785_v12 = vmul.f32 %v1622_v4, %v1613_v56  ;;  %v6788_v10 = vmul.f32 %v1622_v4, %v6174_v3  ;;  %v9217_v4 = vfloor.f32 %v6220_v29 }
 0x143   : > { %5185 = vmatpush2.msk.msra.mxu1 %vm746_vm7, %v9151_v22  ;;  %vm1696_vm7 = vcmp.eq.s32.totalorder %v6339_v53, %v6578_v19 }
 0x144   : > { %907 = vmatmul.mubr.f32.vlgmr.msra.gmra.mxu1 %v6593_v54  ;;  %5263 = vmatprep.subr.msk.mxu1 %vm1710_vm8, %v9151_v22  ;;  %vm1695_vm8 = vcmp.eq.s32.totalorder %v6339_v53, %v6584_v61 }
 0x145   : > { %5264 = vmatpush1.msk.msra.mxu1 %vm1709_vm9, %v9151_v22  ;;  %912 = vmatprep.mubr.f32.mxu1 %v6599_v60  ;;  %vm1694_vm9 = vcmp.eq.s32.totalorder %v6348_v55, %v6578_v19 }
 0x146   : > { %5265 = vmatprep.subr.msk.mxu1 %vm1708_vm10, %v9151_v22  ;;  %vm1693_vm10 = vcmp.eq.s32.totalorder %v6348_v55, %v6584_v61 }
 0x147   : > { %5266 = vmatpush1.msk.msra.mxu1 %vm1707_vm11, %v9151_v22  ;;  %vm1692_vm11 = vcmp.eq.s32.totalorder %v6357_v14, %v6578_v19 }
 0x148   : > { %913 = vmatmul.mubr.f32.gmra.mxu1 %v6613_v8  ;;  %5267 = vmatprep.subr.msk.mxu1 %vm1706_vm12, %v9151_v22  ;;  %vm1691_vm12 = vcmp.eq.s32.totalorder %v6357_v14, %v6584_v61 }
 0x149   : > { %5268 = vmatpush1.msk.msra.mxu1 %vm1705_vm13, %v9151_v22  ;;  %1871 = vmatprep.mubr.f32.mxu1 %v6117_v21  ;;  %vm1690_vm13 = vcmp.eq.s32.totalorder %v6366_v24, %v6578_v19 }
 0x14a   : > { %5269 = vmatprep.subr.msk.mxu1 %vm1704_vm14, %v9151_v22  ;;  %vm1689_vm14 = vcmp.eq.s32.totalorder %v6366_v24, %v6584_v61 }
 0x14b   : > { %5270 = vmatpush1.msk.msra.mxu1 %vm1703_vm15, %v9151_v22  ;;  %vm1688_vm15 = vcmp.eq.s32.totalorder %v6375_v32, %v6578_v19 }
 0x14c   : > { %5271 = vmatprep.subr.msk.mxu1 %vm1702_vm1, %v9151_v22  ;;  %vm1687_vm1 = vcmp.eq.s32.totalorder %v6375_v32, %v6584_v61 }
 0x14d   : > { %5272 = vmatpush1.msk.msra.mxu1 %vm1701_vm2, %v9151_v22  ;;  %vm1686_vm2 = vcmp.eq.s32.totalorder %v6384_v44, %v6578_v19 }
 0x14e   : > { %5273 = vmatprep.subr.msk.mxu1 %vm1700_vm3, %v9151_v22  ;;  %vm1685_vm3 = vcmp.eq.s32.totalorder %v6384_v44, %v6584_v61 }
 0x14f   : > { %5274 = vmatpush1.msk.msra.mxu1 %vm1699_vm4, %v9151_v22  ;;  %vm1684_vm4 = vcmp.eq.s32.totalorder %v6395_v51, %v6578_v19 }
 0x150   : > { %5275 = vmatprep.subr.msk.mxu1 %vm1698_vm5, %v9151_v22  ;;  %vm1683_vm5 = vcmp.eq.s32.totalorder %v6395_v51, %v6584_v61 }
 0x151   : > { %5276 = vmatpush1.msk.msra.mxu1 %vm1697_vm6, %v9151_v22  ;;  %vm1682_vm6 = vcmp.eq.s32.totalorder %v6408_v7, %v6578_v19 }
 0x152   : > { %5277 = vmatprep.subr.msk.mxu1 %vm1696_vm7, %v9151_v22  ;;  %vm1681_vm7 = vcmp.eq.s32.totalorder %v6408_v7, %v6584_v61 }
 0x153   : > { %5278 = vmatpush1.msk.msra.mxu1 %vm1695_vm8, %v9151_v22  ;;  %vm1680_vm8 = vcmp.eq.s32.totalorder %v6121_v25, %v6578_v19 }
 0x154   : > { %5279 = vmatprep.subr.msk.mxu1 %vm1694_vm9, %v9151_v22  ;;  %vm1679_vm9 = vcmp.eq.s32.totalorder %v6121_v25, %v6584_v61 }
 0x155   : > { %5280 = vmatpush1.msk.msra.mxu1 %vm1693_vm10, %v9151_v22  ;;  %vm1742_vm10 = vcmp.eq.s32.totalorder %v6423_v0, %v6578_v19 }
 0x156   : > { %5281 = vmatprep.subr.msk.mxu1 %vm1692_vm11, %v9151_v22  ;;  %vm1741_vm11 = vcmp.eq.s32.totalorder %v6423_v0, %v6584_v61 }
 0x157   : > { %5282 = vmatpush1.msk.msra.mxu1 %vm1691_vm12, %v9151_v22  ;;  %vm1740_vm12 = vcmp.eq.s32.totalorder %v6432_v2, %v6578_v19 }
 0x158   : > { %5283 = vmatprep.subr.msk.mxu1 %vm1690_vm13, %v9151_v22  ;;  %vm1739_vm13 = vcmp.eq.s32.totalorder %v6432_v2, %v6584_v61 }
 0x159   : > { %5284 = vmatpush1.msk.msra.mxu1 %vm1689_vm14, %v9151_v22  ;;  %vm1738_vm14 = vcmp.eq.s32.totalorder %v6441_v1, %v6578_v19 }
 0x15a   : > { %5285 = vmatprep.subr.msk.mxu1 %vm1688_vm15, %v9151_v22  ;;  %vm1737_vm15 = vcmp.eq.s32.totalorder %v6441_v1, %v6584_v61 }
 0x15b   : > { %5286 = vmatpush1.msk.msra.mxu1 %vm1687_vm1, %v9151_v22  ;;  %vm1736_vm1 = vcmp.eq.s32.totalorder %v6454_v26, %v6578_v19 }
 0x15c   : > { %5287 = vmatprep.subr.msk.mxu1 %vm1686_vm2, %v9151_v22  ;;  %vm1735_vm2 = vcmp.eq.s32.totalorder %v6454_v26, %v6584_v61 }
 0x15d   : > { %5288 = vmatpush1.msk.msra.mxu1 %vm1685_vm3, %v9151_v22  ;;  %vm1734_vm3 = vcmp.eq.s32.totalorder %v6463_v49, %v6578_v19 }
 0x15e   : > { %5289 = vmatprep.subr.msk.mxu1 %vm1684_vm4, %v9151_v22  ;;  %vm1733_vm4 = vcmp.eq.s32.totalorder %v6463_v49, %v6584_v61 }
 0x15f   : > { %5290 = vmatpush1.msk.msra.mxu1 %vm1683_vm5, %v9151_v22  ;;  %vm1732_vm5 = vcmp.eq.s32.totalorder %v6476_v59, %v6578_v19 }
 0x160   : > { %5291 = vmatprep.subr.msk.mxu1 %vm1682_vm6, %v9151_v22  ;;  %vm1731_vm6 = vcmp.eq.s32.totalorder %v6476_v59, %v6584_v61 }
 0x161   : > { %5292 = vmatpush1.msk.msra.mxu1 %vm1681_vm7, %v9151_v22  ;;  %vm1730_vm7 = vcmp.eq.s32.totalorder %v6485_v63, %v6578_v19 }
 0x162   : > { %5293 = vmatprep.subr.msk.mxu1 %vm1680_vm8, %v9151_v22  ;;  %vm1729_vm8 = vcmp.eq.s32.totalorder %v6485_v63, %v6584_v61 }
 0x163   : > { %5294 = vmatpush1.msk.msra.mxu1 %vm1679_vm9, %v9151_v22  ;;  %vm1728_vm9 = vcmp.eq.s32.totalorder %v6496_v37, %v6578_v19 }
 0x164   : > { %5295 = vmatprep.subr.msk.mxu1 %vm1742_vm10, %v9151_v22  ;;  %vm1727_vm10 = vcmp.eq.s32.totalorder %v6496_v37, %v6584_v61 }
 0x165   : > { %5296 = vmatpush2.msk.msra.mxu1 %vm1741_vm11, %v9151_v22  ;;  %vm2606_vm11 = vcmp.lt.s32.totalorder %v2605_v17, 0 }
 0x166   : > { %5297 = vmatprep.subr.msk.mxu1 %vm1740_vm12, %v9151_v22  ;;  %vm1726_vm12 = vcmp.eq.s32.totalorder %v6505_v13, %v6578_v19  ;;  %v2608_v57 = vsel %vm2606_vm11, %v2607_v50, %v2605_v17  ;;  %v6779_v17 = vmul.f32 %v1643_v62, %v1613_v56  ;;  %vm1712_vm11 = vcmp.eq.s32.totalorder %v6572_v39, %v6578_v19 }
 0x167   : > { %5298 = vmatpush2.msk.msra.mxu1 %vm1739_vm13, %v9151_v22  ;;  %vm1725_vm13 = vcmp.eq.s32.totalorder %v6505_v13, %v6584_v61  ;;  %v2616_v50 = vrot.slane %v2608_v57, %v6243_v41  ;;  %v2612_v58 = vrot.slane %v2608_v57, %v6238_v38 }
 0x168   : > { %5299 = vmatprep.subr.msk.mxu1 %vm1738_vm14, %v9151_v22  ;;  %vm1724_vm14 = vcmp.eq.s32.totalorder %v6514_v45, %v6578_v19  ;;  %9215 = vst [vmem:[#allocation27_spill] sm:$0xff] %v6779_v17  ;;  %v6795_v17 = vmul.f32 %v1643_v62, %v6174_v3  ;;  %v1130_v62 = vsub.f32 1.0, %v6184_v5 }
 0x169   : > { %5300 = vmatpush2.msk.msra.mxu1 %vm1737_vm15, %v9151_v22  ;;  %vm1723_vm15 = vcmp.eq.s32.totalorder %v6514_v45, %v6584_v61  ;;  %v6804_v56 = vrot.slane %v2616_v50, %v6238_v38  ;;  %v6810_v57 = vrot.slane %v2612_v58, %v6238_v38  ;;  %v5786_v50 = vtrunc.f32 %v9217_v4 }
 0x16a   : > { %5301 = vmatprep.subr.msk.mxu1 %vm1736_vm1, %v9151_v22  ;;  %vm1722_vm1 = vcmp.eq.s32.totalorder %v6523_v42, %v6578_v19  ;;  %9216 = vst [vmem:[#allocation28_spill] sm:$0xff] %v6795_v17  ;;  %v9218_v58 = vfloor.f32 %v6234_v36 }
 0x16b   : > { %5302 = vmatpush2.msk.msra.mxu1 %vm1735_vm2, %v9151_v22  ;;  %vm1721_vm2 = vcmp.eq.s32.totalorder %v6523_v42, %v6584_v61 }
 0x16c   : > { %5303 = vmatprep.subr.msk.mxu1 %vm1734_vm3, %v9151_v22  ;;  %vm1720_vm3 = vcmp.eq.s32.totalorder %v6532_v40, %v6578_v19 }
 0x16d   : > { %5304 = vmatpush2.msk.msra.mxu1 %vm1733_vm4, %v9151_v22  ;;  %vm1719_vm4 = vcmp.eq.s32.totalorder %v6532_v40, %v6584_v61 }
 0x16e   : > { %5305 = vmatprep.subr.msk.mxu1 %vm1732_vm5, %v9151_v22  ;;  %vm1718_vm5 = vcmp.eq.s32.totalorder %v6541_v23, %v6578_v19 }
 0x16f   : > { %5306 = vmatpush2.msk.msra.mxu1 %vm1731_vm6, %v9151_v22  ;;  %vm1717_vm6 = vcmp.eq.s32.totalorder %v6541_v23, %v6584_v61 }
 0x170   : > { %5307 = vmatprep.subr.msk.mxu1 %vm1730_vm7, %v9151_v22  ;;  %vm1716_vm7 = vcmp.eq.s32.totalorder %v6550_v9, %v6578_v19 }
 0x171   : > { %5308 = vmatpush2.msk.msra.mxu1 %vm1729_vm8, %v9151_v22  ;;  %vm1715_vm8 = vcmp.eq.s32.totalorder %v6550_v9, %v6584_v61 }
 0x172   : > { %5309 = vmatprep.subr.msk.mxu1 %vm1728_vm9, %v9151_v22  ;;  %vm1714_vm9 = vcmp.eq.s32.totalorder %v6560_v20, %v6578_v19  ;;  %v1153_v19 = vrot.slane %v6189_v6, 7 }
 0x173   : > { %5310 = vmatpush2.msk.msra.mxu1 %vm1727_vm10, %v9151_v22  ;;  %vm1713_vm10 = vcmp.eq.s32.totalorder %v6560_v20, %v6584_v61 }
 0x174   : > { %5311 = vmatprep.subr.msk.mxu1 %vm1726_vm12, %v9151_v22  ;;  %vm2656_vm12 = vcmp.eq.s32.totalorder %v6277_v15, %v6804_v56 }
 0x175   : > { %5312 = vmatpush2.msk.msra.mxu1 %vm1725_vm13, %v9151_v22  ;;  %vm1711_vm13 = vcmp.eq.s32.totalorder %v6572_v39, %v6584_v61 }
 0x176   : > { %5313 = vmatprep.subr.msk.mxu1 %vm1724_vm14, %v9151_v22  ;;  %vm2655_vm14 = vcmp.eq.s32.totalorder %v6277_v15, %v6810_v57 }
 0x177   : > { %5314 = vmatpush2.msk.msra.mxu1 %vm1723_vm15, %v9151_v22  ;;  %vm2654_vm15 = vcmp.eq.s32.totalorder %v6283_v18, %v6804_v56 }
 0x178   : > { %5315 = vmatprep.subr.msk.mxu1 %vm1722_vm1, %v9151_v22  ;;  %vm2653_vm1 = vcmp.eq.s32.totalorder %v6283_v18, %v6810_v57 }
 0x179   : > { %5316 = vmatpush2.msk.msra.mxu1 %vm1721_vm2, %v9151_v22  ;;  %vm2652_vm2 = vcmp.eq.s32.totalorder %v6291_v52, %v6804_v56 }
 0x17a   : > { %5317 = vmatprep.subr.msk.mxu1 %vm1720_vm3, %v9151_v22  ;;  %vm2651_vm3 = vcmp.eq.s32.totalorder %v6291_v52, %v6810_v57 }
 0x17b   : > { %5318 = vmatpush2.msk.msra.mxu1 %vm1719_vm4, %v9151_v22  ;;  %vm2650_vm4 = vcmp.eq.s32.totalorder %v6303_v27, %v6804_v56 }
 0x17c   : > { %5319 = vmatprep.subr.msk.mxu1 %vm1718_vm5, %v9151_v22  ;;  %vm2649_vm5 = vcmp.eq.s32.totalorder %v6303_v27, %v6810_v57 }
 0x17d   : > { %5320 = vmatpush2.msk.msra.mxu1 %vm1717_vm6, %v9151_v22  ;;  %vm2648_vm6 = vcmp.eq.s32.totalorder %v6312_v31, %v6804_v56 }
 0x17e   : > { %5321 = vmatprep.subr.msk.mxu1 %vm1716_vm7, %v9151_v22  ;;  %vm2647_vm7 = vcmp.eq.s32.totalorder %v6312_v31, %v6810_v57 }
 0x17f   : > { %5322 = vmatpush2.msk.msra.mxu1 %vm1715_vm8, %v9151_v22  ;;  %vm2646_vm8 = vcmp.eq.s32.totalorder %v6321_v34, %v6804_v56 }
 0x180   : > { %5323 = vmatprep.subr.msk.mxu1 %vm1714_vm9, %v9151_v22  ;;  %vm2645_vm9 = vcmp.eq.s32.totalorder %v6321_v34, %v6810_v57 }
 0x181   : > { %5324 = vmatpush2.msk.msra.mxu1 %vm1713_vm10, %v9151_v22  ;;  %vm2644_vm10 = vcmp.eq.s32.totalorder %v6330_v48, %v6804_v56 }
 0x182   : > { %5325 = vmatprep.subr.msk.mxu1 %vm1712_vm11, %v9151_v22  ;;  %vm2643_vm11 = vcmp.eq.s32.totalorder %v6330_v48, %v6810_v57 }
 0x183   : > { %5326 = vmatpush2.msk.msra.mxu1 %vm1711_vm13, %v9151_v22  ;;  %vm2641_vm13 = vcmp.eq.s32.totalorder %v6339_v53, %v6810_v57 }
 0x184   : > { %1872 = vmatmul.mubr.f32.vlgmr.msra.gmra.mxu1 %v6593_v54  ;;  %5405 = vmatprep.subr.msk.mxu1 %vm2656_vm12, %v9151_v22  ;;  %vm2642_vm12 = vcmp.eq.s32.totalorder %v6339_v53, %v6804_v56 }
 0x185   : > { %5406 = vmatpush1.msk.msra.mxu1 %vm2655_vm14, %v9151_v22  ;;  %1877 = vmatprep.mubr.f32.mxu1 %v6599_v60  ;;  %vm2640_vm14 = vcmp.eq.s32.totalorder %v6348_v55, %v6804_v56 }
 0x186   : > { %5407 = vmatprep.subr.msk.mxu1 %vm2654_vm15, %v9151_v22  ;;  %vm2639_vm15 = vcmp.eq.s32.totalorder %v6348_v55, %v6810_v57 }
 0x187   : > { %5408 = vmatpush1.msk.msra.mxu1 %vm2653_vm1, %v9151_v22  ;;  %vm2638_vm1 = vcmp.eq.s32.totalorder %v6357_v14, %v6804_v56 }
 0x188   : > { %1878 = vmatmul.mubr.f32.gmra.mxu1 %v6613_v8  ;;  %5409 = vmatprep.subr.msk.mxu1 %vm2652_vm2, %v9151_v22  ;;  %vm2637_vm2 = vcmp.eq.s32.totalorder %v6357_v14, %v6810_v57 }
 0x189   : > { %5410 = vmatpush1.msk.msra.mxu1 %vm2651_vm3, %v9151_v22  ;;  %2817 = vmatprep.mubr.f32.mxu1 %v6117_v21  ;;  %vm2636_vm3 = vcmp.eq.s32.totalorder %v6366_v24, %v6804_v56  ;;  %v1131_v21 = vsub.f32 1.0, %v6189_v6 }
 0x18a   : > { %5411 = vmatprep.subr.msk.mxu1 %vm2650_vm4, %v9151_v22  ;;  %vm2635_vm4 = vcmp.eq.s32.totalorder %v6366_v24, %v6810_v57 }
 0x18b   : > { %5412 = vmatpush1.msk.msra.mxu1 %vm2649_vm5, %v9151_v22  ;;  %vm2634_vm5 = vcmp.eq.s32.totalorder %v6375_v32, %v6804_v56  ;;  %v1138_v61 = vrot.slane %v1131_v21, 7  ;;  %v5788_v21 = vtrunc.f32 %v9218_v58 }
 0x18c   : > { %5413 = vmatprep.subr.msk.mxu1 %vm2648_vm6, %v9151_v22  ;;  %vm2633_vm6 = vcmp.eq.s32.totalorder %v6375_v32, %v6810_v57 }
 0x18d   : > { %5414 = vmatpush1.msk.msra.mxu1 %vm2647_vm7, %v9151_v22  ;;  %vm2632_vm7 = vcmp.eq.s32.totalorder %v6384_v44, %v6804_v56  ;;  %v1139_v3 = vrot.slane %v1138_v61, 2  ;;  %v1154_v61 = vrot.slane %v1153_v19, 2  ;;  %v6959_v19 = vcvt.f32.s32 %v5788_v21 }
 0x18e   : > { %5415 = vmatprep.subr.msk.mxu1 %vm2646_vm8, %v9151_v22  ;;  %vm2631_vm8 = vcmp.eq.s32.totalorder %v6384_v44, %v6810_v57 }
 0x18f   : > { %5416 = vmatpush1.msk.msra.mxu1 %vm2645_vm9, %v9151_v22  ;;  %vm2630_vm9 = vcmp.eq.s32.totalorder %v6395_v51, %v6804_v56  ;;  %v6938_v17 = vmul.f32 %v1139_v3, %v1130_v62  ;;  %v6941_v6 = vmul.f32 %v1139_v3, %v6184_v5  ;;  %v6949_v29 = vmul.f32 %v1154_v61, %v1130_v62 }
 0x190   : > { %5417 = vmatprep.subr.msk.mxu1 %vm2644_vm10, %v9151_v22  ;;  %vm2629_vm10 = vcmp.eq.s32.totalorder %v6395_v51, %v6810_v57  ;;  %v6952_v36 = vmul.f32 %v1154_v61, %v6184_v5  ;;  %v6957_v3 = vcvt.f32.s32 %v5786_v50  ;;  %9224 = vst [vmem:[#allocation34_spill] sm:$0xff] %v6959_v19  ;;  %v5546_v62 = vrot.slane %v6959_v19, 9  ;;  %v7418_v19 = vld [vmem:[%s6114_s23 + $0x10] sm:$0xff] }
 0x191   : > { %5418 = vmatpush1.msk.msra.mxu1 %vm2643_vm11, %v9151_v22  ;;  %vm2628_vm11 = vcmp.eq.s32.totalorder %v6408_v7, %v6804_v56  ;;  %9219 = vst [vmem:[#allocation29_spill] sm:$0xff] %v6938_v17  ;;  %9220 = vst [vmem:[#allocation30_spill] sm:$0xff] %v6941_v6 }
 0x192   : > { %5419 = vmatprep.subr.msk.mxu1 %vm2642_vm12, %v9151_v22  ;;  %vm2627_vm12 = vcmp.eq.s32.totalorder %v6408_v7, %v6810_v57  ;;  %9221 = vst [vmem:[#allocation31_spill] sm:$0xff] %v6949_v29  ;;  %9222 = vst [vmem:[#allocation32_spill] sm:$0xff] %v6952_v36  ;;  %v3567_v5 = vmul.u32 16, %v6957_v3 }
 0x193   : > { %5420 = vmatpush1.msk.msra.mxu1 %vm2641_vm13, %v9151_v22  ;;  %vm2626_vm13 = vcmp.eq.s32.totalorder %v6121_v25, %v6804_v56  ;;  %9223 = vst [vmem:[#allocation33_spill] sm:$0xff] %v6957_v3 }
 0x194   : > { %5421 = vmatprep.subr.msk.mxu1 %vm2640_vm14, %v9151_v22  ;;  %vm2625_vm14 = vcmp.eq.s32.totalorder %v6121_v25, %v6810_v57  ;;  %v3570_v4 = vadd.s32 %v5546_v62, %v3567_v5 }
 0x195   : > { %5422 = vmatpush1.msk.msra.mxu1 %vm2639_vm15, %v9151_v22  ;;  %vm2688_vm15 = vcmp.eq.s32.totalorder %v6423_v0, %v6804_v56 }
 0x196   : > { %5423 = vmatprep.subr.msk.mxu1 %vm2638_vm1, %v9151_v22  ;;  %vm2687_vm1 = vcmp.eq.s32.totalorder %v6423_v0, %v6810_v57  ;;  %v3572_v50 = vadd.s32 256, %v3570_v4 }
 0x197   : > { %5424 = vmatpush1.msk.msra.mxu1 %vm2637_vm2, %v9151_v22  ;;  %vm2686_vm2 = vcmp.eq.s32.totalorder %v6432_v2, %v6804_v56 }
 0x198   : > { %5425 = vmatprep.subr.msk.mxu1 %vm2636_vm3, %v9151_v22  ;;  %vm2685_vm3 = vcmp.eq.s32.totalorder %v6432_v2, %v6810_v57 }
 0x199   : > { %5426 = vmatpush1.msk.msra.mxu1 %vm2635_vm4, %v9151_v22  ;;  %vm2684_vm4 = vcmp.eq.s32.totalorder %v6441_v1, %v6804_v56 }
 0x19a   : > { %5427 = vmatprep.subr.msk.mxu1 %vm2634_vm5, %v9151_v22  ;;  %vm2683_vm5 = vcmp.eq.s32.totalorder %v6441_v1, %v6810_v57 }
 0x19b   : > { %5428 = vmatpush1.msk.msra.mxu1 %vm2633_vm6, %v9151_v22  ;;  %vm2682_vm6 = vcmp.eq.s32.totalorder %v6454_v26, %v6804_v56 }
 0x19c   : > { %5429 = vmatprep.subr.msk.mxu1 %vm2632_vm7, %v9151_v22  ;;  %vm2681_vm7 = vcmp.eq.s32.totalorder %v6454_v26, %v6810_v57 }
 0x19d   : > { %5430 = vmatpush1.msk.msra.mxu1 %vm2631_vm8, %v9151_v22  ;;  %vm2680_vm8 = vcmp.eq.s32.totalorder %v6463_v49, %v6804_v56 }
 0x19e   : > { %5431 = vmatprep.subr.msk.mxu1 %vm2630_vm9, %v9151_v22  ;;  %vm2679_vm9 = vcmp.eq.s32.totalorder %v6463_v49, %v6810_v57 }
 0x19f   : > { %5432 = vmatpush1.msk.msra.mxu1 %vm2629_vm10, %v9151_v22  ;;  %vm2678_vm10 = vcmp.eq.s32.totalorder %v6476_v59, %v6804_v56 }
 0x1a0   : > { %5433 = vmatprep.subr.msk.mxu1 %vm2628_vm11, %v9151_v22  ;;  %vm2677_vm11 = vcmp.eq.s32.totalorder %v6476_v59, %v6810_v57 }
 0x1a1   : > { %5434 = vmatpush1.msk.msra.mxu1 %vm2627_vm12, %v9151_v22  ;;  %vm2676_vm12 = vcmp.eq.s32.totalorder %v6485_v63, %v6804_v56 }
 0x1a2   : > { %5435 = vmatprep.subr.msk.mxu1 %vm2626_vm13, %v9151_v22  ;;  %vm2675_vm13 = vcmp.eq.s32.totalorder %v6485_v63, %v6810_v57 }
 0x1a3   : > { %5436 = vmatpush1.msk.msra.mxu1 %vm2625_vm14, %v9151_v22  ;;  %vm2674_vm14 = vcmp.eq.s32.totalorder %v6496_v37, %v6804_v56 }
 0x1a4   : > { %5437 = vmatprep.subr.msk.mxu1 %vm2688_vm15, %v9151_v22  ;;  %vm2673_vm15 = vcmp.eq.s32.totalorder %v6496_v37, %v6810_v57 }
 0x1a5   : > { %5438 = vmatpush2.msk.msra.mxu1 %vm2687_vm1, %v9151_v22  ;;  %vm2672_vm1 = vcmp.eq.s32.totalorder %v6505_v13, %v6804_v56 }
 0x1a6   : > { %5439 = vmatprep.subr.msk.mxu1 %vm2686_vm2, %v9151_v22  ;;  %vm2671_vm2 = vcmp.eq.s32.totalorder %v6505_v13, %v6810_v57 }
 0x1a7   : > { %5440 = vmatpush2.msk.msra.mxu1 %vm2685_vm3, %v9151_v22  ;;  %vm3571_vm3 = vcmp.lt.s32.totalorder %v3570_v4, 0 }
 0x1a8   : > { %5441 = vmatprep.subr.msk.mxu1 %vm2684_vm4, %v9151_v22  ;;  %vm2670_vm4 = vcmp.eq.s32.totalorder %v6514_v45, %v6804_v56  ;;  %v3573_v58 = vsel %vm3571_vm3, %v3572_v50, %v3570_v4  ;;  %v9225_v4 = vcombine.high %v6389_v47, %v6397_v28 }
 0x1a9   : > { %5442 = vmatpush2.msk.msra.mxu1 %vm2683_vm5, %v9151_v22  ;;  %vm2669_vm5 = vcmp.eq.s32.totalorder %v6514_v45, %v6810_v57  ;;  %v3581_v21 = vrot.slane %v3573_v58, %v6243_v41  ;;  %v3577_v61 = vrot.slane %v3573_v58, %v6238_v38 }
 0x1aa   : > { %5443 = vmatprep.subr.msk.mxu1 %vm2682_vm6, %v9151_v22  ;;  %vm2668_vm6 = vcmp.eq.s32.totalorder %v6523_v42, %v6804_v56  ;;  %v7047_v50 = vrot.slane %v9225_v4, %v6133_v33 }
 0x1ab   : > { %5444 = vmatpush2.msk.msra.mxu1 %vm2681_vm7, %v9151_v22  ;;  %vm2667_vm7 = vcmp.eq.s32.totalorder %v6523_v42, %v6810_v57  ;;  %v7035_v5 = vrot.slane %v3581_v21, %v6238_v38  ;;  %v7041_v62 = vrot.slane %v3577_v61, %v6238_v38 }
 0x1ac   : > { %5445 = vmatprep.subr.msk.mxu1 %vm2680_vm8, %v9151_v22  ;;  %vm2666_vm8 = vcmp.eq.s32.totalorder %v6532_v40, %v6804_v56  ;;  %9226 = vst [vmem:[#allocation35_spill] sm:$0xff] %v7047_v50  ;;  %v7066_v58 = vcombine.high %v7047_v50, %v7047_v50 }
 0x1ad   : > { %5446 = vmatpush2.msk.msra.mxu1 %vm2679_vm9, %v9151_v22  ;;  %vm2665_vm9 = vcmp.eq.s32.totalorder %v6532_v40, %v6810_v57  ;;  %vm3621_vm3 = vcmp.eq.s32.totalorder %v6277_v15, %v7035_v5 }
 0x1ae   : > { %5447 = vmatprep.subr.msk.mxu1 %vm2678_vm10, %v9151_v22  ;;  %vm2664_vm10 = vcmp.eq.s32.totalorder %v6541_v23, %v6804_v56 }
 0x1af   : > { %5448 = vmatpush2.msk.msra.mxu1 %vm2677_vm11, %v9151_v22  ;;  %vm2663_vm11 = vcmp.eq.s32.totalorder %v6541_v23, %v6810_v57 }
 0x1b0   : > { %5449 = vmatprep.subr.msk.mxu1 %vm2676_vm12, %v9151_v22  ;;  %vm2662_vm12 = vcmp.eq.s32.totalorder %v6550_v9, %v6804_v56 }
 0x1b1   : > { %5450 = vmatpush2.msk.msra.mxu1 %vm2675_vm13, %v9151_v22  ;;  %vm2661_vm13 = vcmp.eq.s32.totalorder %v6550_v9, %v6810_v57 }
 0x1b2   : > { %5451 = vmatprep.subr.msk.mxu1 %vm2674_vm14, %v9151_v22  ;;  %vm2660_vm14 = vcmp.eq.s32.totalorder %v6560_v20, %v6804_v56 }
 0x1b3   : > { %5452 = vmatpush2.msk.msra.mxu1 %vm2673_vm15, %v9151_v22  ;;  %vm2659_vm15 = vcmp.eq.s32.totalorder %v6560_v20, %v6810_v57 }
 0x1b4   : > { %5453 = vmatprep.subr.msk.mxu1 %vm2672_vm1, %v9151_v22  ;;  %vm2658_vm1 = vcmp.eq.s32.totalorder %v6572_v39, %v6804_v56  ;;  %v3052_v56 = vrot.slane %v7066_v58, 7 }
 0x1b5   : > { %5454 = vmatpush2.msk.msra.mxu1 %vm2671_vm2, %v9151_v22  ;;  %vm2657_vm2 = vcmp.eq.s32.totalorder %v6572_v39, %v6810_v57  ;;  %v3063_v57 = vrot.slane %v6231_v35, 7 }
 0x1b6   : > { %5455 = vmatprep.subr.msk.mxu1 %vm2670_vm4, %v9151_v22  ;;  %vm3620_vm4 = vcmp.eq.s32.totalorder %v6277_v15, %v7041_v62  ;;  %v3053_v21 = vrot.slane %v3052_v56, 2 }
 0x1b7   : > { %5456 = vmatpush2.msk.msra.mxu1 %vm2669_vm5, %v9151_v22  ;;  %vm3619_vm5 = vcmp.eq.s32.totalorder %v6283_v18, %v7035_v5  ;;  %v3064_v61 = vrot.slane %v3063_v57, 2 }
 0x1b8   : > { %5457 = vmatprep.subr.msk.mxu1 %vm2668_vm6, %v9151_v22  ;;  %vm3618_vm6 = vcmp.eq.s32.totalorder %v6283_v18, %v7041_v62 }
 0x1b9   : > { %5458 = vmatpush2.msk.msra.mxu1 %vm2667_vm7, %v9151_v22  ;;  %vm3617_vm7 = vcmp.eq.s32.totalorder %v6291_v52, %v7035_v5  ;;  %v3074_v6 = vmul.f32 %v3064_v61, %v6225_v30 }
 0x1ba   : > { %5459 = vmatprep.subr.msk.mxu1 %vm2666_vm8, %v9151_v22  ;;  %vm3616_vm8 = vcmp.eq.s32.totalorder %v6291_v52, %v7041_v62 }
 0x1bb   : > { %5460 = vmatpush2.msk.msra.mxu1 %vm2665_vm9, %v9151_v22  ;;  %vm3615_vm9 = vcmp.eq.s32.totalorder %v6303_v27, %v7035_v5  ;;  %v7119_v17 = vmul.f32 %v3074_v6, %v3053_v21 }
 0x1bc   : > { %5461 = vmatprep.subr.msk.mxu1 %vm2664_vm10, %v9151_v22  ;;  %vm3614_vm10 = vcmp.eq.s32.totalorder %v6303_v27, %v7041_v62 }
 0x1bd   : > { %5462 = vmatpush2.msk.msra.mxu1 %vm2663_vm11, %v9151_v22  ;;  %vm3613_vm11 = vcmp.eq.s32.totalorder %v6312_v31, %v7035_v5  ;;  %9228 = vst [vmem:[#allocation37_spill] sm:$0xff] %v7119_v17 }
 0x1be   : > { %5463 = vmatprep.subr.msk.mxu1 %vm2662_vm12, %v9151_v22  ;;  %vm3612_vm12 = vcmp.eq.s32.totalorder %v6312_v31, %v7041_v62 }
 0x1bf   : > { %5464 = vmatpush2.msk.msra.mxu1 %vm2661_vm13, %v9151_v22  ;;  %vm3611_vm13 = vcmp.eq.s32.totalorder %v6321_v34, %v7035_v5 }
 0x1c0   : > { %5465 = vmatprep.subr.msk.mxu1 %vm2660_vm14, %v9151_v22  ;;  %vm3610_vm14 = vcmp.eq.s32.totalorder %v6321_v34, %v7041_v62 }
 0x1c1   : > { %5466 = vmatpush2.msk.msra.mxu1 %vm2659_vm15, %v9151_v22  ;;  %vm3609_vm15 = vcmp.eq.s32.totalorder %v6330_v48, %v7035_v5 }
 0x1c2   : > { %5467 = vmatprep.subr.msk.mxu1 %vm2658_vm1, %v9151_v22  ;;  %vm3608_vm1 = vcmp.eq.s32.totalorder %v6330_v48, %v7041_v62 }
 0x1c3   : > { %5468 = vmatpush2.msk.msra.mxu1 %vm2657_vm2, %v9151_v22  ;;  %vm3607_vm2 = vcmp.eq.s32.totalorder %v6339_v53, %v7035_v5 }
 0x1c4   : > { %2818 = vmatmul.mubr.f32.vlgmr.msra.gmra.mxu1 %v6593_v54  ;;  %5547 = vmatprep.subr.msk.mxu1 %vm3621_vm3, %v9151_v22  ;;  %v3041_v54 = vsub.f32 1.0, %v6231_v35  ;;  %v7097_v35 = vld [vmem:[%s6114_s23 + $0x8] sm:$0xff]  ;;  %vm3606_vm3 = vcmp.eq.s32.totalorder %v6339_v53, %v7041_v62 }
 0x1c5   : > { %5548 = vmatpush1.msk.msra.mxu1 %vm3620_vm4, %v9151_v22  ;;  %2823 = vmatprep.mubr.f32.mxu1 %v6599_v60  ;;  %v3040_v60 = vsub.f32 1.0, %v6225_v30  ;;  %vm3605_vm4 = vcmp.eq.s32.totalorder %v6348_v55, %v7035_v5 }
 0x1c6   : > { %5549 = vmatprep.subr.msk.mxu1 %vm3619_vm5, %v9151_v22  ;;  %vm3604_vm5 = vcmp.eq.s32.totalorder %v6348_v55, %v7041_v62 }
 0x1c7   : > { %5550 = vmatpush1.msk.msra.mxu1 %vm3618_vm6, %v9151_v22  ;;  %v3066_v36 = vmul.f32 %v3064_v61, %v3040_v60  ;;  %vm3603_vm6 = vcmp.eq.s32.totalorder %v6357_v14, %v7035_v5 }
 0x1c8   : > { %2824 = vmatmul.mubr.f32.gmra.mxu1 %v6613_v8  ;;  %5551 = vmatprep.subr.msk.mxu1 %vm3617_vm7, %v9151_v22  ;;  %v3048_v8 = vrot.slane %v3041_v54, 7  ;;  %vm3602_vm7 = vcmp.eq.s32.totalorder %v6357_v14, %v7041_v62 }
 0x1c9   : > { %5552 = vmatpush1.msk.msra.mxu1 %vm3616_vm8, %v9151_v22  ;;  %3782 = vmatprep.mubr.f32.mxu1 %v7097_v35  ;;  %v7116_v56 = vmul.f32 %v3066_v36, %v3053_v21  ;;  %vm3601_vm8 = vcmp.eq.s32.totalorder %v6366_v24, %v7035_v5  ;;  %v3553_v36 = vrot.slane %v6258_v46, 7 }
 0x1ca   : > { %5553 = vmatprep.subr.msk.mxu1 %vm3615_vm9, %v9151_v22  ;;  %v3049_v4 = vrot.slane %v3048_v8, 2  ;;  %vm3600_vm9 = vcmp.eq.s32.totalorder %v6366_v24, %v7041_v62 }
 0x1cb   : > { %5554 = vmatpush1.msk.msra.mxu1 %vm3614_vm10, %v9151_v22  ;;  %9227 = vst [vmem:[#allocation36_spill] sm:$0xff] %v7116_v56  ;;  %vm3599_vm10 = vcmp.eq.s32.totalorder %v6375_v32, %v7035_v5 }
 0x1cc   : > { %5555 = vmatprep.subr.msk.mxu1 %vm3613_vm11, %v9151_v22  ;;  %v3051_v54 = vmul.f32 %v3049_v4, %v3040_v60  ;;  %v3070_v57 = vmul.f32 %v3049_v4, %v6225_v30  ;;  %v3523_v30 = vsub.f32 1.0, %v6258_v46  ;;  %vm3598_vm11 = vcmp.eq.s32.totalorder %v6375_v32, %v7041_v62 }
 0x1cd   : > { %5556 = vmatpush1.msk.msra.mxu1 %vm3612_vm12, %v9151_v22  ;;  %vm3597_vm12 = vcmp.eq.s32.totalorder %v6384_v44, %v7035_v5  ;;  %v3522_v46 = vsub.f32 1.0, %v6249_v43 }
 0x1ce   : > { %5557 = vmatprep.subr.msk.mxu1 %vm3611_vm13, %v9151_v22  ;;  %v7127_v8 = vmul.f32 %v3053_v21, %v3051_v54  ;;  %v7129_v61 = vmul.f32 %v3070_v57, %v3053_v21  ;;  %v3530_v6 = vrot.slane %v3523_v30, 7  ;;  %v3554_v21 = vrot.slane %v3553_v36, 2 }
 0x1cf   : > { %5558 = vmatpush1.msk.msra.mxu1 %vm3610_vm14, %v9151_v22  ;;  %vm3596_vm13 = vcmp.eq.s32.totalorder %v6384_v44, %v7041_v62  ;;  %vm3595_vm14 = vcmp.eq.s32.totalorder %v6395_v51, %v7035_v5  ;;  %v639_v36 = vadd.s32 1, %v6198_v11 }
 0x1d0   : > { %5559 = vmatprep.subr.msk.mxu1 %vm3609_vm15, %v9151_v22  ;;  %9229 = vst [vmem:[#allocation38_spill] sm:$0xff] %v7127_v8  ;;  %9230 = vst [vmem:[#allocation39_spill] sm:$0xff] %v7129_v61  ;;  %v3531_v60 = vrot.slane %v3530_v6, 2  ;;  %vm3594_vm15 = vcmp.eq.s32.totalorder %v6395_v51, %v7041_v62  ;;  %v7174_v54 = vmul.f32 %v3554_v21, %v6249_v43 }
 0x1d1   : > { %5560 = vmatpush1.msk.msra.mxu1 %vm3608_vm1, %v9151_v22  ;;  %vm3593_vm1 = vcmp.eq.s32.totalorder %v6408_v7, %v7035_v5  ;;  %v7181_v30 = vmul.f32 %v3554_v21, %v3522_v46 }
 0x1d2   : > { %5561 = vmatprep.subr.msk.mxu1 %vm3607_vm2, %v9151_v22  ;;  %v7168_v4 = vmul.f32 %v3531_v60, %v6249_v43  ;;  %9232 = vst [vmem:[#allocation41_spill] sm:$0xff] %v7174_v54  ;;  %v7179_v57 = vmul.f32 %v3531_v60, %v3522_v46  ;;  %vm3592_vm2 = vcmp.eq.s32.totalorder %v6408_v7, %v7041_v62  ;;  %v9235_v43 = vfloor.f32 %v6280_v16  ;;  %v9237_v46 = vld [vmem:[#allocation10_spill] sm:$0xff] }
 0x1d3   : > { %5562 = vmatpush1.msk.msra.mxu1 %vm3606_vm3, %v9151_v22  ;;  %9234 = vst [vmem:[#allocation43_spill] sm:$0xff] %v7181_v30  ;;  %vm3591_vm3 = vcmp.eq.s32.totalorder %v6121_v25, %v7035_v5 }
 0x1d4   : > { %5563 = vmatprep.subr.msk.mxu1 %vm3605_vm4, %v9151_v22  ;;  %9231 = vst [vmem:[#allocation40_spill] sm:$0xff] %v7168_v4  ;;  %9233 = vst [vmem:[#allocation42_spill] sm:$0xff] %v7179_v57  ;;  %vm3590_vm4 = vcmp.eq.s32.totalorder %v6121_v25, %v7041_v62  ;;  %v5794_v6 = vtrunc.f32 %v9235_v43  ;;  %v646_v43 = vsub.f32 1.0, %v9237_v46 }
 0x1d5   : > { %5564 = vmatpush1.msk.msra.mxu1 %vm3604_vm5, %v9151_v22  ;;  %vm3653_vm5 = vcmp.eq.s32.totalorder %v6423_v0, %v7035_v5 }
 0x1d6   : > { %5565 = vmatprep.subr.msk.mxu1 %vm3603_vm6, %v9151_v22  ;;  %vm3652_vm6 = vcmp.eq.s32.totalorder %v6423_v0, %v7041_v62  ;;  %v7209_v16 = vcvt.f32.s32 %v5794_v6  ;;  %v9238_v6 = vld [vmem:[#allocation6_spill] sm:$0xff] }
 0x1d7   : > { %5566 = vmatpush1.msk.msra.mxu1 %vm3602_vm7, %v9151_v22  ;;  %vm3651_vm7 = vcmp.eq.s32.totalorder %v6432_v2, %v7035_v5  ;;  %v9239_v61 = vfloor.f32 %v9238_v6 }
 0x1d8   : > { %5567 = vmatprep.subr.msk.mxu1 %vm3601_vm8, %v9151_v22  ;;  %vm3650_vm8 = vcmp.eq.s32.totalorder %v6432_v2, %v7041_v62  ;;  %9236 = vst [vmem:[#allocation44_spill] sm:$0xff] %v7209_v16  ;;  %v4513_v60 = vmul.u32 16, %v7209_v16  ;;  %v5688_v21 = vrot.slane %v7209_v16, 9  ;;  %v9248_v16 = vmov 0  }
 0x1d9   : > { %5568 = vmatpush1.msk.msra.mxu1 %vm3600_vm9, %v9151_v22  ;;  %vm3649_vm9 = vcmp.eq.s32.totalorder %v6441_v1, %v7035_v5  ;;  %v5768_v17 = vtrunc.f32 %v9239_v61 }
 0x1da   : > { %5569 = vmatprep.subr.msk.mxu1 %vm3599_vm10, %v9151_v22  ;;  %vm3648_vm10 = vcmp.eq.s32.totalorder %v6441_v1, %v7041_v62  ;;  %v4516_v61 = vadd.s32 %v5688_v21, %v4513_v60 }
 0x1db   : > { %5570 = vmatpush1.msk.msra.mxu1 %vm3598_vm11, %v9151_v22  ;;  %vm3647_vm11 = vcmp.eq.s32.totalorder %v6454_v26, %v7035_v5  ;;  %v7263_v21 = vcvt.f32.s32 %v5768_v17 }
 0x1dc   : > { %5571 = vmatprep.subr.msk.mxu1 %vm3597_vm12, %v9151_v22  ;;  %vm3646_vm12 = vcmp.eq.s32.totalorder %v6454_v26, %v7041_v62  ;;  %v4518_v17 = vadd.s32 256, %v4516_v61 }
 0x1dd   : > { %5572 = vmatpush1.msk.msra.mxu1 %vm3596_vm13, %v9151_v22  ;;  %vm3645_vm13 = vcmp.eq.s32.totalorder %v6463_v49, %v7035_v5  ;;  %9247 = vst [vmem:[#allocation10_spill] sm:$0xff] %v7263_v21  ;;  %v1167_v57 = vmul.u32 16, %v7263_v21 }
 0x1de   : > { %5573 = vmatprep.subr.msk.mxu1 %vm3595_vm14, %v9151_v22  ;;  %vm643_vm14 = vcmp.ge.s32.totalorder %v639_v36, 0 }
 0x1df   : > { %5574 = vmatpush1.msk.msra.mxu1 %vm3594_vm15, %v9151_v22  ;;  %vm644_vm15 = vcmp.lt.s32.totalorder %v639_v36, 16  ;;  %v9240_v36 = vld [vmem:[#allocation7_spill] sm:$0xff] }
 0x1e0   : > { %5575 = vmatprep.subr.msk.mxu1 %vm3593_vm1, %v9151_v22  ;;  %vm3644_vm1 = vcmp.eq.s32.totalorder %v6463_v49, %v7041_v62  ;;  %v9241_v8 = vfloor.f32 %v9240_v36  ;;  %v9246_v36 = vcombine.low %v6389_v47, %v6397_v28 }
 0x1e1   : > { %5576 = vmatpush1.msk.msra.mxu1 %vm3592_vm2, %v9151_v22  ;;  %vm640_vm2 = vcmp.ge.s32.totalorder %v6198_v11, 0 }
 0x1e2   : > { %5577 = vmatprep.subr.msk.mxu1 %vm3591_vm3, %v9151_v22  ;;  %vm641_vm3 = vcmp.lt.s32.totalorder %v6198_v11, 16  ;;  %v5770_v56 = vtrunc.f32 %v9241_v8  ;;  %v677_v11 = vrot.slane %v9237_v46, 7  ;;  %v653_v8 = vrot.slane %v646_v43, 7 }
 0x1e3   : > { %5578 = vmatpush1.msk.msra.mxu1 %vm3590_vm4, %v9151_v22  ;;  %vm3643_vm4 = vcmp.eq.s32.totalorder %v6476_v59, %v7035_v5  ;;  %v666_v60 = vrot.slane %v9246_v36, %v6133_v33 }
 0x1e4   : > { %5579 = vmatprep.subr.msk.mxu1 %vm3653_vm5, %v9151_v22  ;;  %vm3642_vm5 = vcmp.eq.s32.totalorder %v6476_v59, %v7041_v62  ;;  %v7271_v4 = vcvt.f32.s32 %v5770_v56  ;;  %v678_v47 = vrot.slane %v677_v11, 2  ;;  %v654_v36 = vrot.slane %v653_v8, 2 }
 0x1e5   : > { %5580 = vmatpush2.msk.msra.mxu1 %vm3652_vm6, %v9151_v22  ;;  %vm7244_vm6 = vmand %vm643_vm14, %vm644_vm15  ;;  %vm3636_vm14 = vcmp.eq.s32.totalorder %v6505_v13, %v7041_v62  ;;  %v7285_v56 = vcombine.high %v666_v60, %v666_v60  ;;  %vm3635_vm15 = vcmp.eq.s32.totalorder %v6514_v45, %v7035_v5 }
 0x1e6   : > { %5581 = vmatprep.subr.msk.mxu1 %vm3651_vm7, %v9151_v22  ;;  %vm3641_vm7 = vcmp.eq.s32.totalorder %v6485_v63, %v7035_v5  ;;  %v671_v54 = vsel %vm7244_vm6, 1, %v9248_v16  ;;  %9249 = vst [vmem:[#allocation6_spill] sm:$0xff] %v7271_v4  ;;  %v5191_v33 = vrot.slane %v7271_v4, 9  ;;  %v680_v8 = vmul.f32 %v678_v47, %v646_v43 }
 0x1e7   : > { %5582 = vmatpush2.msk.msra.mxu1 %vm3650_vm8, %v9151_v22  ;;  %vm7252_vm8 = vmand %vm640_vm2, %vm641_vm3  ;;  %9250 = vst [vmem:[#allocation7_spill] sm:$0xff] %v7285_v56  ;;  %v5120_v30 = vrot.slane %v671_v54, 9  ;;  %vm3633_vm2 = vcmp.eq.s32.totalorder %v6523_v42, %v7035_v5  ;;  %v656_v54 = vmul.f32 %v654_v36, %v646_v43  ;;  %vm3632_vm3 = vcmp.eq.s32.totalorder %v6523_v42, %v7041_v62 }
 0x1e8   : > { %5583 = vmatprep.subr.msk.mxu1 %vm3649_vm9, %v9151_v22  ;;  %vm3640_vm9 = vcmp.eq.s32.totalorder %v6485_v63, %v7041_v62  ;;  %v647_v28 = vsel %vm7252_vm8, 1, %v9248_v16  ;;  %v1170_v21 = vadd.s32 %v5191_v33, %v1167_v57 }
 0x1e9   : > { %5584 = vmatpush2.msk.msra.mxu1 %vm3648_vm10, %v9151_v22  ;;  %vm3639_vm10 = vcmp.eq.s32.totalorder %v6496_v37, %v7035_v5  ;;  %v5119_v11 = vrot.slane %v647_v28, 9  ;;  %v681_v28 = vmul.f32 %v680_v8, %v7285_v56  ;;  %v669_v43 = vmul.f32 %v7285_v56, %v656_v54 }
 0x1ea   : > { %5585 = vmatprep.subr.msk.mxu1 %vm3647_vm11, %v9151_v22  ;;  %vm3638_vm11 = vcmp.eq.s32.totalorder %v6496_v37, %v7041_v62  ;;  %v688_v8 = vmul.f32 %v678_v47, %v9237_v46  ;;  %v1172_v47 = vadd.s32 256, %v1170_v21 }
 0x1eb   : > { %5586 = vmatpush2.msk.msra.mxu1 %vm3646_vm12, %v9151_v22  ;;  %vm3637_vm12 = vcmp.eq.s32.totalorder %v6505_v13, %v7035_v5 }
 0x1ec   : > { %5587 = vmatprep.subr.msk.mxu1 %vm3645_vm13, %v9151_v22  ;;  %vm4517_vm13 = vcmp.lt.s32.totalorder %v4516_v61, 0  ;;  %v689_v57 = vmul.f32 %v688_v8, %v7285_v56 }
 0x1ed   : > { %5588 = vmatpush2.msk.msra.mxu1 %vm3644_vm1, %v9151_v22  ;;  %vm3634_vm1 = vcmp.eq.s32.totalorder %v6514_v45, %v7041_v62  ;;  %v4519_v3 = vsel %vm4517_vm13, %v4518_v17, %v4516_v61  ;;  %v684_v17 = vmul.f32 %v654_v36, %v9237_v46 }
 0x1ee   : > { %5589 = vmatprep.subr.msk.mxu1 %vm3643_vm4, %v9151_v22  ;;  %vm7301_vm4 = vcmp.ne.s32.totalorder %v5120_v30, 0  ;;  %v4527_v30 = vrot.slane %v4519_v3, %v6243_v41  ;;  %v4523_v4 = vrot.slane %v4519_v3, %v6238_v38 }
 0x1ef   : > { %5590 = vmatpush2.msk.msra.mxu1 %vm3642_vm5, %v9151_v22  ;;  %vm3631_vm5 = vcmp.eq.s32.totalorder %v6532_v40, %v7035_v5  ;;  %v685_v33 = vmul.f32 %v684_v17, %v7285_v56 }
 0x1f0   : > { %5591 = vmatprep.subr.msk.mxu1 %vm3641_vm7, %v9151_v22  ;;  %vm7309_vm7 = vcmp.ne.s32.totalorder %v5119_v11, 0  ;;  %v7341_v36 = vrot.slane %v4527_v30, %v6238_v38  ;;  %v7351_v6 = vrot.slane %v4523_v4, %v6238_v38  ;;  %v7388_v30 = vld [vmem:[%s6114_s23] sm:$0xff] }
 0x1f1   : > { %5592 = vmatpush2.msk.msra.mxu1 %vm3640_vm9, %v9151_v22  ;;  %vm3630_vm9 = vcmp.eq.s32.totalorder %v6532_v40, %v7041_v62  ;;  %vm651_vm13 = vmand %vm7252_vm8, %vm7309_vm7 }
 0x1f2   : > { %5593 = vmatprep.subr.msk.mxu1 %vm3639_vm10, %v9151_v22  ;;  %vm3629_vm10 = vcmp.eq.s32.totalorder %v6541_v23, %v7035_v5  ;;  %v670_v46 = vsel %vm651_vm13, %v669_v43, 0.0  ;;  %vm4562_vm13 = vcmp.eq.s32.totalorder %v6291_v52, %v7351_v6 }
 0x1f3   : > { %5594 = vmatpush2.msk.msra.mxu1 %vm3638_vm11, %v9151_v22  ;;  %vm675_vm11 = vmand %vm7252_vm8, %vm7301_vm4  ;;  %v923_v4 = vrot.slane %v670_v46, %v6238_v38  ;;  %v927_v61 = vrot.slane %v670_v46, %v6243_v41  ;;  %v7399_v46 = vld [vmem:[%s6114_s23 + $0x18] sm:$0xff] }
 0x1f4   : > { %5595 = vmatprep.subr.msk.mxu1 %vm3637_vm12, %v9151_v22  ;;  %vm3628_vm12 = vcmp.eq.s32.totalorder %v6541_v23, %v7041_v62  ;;  %v682_v3 = vsel %vm675_vm11, %v681_v28, 0.0  ;;  %vm683_vm8 = vmand %vm7244_vm6, %vm7309_vm7  ;;  %vm3623_vm7 = vcmp.eq.s32.totalorder %v6572_v39, %v7035_v5  ;;  %vm4564_vm11 = vcmp.eq.s32.totalorder %v6283_v18, %v7351_v6 }
 0x1f5   : > { %5596 = vmatpush2.msk.msra.mxu1 %vm3636_vm14, %v9151_v22  ;;  %vm3627_vm14 = vcmp.eq.s32.totalorder %v6550_v9, %v7035_v5  ;;  %v944_v11 = vrot.slane %v682_v3, %v6238_v38  ;;  %v686_v54 = vsel %vm683_vm8, %v685_v33, 0.0  ;;  %v948_v60 = vrot.slane %v682_v3, %v6243_v41 }
 0x1f6   : > { %5597 = vmatprep.subr.msk.mxu1 %vm3635_vm15, %v9151_v22  ;;  %vm1171_vm15 = vcmp.lt.s32.totalorder %v1170_v21, 0  ;;  %v973_v43 = vrot.slane %v686_v54, %v6238_v38  ;;  %v977_v8 = vrot.slane %v686_v54, %v6243_v41  ;;  %v937_v3 = vrot.slane %v927_v61, %v6238_v38 }
 0x1f7   : > { %5598 = vmatpush2.msk.msra.mxu1 %vm3634_vm1, %v9151_v22  ;;  %vm3626_vm1 = vcmp.eq.s32.totalorder %v6550_v9, %v7041_v62  ;;  %v7371_v29 = vsel %vm1171_vm15, %v1172_v47, %v1170_v21  ;;  %vm4560_vm15 = vcmp.eq.s32.totalorder %v6303_v27, %v7351_v6  ;;  %vm4558_vm8 = vcmp.eq.s32.totalorder %v6312_v31, %v7351_v6 }
 0x1f8   : > { %5599 = vmatprep.subr.msk.mxu1 %vm3633_vm2, %v9151_v22  ;;  %vm3625_vm2 = vcmp.eq.s32.totalorder %v6560_v20, %v7035_v5  ;;  %v954_v5 = vrot.slane %v944_v11, %v6238_v38  ;;  %v983_v11 = vrot.slane %v973_v43, %v6238_v38 }
 0x1f9   : > { %5600 = vmatpush2.msk.msra.mxu1 %vm3632_vm3, %v9151_v22  ;;  %vm687_vm3 = vmand %vm7244_vm6, %vm7301_vm4  ;;  %vm3622_vm6 = vcmp.eq.s32.totalorder %v6572_v39, %v7041_v62  ;;  %vm4567_vm4 = vcmp.eq.s32.totalorder %v6277_v15, %v7341_v36 }
 0x1fa   : > { %5601 = vmatprep.subr.msk.mxu1 %vm3631_vm5, %v9151_v22  ;;  %vm3624_vm5 = vcmp.eq.s32.totalorder %v6560_v20, %v7041_v62  ;;  %v690_v28 = vsel %vm687_vm3, %v689_v57, 0.0  ;;  %v933_v62 = vrot.slane %v923_v4, %v6238_v38  ;;  %v958_v57 = vrot.slane %v948_v60, %v6238_v38 }
 0x1fb   : > { %5602 = vmatpush2.msk.msra.mxu1 %vm3630_vm9, %v9151_v22  ;;  %vm4566_vm9 = vcmp.eq.s32.totalorder %v6277_v15, %v7351_v6  ;;  %v996_v21 = vrot.slane %v690_v28, %v6238_v38  ;;  %v1000_v54 = vrot.slane %v690_v28, %v6243_v41  ;;  %v987_v28 = vrot.slane %v977_v8, %v6238_v38 }
 0x1fc   : > { %5603 = vmatprep.subr.msk.mxu1 %vm3629_vm10, %v9151_v22  ;;  %vm4565_vm10 = vcmp.eq.s32.totalorder %v6283_v18, %v7341_v36  ;;  %v1181_v8 = vrot.slane %v7371_v29, %v6243_v41  ;;  %vm4556_vm3 = vcmp.eq.s32.totalorder %v6321_v34, %v7351_v6 }
 0x1fd   : > { %5604 = vmatpush2.msk.msra.mxu1 %vm3628_vm12, %v9151_v22  ;;  %vm4563_vm12 = vcmp.eq.s32.totalorder %v6291_v52, %v7341_v36 }
 0x1fe   : > { %5605 = vmatprep.subr.msk.mxu1 %vm3627_vm14, %v9151_v22  ;;  %vm4561_vm14 = vcmp.eq.s32.totalorder %v6303_v27, %v7341_v36 }
 0x1ff   : > { %5606 = vmatpush2.msk.msra.mxu1 %vm3626_vm1, %v9151_v22  ;;  %vm4559_vm1 = vcmp.eq.s32.totalorder %v6312_v31, %v7341_v36 }
 0x200   : > { %5607 = vmatprep.subr.msk.mxu1 %vm3625_vm2, %v9151_v22  ;;  %vm4557_vm2 = vcmp.eq.s32.totalorder %v6321_v34, %v7341_v36 }
 0x201   : > { %5608 = vmatpush2.msk.msra.mxu1 %vm3624_vm5, %v9151_v22  ;;  %vm4555_vm5 = vcmp.eq.s32.totalorder %v6330_v48, %v7341_v36 }
 0x202   : > { %5609 = vmatprep.subr.msk.mxu1 %vm3623_vm7, %v9151_v22  ;;  %vm4554_vm7 = vcmp.eq.s32.totalorder %v6330_v48, %v7351_v6 }
 0x203   : > { %5610 = vmatpush2.msk.msra.mxu1 %vm3622_vm6, %v9151_v22  ;;  %vm4553_vm6 = vcmp.eq.s32.totalorder %v6339_v53, %v7341_v36 }
 0x204   : > { %v908_v17 = vpop.f32.mrf.mxu1  ;;  %3783 = vmatmul.mubr.f32.vlgmr.msra.gmra.mxu1 %v7388_v30  ;;  %5689 = vmatprep.subr.msk.mxu1 %vm4567_vm4, %v9151_v22  ;;  %vm1022_vm4 = vcmask 31744  }
 0x205   : > { %v959_v33 = vmul.f32 %v954_v5, %v908_v17  ;;  %5690 = vmatpush1.msk.msra.mxu1 %vm4566_vm9, %v9151_v22  ;;  %3788 = vmatprep.mubr.f32.mxu1 %v7399_v46  ;;  %v938_v4 = vmul.f32 %v933_v62, %v908_v17  ;;  %v1006_v5 = vrot.slane %v996_v21, %v6238_v38 }
 0x206   : > { %v910_v47 = vpop.f32.mrf.mxu1  ;;  %5691 = vmatprep.subr.msk.mxu1 %vm4565_vm10, %v9151_v22  ;;  %vm4552_vm9 = vcmp.eq.s32.totalorder %v6339_v53, %v7351_v6 }
 0x207   : > { %v963_v61 = vrot.slane %v959_v33, 4  ;;  %v960_v60 = vmul.f32 %v958_v57, %v910_v47  ;;  %5692 = vmatpush1.msk.msra.mxu1 %vm4564_vm11, %v9151_v22  ;;  %v939_v56 = vmul.f32 %v937_v3, %v910_v47  ;;  %v1010_v3 = vrot.slane %v1000_v54, %v6238_v38 }
 0x208   : > { %v914_v43 = vpop.f32.mrf.mxu1  ;;  %3789 = vmatmul.mubr.f32.gmra.mxu1 %v7418_v19  ;;  %5693 = vmatprep.subr.msk.mxu1 %vm4563_vm12, %v9151_v22  ;;  %vm4551_vm12 = vcmp.eq.s32.totalorder %v6348_v55, %v7341_v36 }
 0x209   : > { %v967_v17 = vadd.f32 %v963_v61, %v938_v4  ;;  %v964_v62 = vrot.slane %v960_v60, 4  ;;  %v988_v33 = vmul.f32 %v983_v11, %v914_v43  ;;  %v1011_v57 = vmul.f32 %v1006_v5, %v914_v43  ;;  %5694 = vmatpush1.msk.msra.mxu1 %vm4562_vm13, %v9151_v22  ;;  %4728 = vmatprep.mubr.f32.mxu1 %v7097_v35 }
 0x20a   : > { %v916_v21 = vpop.f32.mrf.mxu1  ;;  %5695 = vmatprep.subr.msk.mxu1 %vm4561_vm14, %v9151_v22  ;;  %v1177_v35 = vrot.slane %v7371_v29, %v6238_v38  ;;  %v7451_v29 = vrot.slane %v1181_v8, %v6238_v38  ;;  %vm4550_vm14 = vcmp.eq.s32.totalorder %v6348_v55, %v7351_v6  ;;  %v9256_v8 = vld [vmem:[#allocation19_spill] sm:$0xff] }
 0x20b   : > { %v968_v47 = vadd.f32 %v964_v62, %v939_v56  ;;  %v989_v11 = vmul.f32 %v987_v28, %v916_v21  ;;  %5696 = vmatpush1.msk.msra.mxu1 %vm4560_vm15, %v9151_v22  ;;  %v1012_v4 = vmul.f32 %v1010_v3, %v916_v21  ;;  %v990_v54 = vadd.f32 %v988_v33, %v967_v17  ;;  %v1021_v17 = vld [vmem:[%s9102_s5] sm:$0xf]  ;;  %v9255_v62 = vld [vmem:[#allocation20_spill] sm:$0xff] }
 0x20c   : > { %5697 = vmatprep.subr.msk.mxu1 %vm4559_vm1, %v9151_v22  ;;  %v1015_v61 = vrot.slane %v1011_v57, 4  ;;  %v7457_v5 = vrot.slane %v1177_v35, %v6238_v38  ;;  %vm1221_vm10 = vcmp.eq.s32.totalorder %v6277_v15, %v7451_v29  ;;  %vm1219_vm13 = vcmp.eq.s32.totalorder %v6283_v18, %v7451_v29 }
 0x20d   : > { %v991_v60 = vadd.f32 %v989_v11, %v968_v47  ;;  %5698 = vmatpush1.msk.msra.mxu1 %vm4558_vm8, %v9151_v22  ;;  %v1016_v56 = vrot.slane %v1012_v4, 4  ;;  %vm4549_vm1 = vcmp.eq.s32.totalorder %v6357_v14, %v7341_v36  ;;  %vm1217_vm8 = vcmp.eq.s32.totalorder %v6291_v52, %v7451_v29  ;;  %v9259_v4 = vld [vmem:[#allocation27_spill] sm:$0xff] }
 0x20e   : > { %5699 = vmatprep.subr.msk.mxu1 %vm4557_vm2, %v9151_v22  ;;  %v1019_v28 = vadd.f32 %v1015_v61, %v990_v54  ;;  %vm1220_vm11 = vcmp.eq.s32.totalorder %v6277_v15, %v7457_v5  ;;  %vm1218_vm15 = vcmp.eq.s32.totalorder %v6283_v18, %v7457_v5  ;;  %vm4548_vm2 = vcmp.eq.s32.totalorder %v6357_v14, %v7351_v6 }
 0x20f   : > { %5700 = vmatpush1.msk.msra.mxu1 %vm4556_vm3, %v9151_v22  ;;  %v1020_v43 = vadd.f32 %v1016_v56, %v991_v60  ;;  %vm1216_vm3 = vcmp.eq.s32.totalorder %v6291_v52, %v7457_v5  ;;  %v1600_v33 = vadd.s32 1, %v9255_v62  ;;  %v1599_v11 = vadd.s32 1, %v9256_v8 }
 0x210   : > { %5701 = vmatprep.subr.msk.mxu1 %vm4555_vm5, %v9151_v22  ;;  %vm4547_vm5 = vcmp.eq.s32.totalorder %v6366_v24, %v7341_v36  ;;  %v1646_v54 = vmul.f32 %v9259_v4, %v7047_v50  ;;  %v1634_v56 = vmul.f32 %v7047_v50, %v6785_v12  ;;  %v1650_v12 = vmul.f32 %v6788_v10, %v7047_v50 }
 0x211   : > { %5702 = vmatpush1.msk.msra.mxu1 %vm4554_vm7, %v9151_v22  ;;  %5186 = vmatprep.subr.msk.mxu0 %vm452_vm0, %v1020_v43  ;;  %vm1215_vm7 = vcmp.eq.s32.totalorder %v6303_v27, %v7451_v29 }
 0x212   : > { %5703 = vmatprep.subr.msk.mxu1 %vm4553_vm6, %v9151_v22  ;;  %5187 = vmatpush1.msk.msra.mxu0 %vm452_vm0, %v1019_v28  ;;  %vm4546_vm6 = vcmp.eq.s32.totalorder %v6366_v24, %v7351_v6  ;;  %v9264_v28 = vld [vmem:[#allocation28_spill] sm:$0xff] }
 0x213   : > { %5704 = vmatpush1.msk.msra.mxu1 %vm4552_vm9, %v9151_v22  ;;  %5188 = vmatmul.mubr.msk.f32.vlgmr.msra.gmra.mxu0 %vm1022_vm4, %v1021_v17  ;;  %vm1214_vm9 = vcmp.eq.s32.totalorder %v6303_v27, %v7457_v5  ;;  %v1654_v17 = vmul.f32 %v9264_v28, %v7047_v50 }
 0x214   : > { %5192 = vmatprep.subr.msk.mxu0 %vm1221_vm10, %v9151_v22  ;;  %5705 = vmatprep.subr.msk.mxu1 %vm4551_vm12, %v9151_v22  ;;  %vm4545_vm10 = vcmp.eq.s32.totalorder %v6375_v32, %v7341_v36  ;;  %vm4544_vm12 = vcmp.eq.s32.totalorder %v6375_v32, %v7351_v6 }
 0x215   : > { %5193 = vmatpush1.msk.msra.mxu0 %vm1220_vm11, %v9151_v22  ;;  %5706 = vmatpush1.msk.msra.mxu1 %vm4550_vm14, %v9151_v22  ;;  %vm1213_vm11 = vcmp.eq.s32.totalorder %v6312_v31, %v7451_v29  ;;  %vm4543_vm14 = vcmp.eq.s32.totalorder %v6384_v44, %v7341_v36 }
 0x216   : > { %5194 = vmatprep.subr.msk.mxu0 %vm1219_vm13, %v9151_v22  ;;  %5707 = vmatprep.subr.msk.mxu1 %vm4549_vm1, %v9151_v22  ;;  %vm1212_vm13 = vcmp.eq.s32.totalorder %v6312_v31, %v7457_v5  ;;  %vm4542_vm1 = vcmp.eq.s32.totalorder %v6384_v44, %v7351_v6 }
 0x217   : > { %5195 = vmatpush1.msk.msra.mxu0 %vm1218_vm15, %v9151_v22  ;;  %5708 = vmatpush1.msk.msra.mxu1 %vm4548_vm2, %v9151_v22  ;;  %vm1211_vm15 = vcmp.eq.s32.totalorder %v6321_v34, %v7451_v29  ;;  %vm4541_vm2 = vcmp.eq.s32.totalorder %v6395_v51, %v7341_v36 }
 0x218   : > { %5196 = vmatprep.subr.msk.mxu0 %vm1217_vm8, %v9151_v22  ;;  %5709 = vmatprep.subr.msk.mxu1 %vm4547_vm5, %v9151_v22  ;;  %vm1210_vm8 = vcmp.eq.s32.totalorder %v6321_v34, %v7457_v5  ;;  %vm4540_vm5 = vcmp.eq.s32.totalorder %v6395_v51, %v7351_v6 }
 0x219   : > { %5197 = vmatpush1.msk.msra.mxu0 %vm1216_vm3, %v9151_v22  ;;  %5710 = vmatpush1.msk.msra.mxu1 %vm4546_vm6, %v9151_v22  ;;  %vm1209_vm3 = vcmp.eq.s32.totalorder %v6330_v48, %v7451_v29  ;;  %vm4539_vm6 = vcmp.eq.s32.totalorder %v6408_v7, %v7341_v36 }
 0x21a   : > { %5198 = vmatprep.subr.msk.mxu0 %vm1215_vm7, %v9151_v22  ;;  %5711 = vmatprep.subr.msk.mxu1 %vm4545_vm10, %v9151_v22  ;;  %vm1208_vm7 = vcmp.eq.s32.totalorder %v6330_v48, %v7457_v5  ;;  %vm4538_vm10 = vcmp.eq.s32.totalorder %v6408_v7, %v7351_v6 }
 0x21b   : > { %5199 = vmatpush1.msk.msra.mxu0 %vm1214_vm9, %v9151_v22  ;;  %5712 = vmatpush1.msk.msra.mxu1 %vm4544_vm12, %v9151_v22  ;;  %vm1207_vm9 = vcmp.eq.s32.totalorder %v6339_v53, %v7451_v29  ;;  %vm4537_vm12 = vcmp.eq.s32.totalorder %v6121_v25, %v7341_v36 }
 0x21c   : > { %5200 = vmatprep.subr.msk.mxu0 %vm1213_vm11, %v9151_v22  ;;  %5713 = vmatprep.subr.msk.mxu1 %vm4543_vm14, %v9151_v22  ;;  %vm1206_vm11 = vcmp.eq.s32.totalorder %v6339_v53, %v7457_v5  ;;  %vm4536_vm14 = vcmp.eq.s32.totalorder %v6121_v25, %v7351_v6 }
 0x21d   : > { %5201 = vmatpush1.msk.msra.mxu0 %vm1212_vm13, %v9151_v22  ;;  %5714 = vmatpush1.msk.msra.mxu1 %vm4542_vm1, %v9151_v22  ;;  %vm1205_vm13 = vcmp.eq.s32.totalorder %v6348_v55, %v7451_v29  ;;  %vm4599_vm1 = vcmp.eq.s32.totalorder %v6423_v0, %v7341_v36 }
 0x21e   : > { %5202 = vmatprep.subr.msk.mxu0 %vm1211_vm15, %v9151_v22  ;;  %5715 = vmatprep.subr.msk.mxu1 %vm4541_vm2, %v9151_v22  ;;  %vm1204_vm15 = vcmp.eq.s32.totalorder %v6348_v55, %v7457_v5  ;;  %vm4598_vm2 = vcmp.eq.s32.totalorder %v6423_v0, %v7351_v6 }
 0x21f   : > { %5203 = vmatpush1.msk.msra.mxu0 %vm1210_vm8, %v9151_v22  ;;  %5716 = vmatpush1.msk.msra.mxu1 %vm4540_vm5, %v9151_v22  ;;  %vm1203_vm8 = vcmp.eq.s32.totalorder %v6357_v14, %v7451_v29  ;;  %vm4597_vm5 = vcmp.eq.s32.totalorder %v6432_v2, %v7341_v36 }
 0x220   : > { %5204 = vmatprep.subr.msk.mxu0 %vm1209_vm3, %v9151_v22  ;;  %5717 = vmatprep.subr.msk.mxu1 %vm4539_vm6, %v9151_v22  ;;  %vm1202_vm3 = vcmp.eq.s32.totalorder %v6357_v14, %v7457_v5  ;;  %vm4596_vm6 = vcmp.eq.s32.totalorder %v6432_v2, %v7351_v6 }
 0x221   : > { %5205 = vmatpush1.msk.msra.mxu0 %vm1208_vm7, %v9151_v22  ;;  %5718 = vmatpush1.msk.msra.mxu1 %vm4538_vm10, %v9151_v22  ;;  %vm1201_vm7 = vcmp.eq.s32.totalorder %v6366_v24, %v7451_v29  ;;  %vm4595_vm10 = vcmp.eq.s32.totalorder %v6441_v1, %v7341_v36 }
 0x222   : > { %5206 = vmatprep.subr.msk.mxu0 %vm1207_vm9, %v9151_v22  ;;  %5719 = vmatprep.subr.msk.mxu1 %vm4537_vm12, %v9151_v22  ;;  %vm1200_vm9 = vcmp.eq.s32.totalorder %v6366_v24, %v7457_v5  ;;  %vm4594_vm12 = vcmp.eq.s32.totalorder %v6441_v1, %v7351_v6 }
 0x223   : > { %5207 = vmatpush1.msk.msra.mxu0 %vm1206_vm11, %v9151_v22  ;;  %5720 = vmatpush1.msk.msra.mxu1 %vm4536_vm14, %v9151_v22  ;;  %vm1199_vm11 = vcmp.eq.s32.totalorder %v6375_v32, %v7451_v29  ;;  %vm4593_vm14 = vcmp.eq.s32.totalorder %v6454_v26, %v7341_v36 }
 0x224   : > { %5208 = vmatprep.subr.msk.mxu0 %vm1205_vm13, %v9151_v22  ;;  %5721 = vmatprep.subr.msk.mxu1 %vm4599_vm1, %v9151_v22  ;;  %vm1198_vm13 = vcmp.eq.s32.totalorder %v6375_v32, %v7457_v5  ;;  %vm4592_vm1 = vcmp.eq.s32.totalorder %v6454_v26, %v7351_v6 }
 0x225   : > { %5209 = vmatpush1.msk.msra.mxu0 %vm1204_vm15, %v9151_v22  ;;  %5722 = vmatpush2.msk.msra.mxu1 %vm4598_vm2, %v9151_v22  ;;  %vm1197_vm15 = vcmp.eq.s32.totalorder %v6384_v44, %v7451_v29  ;;  %vm1611_vm2 = vcmp.lt.s32.totalorder %v1600_v33, 16 }
 0x226   : > { %5210 = vmatprep.subr.msk.mxu0 %vm1203_vm8, %v9151_v22  ;;  %5723 = vmatprep.subr.msk.mxu1 %vm4597_vm5, %v9151_v22  ;;  %vm1610_vm8 = vcmp.ge.s32.totalorder %v1600_v33, 0  ;;  %vm4591_vm5 = vcmp.eq.s32.totalorder %v6463_v49, %v7341_v36 }
 0x227   : > { %5211 = vmatpush1.msk.msra.mxu0 %vm1202_vm3, %v9151_v22  ;;  %5724 = vmatpush2.msk.msra.mxu1 %vm4596_vm6, %v9151_v22  ;;  %vm1196_vm3 = vcmp.eq.s32.totalorder %v6384_v44, %v7457_v5  ;;  %vm1608_vm6 = vcmp.lt.s32.totalorder %v9255_v62, 16 }
 0x228   : > { %5212 = vmatprep.subr.msk.mxu0 %vm1201_vm7, %v9151_v22  ;;  %5725 = vmatprep.subr.msk.mxu1 %vm4595_vm10, %v9151_v22  ;;  %vm1607_vm7 = vcmp.ge.s32.totalorder %v9255_v62, 0  ;;  %vm4590_vm10 = vcmp.eq.s32.totalorder %v6463_v49, %v7351_v6 }
 0x229   : > { %5213 = vmatpush1.msk.msra.mxu0 %vm1200_vm9, %v9151_v22  ;;  %5726 = vmatpush2.msk.msra.mxu1 %vm4594_vm12, %v9151_v22  ;;  %vm1195_vm9 = vcmp.eq.s32.totalorder %v6395_v51, %v7451_v29  ;;  %vm4589_vm12 = vcmp.eq.s32.totalorder %v6476_v59, %v7341_v36 }
 0x22a   : > { %5214 = vmatprep.subr.msk.mxu0 %vm1199_vm11, %v9151_v22  ;;  %5727 = vmatprep.subr.msk.mxu1 %vm4593_vm14, %v9151_v22  ;;  %vm1194_vm11 = vcmp.eq.s32.totalorder %v6395_v51, %v7457_v5  ;;  %vm1193_vm14 = vcmp.eq.s32.totalorder %v6408_v7, %v7451_v29 }
 0x22b   : > { %5215 = vmatpush1.msk.msra.mxu0 %vm1198_vm13, %v9151_v22  ;;  %5728 = vmatpush2.msk.msra.mxu1 %vm4592_vm1, %v9151_v22  ;;  %vm1612_vm13 = vmand %vm1610_vm8, %vm1611_vm2  ;;  %vm1192_vm8 = vcmp.eq.s32.totalorder %v6408_v7, %v7457_v5  ;;  %vm4587_vm2 = vcmp.eq.s32.totalorder %v6485_v63, %v7341_v36 }
 0x22c   : > { %5216 = vmatprep.subr.msk.mxu0 %vm1197_vm15, %v9151_v22  ;;  %5729 = vmatprep.subr.msk.mxu1 %vm4591_vm5, %v9151_v22  ;;  %vm4588_vm15 = vcmp.eq.s32.totalorder %v6476_v59, %v7351_v6  ;;  %vm1609_vm1 = vmand %vm1607_vm7, %vm1608_vm6  ;;  %vm4586_vm5 = vcmp.eq.s32.totalorder %v6485_v63, %v7351_v6  ;;  %v1636_v57 = vsel %vm1612_vm13, 1, %v9248_v16  ;;  %vm1190_vm7 = vcmp.eq.s32.totalorder %v6121_v25, %v7457_v5 }
 0x22d   : > { %5217 = vmatpush1.msk.msra.mxu0 %vm1196_vm3, %v9151_v22  ;;  %5730 = vmatpush2.msk.msra.mxu1 %vm4590_vm10, %v9151_v22  ;;  %vm1191_vm3 = vcmp.eq.s32.totalorder %v6121_v25, %v7451_v29  ;;  %vm4585_vm6 = vcmp.eq.s32.totalorder %v6496_v37, %v7341_v36  ;;  %v1615_v21 = vsel %vm1609_vm1, 1, %v9248_v16  ;;  %vm4584_vm10 = vcmp.eq.s32.totalorder %v6496_v37, %v7351_v6 }
 0x22e   : > { %5218 = vmatprep.subr.msk.mxu0 %vm1195_vm9, %v9151_v22  ;;  %5731 = vmatprep.subr.msk.mxu1 %vm4589_vm12, %v9151_v22  ;;  %vm1253_vm9 = vcmp.eq.s32.totalorder %v6423_v0, %v7451_v29  ;;  %vm4583_vm12 = vcmp.eq.s32.totalorder %v6505_v13, %v7341_v36  ;;  %v5261_v3 = vrot.slane %v1636_v57, 9  ;;  %vm1251_vm13 = vcmp.eq.s32.totalorder %v6432_v2, %v7451_v29 }
 0x22f   : > { %5219 = vmatpush1.msk.msra.mxu0 %vm1194_vm11, %v9151_v22  ;;  %5732 = vmatpush2.msk.msra.mxu1 %vm4588_vm15, %v9151_v22  ;;  %vm1252_vm11 = vcmp.eq.s32.totalorder %v6423_v0, %v7457_v5  ;;  %vm1601_vm15 = vcmp.ge.s32.totalorder %v9256_v8, 0  ;;  %v5260_v47 = vrot.slane %v1615_v21, 9  ;;  %vm1250_vm1 = vcmp.eq.s32.totalorder %v6432_v2, %v7457_v5 }
 0x230   : > { %5220 = vmatprep.subr.msk.mxu0 %vm1193_vm14, %v9151_v22  ;;  %5733 = vmatprep.subr.msk.mxu1 %vm4587_vm2, %v9151_v22  ;;  %vm4582_vm14 = vcmp.eq.s32.totalorder %v6505_v13, %v7351_v6  ;;  %vm1249_vm2 = vcmp.eq.s32.totalorder %v6441_v1, %v7451_v29 }
 0x231   : > { %5221 = vmatpush1.msk.msra.mxu0 %vm1192_vm8, %v9151_v22  ;;  %5734 = vmatpush2.msk.msra.mxu1 %vm4586_vm5, %v9151_v22  ;;  %vm4581_vm8 = vcmp.eq.s32.totalorder %v6514_v45, %v7341_v36  ;;  %vm1248_vm5 = vcmp.eq.s32.totalorder %v6441_v1, %v7457_v5 }
 0x232   : > { %5222 = vmatprep.subr.msk.mxu0 %vm1191_vm3, %v9151_v22  ;;  %5735 = vmatprep.subr.msk.mxu1 %vm4585_vm6, %v9151_v22  ;;  %vm4580_vm3 = vcmp.eq.s32.totalorder %v6514_v45, %v7351_v6  ;;  %vm1602_vm6 = vcmp.lt.s32.totalorder %v9256_v8, 16 }
 0x233   : > { %5223 = vmatpush1.msk.msra.mxu0 %vm1190_vm7, %v9151_v22  ;;  %5736 = vmatpush2.msk.msra.mxu1 %vm4584_vm10, %v9151_v22  ;;  %vm4579_vm7 = vcmp.eq.s32.totalorder %v6523_v42, %v7341_v36  ;;  %vm4578_vm10 = vcmp.eq.s32.totalorder %v6523_v42, %v7351_v6 }
 0x234   : > { %5224 = vmatprep.subr.msk.mxu0 %vm1253_vm9, %v9151_v22  ;;  %5737 = vmatprep.subr.msk.mxu1 %vm4583_vm12, %v9151_v22  ;;  %vm1247_vm9 = vcmp.eq.s32.totalorder %v6454_v26, %v7451_v29  ;;  %vm1246_vm12 = vcmp.eq.s32.totalorder %v6454_v26, %v7457_v5 }
 0x235   : > { %5225 = vmatpush2.msk.msra.mxu0 %vm1252_vm11, %v9151_v22  ;;  %5738 = vmatpush2.msk.msra.mxu1 %vm4582_vm14, %v9151_v22  ;;  %vm7714_vm11 = vcmp.ne.s32.totalorder %v5261_v3, 0  ;;  %vm1245_vm14 = vcmp.eq.s32.totalorder %v6463_v49, %v7451_v29 }
 0x236   : > { %5226 = vmatprep.subr.msk.mxu0 %vm1251_vm13, %v9151_v22  ;;  %5739 = vmatprep.subr.msk.mxu1 %vm4581_vm8, %v9151_v22  ;;  %vm4577_vm13 = vcmp.eq.s32.totalorder %v6532_v40, %v7341_v36  ;;  %vm4576_vm8 = vcmp.eq.s32.totalorder %v6532_v40, %v7351_v6 }
 0x237   : > { %5227 = vmatpush2.msk.msra.mxu0 %vm1250_vm1, %v9151_v22  ;;  %5740 = vmatpush2.msk.msra.mxu1 %vm4580_vm3, %v9151_v22  ;;  %vm7728_vm1 = vcmp.ne.s32.totalorder %v5260_v47, 0  ;;  %vm1604_vm3 = vcmp.ge.s32.totalorder %v1599_v11, 0 }
 0x238   : > { %5228 = vmatprep.subr.msk.mxu0 %vm1249_vm2, %v9151_v22  ;;  %5741 = vmatprep.subr.msk.mxu1 %vm4579_vm7, %v9151_v22  ;;  %vm7740_vm2 = vmand %vm1601_vm15, %vm1602_vm6  ;;  %vm1244_vm7 = vcmp.eq.s32.totalorder %v6463_v49, %v7457_v5  ;;  %vm1243_vm6 = vcmp.eq.s32.totalorder %v6476_v59, %v7451_v29 }
 0x239   : > { %5229 = vmatpush2.msk.msra.mxu0 %vm1248_vm5, %v9151_v22  ;;  %5742 = vmatpush2.msk.msra.mxu1 %vm4578_vm10, %v9151_v22  ;;  %vm1605_vm5 = vcmp.lt.s32.totalorder %v1599_v11, 16  ;;  %vm1640_vm15 = vmand %vm7740_vm2, %vm7714_vm11  ;;  %vm4574_vm10 = vcmp.eq.s32.totalorder %v6541_v23, %v7351_v6 }
 0x23a   : > { %5230 = vmatprep.subr.msk.mxu0 %vm1247_vm9, %v9151_v22  ;;  %5743 = vmatprep.subr.msk.mxu1 %vm4577_vm13, %v9151_v22  ;;  %vm4575_vm9 = vcmp.eq.s32.totalorder %v6541_v23, %v7341_v36  ;;  %v1647_v43 = vsel %vm1640_vm15, %v1646_v54, 0.0  ;;  %vm1242_vm13 = vcmp.eq.s32.totalorder %v6476_v59, %v7457_v5  ;;  %vm4571_vm15 = vcmp.eq.s32.totalorder %v6560_v20, %v7341_v36 }
 0x23b   : > { %5231 = vmatpush2.msk.msra.mxu0 %vm1246_vm12, %v9151_v22  ;;  %5744 = vmatpush2.msk.msra.mxu1 %vm4576_vm8, %v9151_v22  ;;  %vm1619_vm12 = vmand %vm7740_vm2, %vm7728_vm1  ;;  %vm1241_vm8 = vcmp.eq.s32.totalorder %v6485_v63, %v7451_v29  ;;  %v1909_v33 = vrot.slane %v1647_v43, %v6238_v38  ;;  %v1913_v8 = vrot.slane %v1647_v43, %v6243_v41 }
 0x23c   : > { %5232 = vmatprep.subr.msk.mxu0 %vm1245_vm14, %v9151_v22  ;;  %5745 = vmatprep.subr.msk.mxu1 %vm4575_vm9, %v9151_v22  ;;  %vm4573_vm14 = vcmp.eq.s32.totalorder %v6550_v9, %v7341_v36  ;;  %vm7780_vm2 = vmand %vm1604_vm3, %vm1605_vm5  ;;  %vm1240_vm9 = vcmp.eq.s32.totalorder %v6485_v63, %v7457_v5  ;;  %v1635_v62 = vsel %vm1619_vm12, %v1634_v56, 0.0  ;;  %vm1239_vm5 = vcmp.eq.s32.totalorder %v6496_v37, %v7451_v29 }
 0x23d   : > { %5233 = vmatpush2.msk.msra.mxu0 %vm1244_vm7, %v9151_v22  ;;  %5746 = vmatpush2.msk.msra.mxu1 %vm4574_vm10, %v9151_v22  ;;  %vm4572_vm7 = vcmp.eq.s32.totalorder %v6550_v9, %v7351_v6  ;;  %vm1648_vm3 = vmand %vm7780_vm2, %vm7728_vm1  ;;  %vm1238_vm1 = vcmp.eq.s32.totalorder %v6496_v37, %v7457_v5  ;;  %vm4569_vm12 = vcmp.eq.s32.totalorder %v6572_v39, %v7341_v36 }
 0x23e   : > { %5234 = vmatprep.subr.msk.mxu0 %vm1243_vm6, %v9151_v22  ;;  %5747 = vmatprep.subr.msk.mxu1 %vm4573_vm14, %v9151_v22  ;;  %vm4570_vm6 = vcmp.eq.s32.totalorder %v6560_v20, %v7351_v6  ;;  %v1651_v57 = vsel %vm1648_vm3, %v1650_v12, 0.0  ;;  %vm1652_vm10 = vmand %vm7780_vm2, %vm7714_vm11  ;;  %vm4568_vm11 = vcmp.eq.s32.totalorder %v6572_v39, %v7351_v6  ;;  %v1888_v3 = vrot.slane %v1635_v62, %v6238_v38 }
 0x23f   : > { %5235 = vmatpush2.msk.msra.mxu0 %vm1242_vm13, %v9151_v22  ;;  %5748 = vmatpush2.msk.msra.mxu1 %vm4572_vm7, %v9151_v22  ;;  %vm1237_vm13 = vcmp.eq.s32.totalorder %v6505_v13, %v7451_v29  ;;  %v1655_v21 = vsel %vm1652_vm10, %v1654_v17, 0.0  ;;  %vm1236_vm14 = vcmp.eq.s32.totalorder %v6505_v13, %v7457_v5  ;;  %v1892_v36 = vrot.slane %v1635_v62, %v6243_v41 }
 0x240   : > { %5236 = vmatprep.subr.msk.mxu0 %vm1241_vm8, %v9151_v22  ;;  %5749 = vmatprep.subr.msk.mxu1 %vm4571_vm15, %v9151_v22  ;;  %v1938_v47 = vrot.slane %v1651_v57, %v6238_v38  ;;  %v1919_v11 = vrot.slane %v1909_v33, %v6238_v38  ;;  %vm1235_vm8 = vcmp.eq.s32.totalorder %v6514_v45, %v7451_v29 }
 0x241   : > { %5237 = vmatpush2.msk.msra.mxu0 %vm1240_vm9, %v9151_v22  ;;  %5750 = vmatpush2.msk.msra.mxu1 %vm4570_vm6, %v9151_v22  ;;  %v1961_v35 = vrot.slane %v1655_v21, %v6238_v38  ;;  %vm1234_vm2 = vcmp.eq.s32.totalorder %v6514_v45, %v7457_v5  ;;  %vm1233_vm7 = vcmp.eq.s32.totalorder %v6523_v42, %v7451_v29 }
 0x242   : > { %5238 = vmatprep.subr.msk.mxu0 %vm1239_vm5, %v9151_v22  ;;  %5751 = vmatprep.subr.msk.mxu1 %vm4569_vm12, %v9151_v22  ;;  %v1942_v4 = vrot.slane %v1651_v57, %v6243_v41  ;;  %v1898_v54 = vrot.slane %v1888_v3, %v6238_v38  ;;  %v1923_v60 = vrot.slane %v1913_v8, %v6238_v38  ;;  %v7873_v57 = vld [vmem:[%s6114_s23 + $0x8] sm:$0xff] }
 0x243   : > { %5239 = vmatpush2.msk.msra.mxu0 %vm1238_vm1, %v9151_v22  ;;  %5752 = vmatpush2.msk.msra.mxu1 %vm4568_vm11, %v9151_v22  ;;  %v1902_v12 = vrot.slane %v1892_v36, %v6238_v38  ;;  %v1948_v43 = vrot.slane %v1938_v47, %v6238_v38  ;;  %v1965_v28 = vrot.slane %v1655_v21, %v6243_v41 }
 0x244   : > { %5240 = vmatprep.subr.msk.mxu0 %vm1237_vm13, %v9151_v22  ;;  %v1873_v6 = vpop.f32.mrf.mxu1  ;;  %4729 = vmatmul.mubr.f32.vlgmr.msra.gmra.mxu1 %v7388_v30  ;;  %v1971_v33 = vrot.slane %v1961_v35, %v6238_v38  ;;  %vm1232_vm9 = vcmp.eq.s32.totalorder %v6523_v42, %v7457_v5  ;;  %vm1231_vm15 = vcmp.eq.s32.totalorder %v6532_v40, %v7451_v29 }
 0x245   : > { %5241 = vmatpush2.msk.msra.mxu0 %vm1236_vm14, %v9151_v22  ;;  %v1924_v61 = vmul.f32 %v1919_v11, %v1873_v6  ;;  %4734 = vmatprep.mubr.f32.mxu1 %v7399_v46  ;;  %v1903_v17 = vmul.f32 %v1898_v54, %v1873_v6  ;;  %v1952_v8 = vrot.slane %v1942_v4, %v6238_v38 }
 0x246   : > { %5242 = vmatprep.subr.msk.mxu0 %vm1235_vm8, %v9151_v22  ;;  %v1875_v56 = vpop.f32.mrf.mxu1  ;;  %1382 = vmatprep.mubr.f32.mxu0 %v7873_v57  ;;  %vm1230_vm3 = vcmp.eq.s32.totalorder %v6532_v40, %v7457_v5  ;;  %v1975_v54 = vrot.slane %v1965_v28, %v6238_v38  ;;  %vm1229_vm5 = vcmp.eq.s32.totalorder %v6541_v23, %v7451_v29 }
 0x247   : > { %v1928_v10 = vrot.slane %v1924_v61, 4  ;;  %5243 = vmatpush2.msk.msra.mxu0 %vm1234_vm2, %v9151_v22  ;;  %v1925_v62 = vmul.f32 %v1923_v60, %v1875_v56  ;;  %v1904_v3 = vmul.f32 %v1902_v12, %v1875_v56  ;;  %v9267_v12 = vmov 0.0  }
 0x248   : > { %5244 = vmatprep.subr.msk.mxu0 %vm1233_vm7, %v9151_v22  ;;  %v1879_v21 = vpop.f32.mrf.mxu1  ;;  %4735 = vmatmul.mubr.f32.gmra.mxu1 %v7418_v19  ;;  %vm1228_vm6 = vcmp.eq.s32.totalorder %v6541_v23, %v7457_v5  ;;  %vm1227_vm10 = vcmp.eq.s32.totalorder %v6550_v9, %v7451_v29  ;;  %vm1226_vm1 = vcmp.eq.s32.totalorder %v6550_v9, %v7457_v5 }
 0x249   : > { %v1932_v36 = vadd.f32 %v1928_v10, %v1903_v17  ;;  %v1929_v47 = vrot.slane %v1925_v62, 4  ;;  %5245 = vmatpush2.msk.msra.mxu0 %vm1232_vm9, %v9151_v22  ;;  %v1953_v11 = vmul.f32 %v1948_v43, %v1879_v21  ;;  %v1976_v35 = vmul.f32 %v1971_v33, %v1879_v21  ;;  %4918 = vmatprep.mubr.f32.mxu1 %v9267_v12  ;;  %v9268_v33 = vld [vmem:[#allocation26_spill] sm:$0xff] }
 0x24a   : > { %5246 = vmatprep.subr.msk.mxu0 %vm1231_vm15, %v9151_v22  ;;  %v1881_v6 = vpop.f32.mrf.mxu1  ;;  %vm1225_vm12 = vcmp.eq.s32.totalorder %v6560_v20, %v7451_v29  ;;  %vm1224_vm13 = vcmp.eq.s32.totalorder %v6560_v20, %v7457_v5  ;;  %vm1223_vm11 = vcmp.eq.s32.totalorder %v6572_v39, %v7451_v29  ;;  %vm1222_vm14 = vcmp.eq.s32.totalorder %v6572_v39, %v7457_v5  ;;  %v9269_v29 = vld [vmem:[#allocation12_spill] sm:$0xff] }
 0x24b   : > { %v1933_v4 = vadd.f32 %v1929_v47, %v1904_v3  ;;  %v1955_v61 = vadd.f32 %v1953_v11, %v1932_v36  ;;  %v1980_v60 = vrot.slane %v1976_v35, 4  ;;  %5247 = vmatpush2.msk.msra.mxu0 %vm1230_vm3, %v9151_v22  ;;  %v1954_v56 = vmul.f32 %v1952_v8, %v1881_v6 }
 0x24c   : > { %v1977_v43 = vmul.f32 %v1975_v54, %v1881_v6  ;;  %5248 = vmatprep.subr.msk.mxu0 %vm1229_vm5, %v9151_v22  ;;  %v2560_v3 = vadd.s32 1, %v9268_v33  ;;  %vm2561_vm8 = vcmp.ge.s32.totalorder %v9268_v33, 0  ;;  %vm2562_vm2 = vcmp.lt.s32.totalorder %v9268_v33, 16  ;;  %v543_v33 = vpop.f32.mrf.mxu0 }
 0x24d   : > { %v7898_v17 = vadd.f32 %v1980_v60, %v1955_v61  ;;  %v1956_v28 = vadd.f32 %v1954_v56, %v1933_v4  ;;  %5249 = vmatpush2.msk.msra.mxu0 %vm1228_vm6, %v9151_v22  ;;  %v2567_v21 = vsub.f32 1.0, %v9269_v29  ;;  %vm7929_vm15 = vmand %vm2561_vm8, %vm2562_vm2 }
 0x24e   : > { %v1981_v10 = vrot.slane %v1977_v43, 4  ;;  %5250 = vmatprep.subr.msk.mxu0 %vm1227_vm10, %v9151_v22  ;;  %vm2564_vm7 = vcmp.ge.s32.totalorder %v2560_v3, 0  ;;  %vm2565_vm9 = vcmp.lt.s32.totalorder %v2560_v3, 16  ;;  %v2568_v8 = vsel %vm7929_vm15, 1, %v9248_v16 }
 0x24f   : > { %5251 = vmatpush2.msk.msra.mxu0 %vm1226_vm1, %v9151_v22  ;;  %vm7933_vm3 = vmand %vm2564_vm7, %vm2565_vm9  ;;  %v5402_v35 = vrot.slane %v2568_v8, 9  ;;  %v437_v8 = vpop.permute.xlu1 %436 }
 0x250   : > { %v7909_v62 = vadd.f32 %v1981_v10, %v1956_v28  ;;  %5252 = vmatprep.subr.msk.mxu0 %vm1225_vm12, %v9151_v22  ;;  %v2582_v36 = vsel %vm7933_vm3, 1, %v9248_v16 }
 0x251   : > { %5253 = vmatpush2.msk.msra.mxu0 %vm1224_vm13, %v9151_v22  ;;  %v5403_v6 = vrot.slane %v2582_v36, 9  ;;  %vm7944_vm5 = vcmp.ne.s32.totalorder %v5402_v35, 0 }
 0x252   : > { %5254 = vmatprep.subr.msk.mxu0 %vm1223_vm11, %v9151_v22  ;;  %vm2572_vm10 = vmand %vm7929_vm15, %vm7944_vm5 }
 0x253   : > { %5255 = vmatpush2.msk.msra.mxu0 %vm1222_vm14, %v9151_v22  ;;  %vm7948_vm6 = vcmp.ne.s32.totalorder %v5403_v6, 0  ;;  %vm2594_vm12 = vmand %vm7933_vm3, %vm7944_vm5 }
 0x254   : > { %1383 = vmatmul.mubr.f32.vlgmr.msra.gmra.mxu0 %v7388_v30  ;;  %vm2586_vm1 = vmand %vm7929_vm15, %vm7948_vm6 }
 0x255   : > { %1388 = vmatprep.mubr.f32.mxu0 %v7399_v46  ;;  %v2588_v46 = vrot.slane %v9269_v29, 7  ;;  %vm2598_vm13 = vmand %vm7933_vm3, %vm7948_vm6 }
 0x257   : > { %v2589_v11 = vrot.slane %v2588_v46, 2 }
 0x258   : > { %1389 = vmatmul.mubr.f32.gmra.mxu0 %v7418_v19  ;;  %v2574_v19 = vrot.slane %v2567_v21, 7 }
 0x259   : > { %1572 = vmatprep.mubr.f32.mxu0 %v9267_v12  ;;  %v2591_v4 = vmul.f32 %v2589_v11, %v2567_v21  ;;  %v2599_v10 = vmul.f32 %v2589_v11, %v9269_v29  ;;  %v544_v11 = vadd.f32 %v543_v33, %v437_v8 }
 0x25a   : > { %v2575_v47 = vrot.slane %v2574_v19, 2 }
 0x25b   : > { %v2592_v28 = vmul.f32 %v2591_v4, %v7066_v58  ;;  %v2600_v46 = vmul.f32 %v2599_v10, %v7066_v58 }
 0x25c   : > { %v2577_v54 = vmul.f32 %v2575_v47, %v2567_v21  ;;  %v2595_v56 = vmul.f32 %v2575_v47, %v9269_v29  ;;  %v545_v29 = vpop.f32.mrf.mxu0 }
 0x25d   : > { %v2593_v19 = vsel %vm2586_vm1, %v2592_v28, 0.0  ;;  %v2601_v35 = vsel %vm2598_vm13, %v2600_v46, 0.0  ;;  %v546_v4 = vadd.f32 %v545_v29, %v437_v8 }
 0x25e   : > { %v2580_v43 = vmul.f32 %v7066_v58, %v2577_v54  ;;  %v2596_v3 = vmul.f32 %v2595_v56, %v7066_v58  ;;  %v2855_v36 = vrot.slane %v2593_v19, %v6238_v38  ;;  %v2859_v54 = vrot.slane %v2593_v19, %v6243_v41 }
 0x25f   : > { %v2907_v60 = vrot.slane %v2601_v35, %v6238_v38  ;;  %v550_v56 = vsub.f32 0.0, %v544_v11  ;;  %v551_v19 = vsub.f32 0.0, %v546_v4  ;;  %v2911_v29 = vrot.slane %v2601_v35, %v6243_v41 }
 0x260   : > { %v2581_v21 = vsel %vm2572_vm10, %v2580_v43, 0.0  ;;  %v2597_v47 = vsel %vm2594_vm12, %v2596_v3, 0.0  ;;  %v2865_v30 = vrot.slane %v2855_v36, %v6238_v38 }
 0x261   : > { %v2834_v5 = vrot.slane %v2581_v21, %v6238_v38  ;;  %v2838_v6 = vrot.slane %v2581_v21, %v6243_v41  ;;  %v2884_v58 = vrot.slane %v2597_v47, %v6238_v38  ;;  %v2888_v28 = vrot.slane %v2597_v47, %v6243_v41 }
 0x262   : > { %v2869_v21 = vrot.slane %v2859_v54, %v6238_v38  ;;  %v2917_v11 = vrot.slane %v2907_v60, %v6238_v38  ;;  %v556_v50 = vmul.f32 1.442695, %v550_v56  ;;  %v558_v54 = vmul.f32 1.442695, %v551_v19 }
 0x263   : > { %v2844_v61 = vrot.slane %v2834_v5, %v6238_v38  ;;  %v2848_v3 = vrot.slane %v2838_v6, %v6238_v38  ;;  %v2894_v8 = vrot.slane %v2884_v58, %v6238_v38  ;;  %v2898_v47 = vrot.slane %v2888_v28, %v6238_v38 }
 0x264   : > { %v2921_v20 = vrot.slane %v2911_v29, %v6238_v38  ;;  %5865 = vpow2.f32 %v556_v50  ;;  %v9281_v29 = vld [vmem:[#allocation33_spill] sm:$0xff] }
 0x265   : > { %5867 = vpow2.f32 %v558_v54  ;;  %vm3510_vm15 = vcmp.ge.s32.totalorder %v9281_v29, 0  ;;  %vm3511_vm3 = vcmp.lt.s32.totalorder %v9281_v29, 16 }
 0x266   : > { %vm3512_vm10 = vmand %vm3510_vm15, %vm3511_vm3 }
 0x284   : > { %v2819_v43 = vpop.f32.mrf.mxu1 }
 0x285   : > { %v2849_v10 = vmul.f32 %v2844_v61, %v2819_v43  ;;  %v2870_v33 = vmul.f32 %v2865_v30, %v2819_v43 }
 0x286   : > { %v2821_v46 = vpop.f32.mrf.mxu1 }
 0x287   : > { %v2874_v5 = vrot.slane %v2870_v33, 4  ;;  %v2850_v36 = vmul.f32 %v2848_v3, %v2821_v46  ;;  %v2871_v22 = vmul.f32 %v2869_v21, %v2821_v46  ;;  %v9280_v46 = vld [vmem:[#allocation34_spill] sm:$0xff] }
 0x288   : > { %v2825_v39 = vpop.f32.mrf.mxu1  ;;  %vm3516_vm11 = vcmp.ge.s32.totalorder %v9280_v46, 0  ;;  %vm3517_vm14 = vcmp.lt.s32.totalorder %v9280_v46, 16 }
 0x289   : > { %v2878_v61 = vadd.f32 %v2874_v5, %v2849_v10  ;;  %v2875_v30 = vrot.slane %v2871_v22, 4  ;;  %v2899_v6 = vmul.f32 %v2894_v8, %v2825_v39  ;;  %v2922_v43 = vmul.f32 %v2917_v11, %v2825_v39  ;;  %v5866_v22 = vpop.eup %5865  ;;  %vm3518_vm7 = vmand %vm3516_vm11, %vm3517_vm14 }
 0x28a   : > { %v2827_v4 = vpop.f32.mrf.mxu1  ;;  %v5868_v10 = vpop.eup %5867  ;;  %v562_v39 = vadd.f32 1.0, %v5866_v22  ;;  %v3509_v8 = vadd.s32 1, %v9280_v46  ;;  %v3524_v50 = vsel %vm3518_vm7, 1, %v9248_v16  ;;  %v3508_v5 = vadd.s32 1, %v9281_v29 }
 0x28b   : > { %v2879_v58 = vadd.f32 %v2875_v30, %v2850_v36  ;;  %v2901_v9 = vadd.f32 %v2899_v6, %v2878_v61  ;;  %v2926_v35 = vrot.slane %v2922_v43, 4  ;;  %v2900_v33 = vmul.f32 %v2898_v47, %v2827_v4  ;;  %v9282_v30 = vld [vmem:[#allocation5_spill] sm:$0xff] }
 0x28c   : > { %v2923_v3 = vmul.f32 %v2921_v20, %v2827_v4  ;;  %v563_v19 = vadd.f32 1.0, %v5868_v10  ;;  %5869 = vrcp.f32 %v562_v39  ;;  %vm3519_vm8 = vcmp.ge.s32.totalorder %v3509_v8, 0  ;;  %v9288_v4 = vld [vmem:[#allocation42_spill] sm:$0xff]  ;;  %v9291_v10 = vld [vmem:[#allocation41_spill] sm:$0xff] }
 0x28d   : > { %v7990_v21 = vadd.f32 %v2926_v35, %v2901_v9  ;;  %v2902_v60 = vadd.f32 %v2900_v33, %v2879_v58  ;;  %vm3520_vm2 = vcmp.lt.s32.totalorder %v3509_v8, 16  ;;  %v5544_v47 = vrot.slane %v3524_v50, 9  ;;  %v9289_v35 = vld [vmem:[#allocation43_spill] sm:$0xff] }
 0x28e   : > { %v2927_v56 = vrot.slane %v2923_v3, 4  ;;  %5871 = vrcp.f32 %v563_v19  ;;  %vm3521_vm9 = vmand %vm3519_vm8, %vm3520_vm2  ;;  %vm3513_vm5 = vcmp.ge.s32.totalorder %v3508_v5, 0  ;;  %vm3514_vm6 = vcmp.lt.s32.totalorder %v3508_v5, 16  ;;  %v9290_v3 = vld [vmem:[#allocation40_spill] sm:$0xff] }
 0x28f   : > { %9278 = vst [vmem:[#allocation20_spill] sm:$0xff] %v7990_v21  ;;  %v3547_v36 = vsel %vm3521_vm9, 1, %v9248_v16  ;;  %vm8005_vm1 = vcmp.ne.s32.totalorder %v5544_v47, 0  ;;  %vm8009_vm12 = vmand %vm3513_vm5, %vm3514_vm6 }
 0x290   : > { %v7992_v28 = vadd.f32 %v2927_v56, %v2902_v60  ;;  %v5545_v61 = vrot.slane %v3547_v36, 9  ;;  %vm3528_vm13 = vmand %vm3512_vm10, %vm8005_vm1 }
 0x291   : > { %vm3559_vm8 = vmand %vm8009_vm12, %vm8005_vm1 }
 0x292   : > { %9279 = vst [vmem:[#allocation19_spill] sm:$0xff] %v7992_v28  ;;  %vm3550_vm11 = vcmp.ne.s32.totalorder %v5545_v61, 0  ;;  %v9315_v28 = vld [vmem:[#allocation31_spill] sm:$0xff] }
 0x293   : > { %vm3551_vm14 = vmand %vm3512_vm10, %vm3550_vm11 }
 0x294   : > { %vm3563_vm2 = vmand %vm8009_vm12, %vm3550_vm11 }
 0x299   : > { %v5870_v9 = vpop.eup %5869 }
 0x29b   : > { %v5872_v20 = vpop.eup %5871 }
 0x29c   : > { %v3536_v11 = vcombine.low %v5870_v9, %v5872_v20 }
 0x29e   : > { %v8003_v6 = vrot.slane %v3536_v11, %v9282_v30 }
 0x2a0   : > { %9283 = vst [vmem:[#allocation27_spill] sm:$0xff] %v8003_v6  ;;  %v3545_v58 = vmul.f32 %v8003_v6, %v9288_v4  ;;  %v3557_v33 = vmul.f32 %v9289_v35, %v8003_v6  ;;  %v3561_v60 = vmul.f32 %v9290_v3, %v8003_v6  ;;  %v3565_v39 = vmul.f32 %v9291_v10, %v8003_v6 }
 0x2a2   : > { %v3546_v56 = vsel %vm3528_vm13, %v3545_v58, 0.0  ;;  %v3558_v22 = vsel %vm3551_vm14, %v3557_v33, 0.0  ;;  %v3562_v8 = vsel %vm3559_vm8, %v3561_v60, 0.0  ;;  %v3566_v9 = vsel %vm3563_vm2, %v3565_v39, 0.0 }
 0x2a3   : > { %v3799_v19 = vrot.slane %v3546_v56, %v6238_v38  ;;  %v3820_v46 = vrot.slane %v3558_v22, %v6238_v38  ;;  %v3803_v20 = vrot.slane %v3546_v56, %v6243_v41  ;;  %v3824_v50 = vrot.slane %v3558_v22, %v6243_v41 }
 0x2a4   : > { %v3849_v29 = vrot.slane %v3562_v8, %v6238_v38  ;;  %v3872_v11 = vrot.slane %v3566_v9, %v6238_v38  ;;  %v3853_v61 = vrot.slane %v3562_v8, %v6243_v41  ;;  %v3876_v33 = vrot.slane %v3566_v9, %v6243_v41 }
 0x2a5   : > { %v3809_v5 = vrot.slane %v3799_v19, %v6238_v38  ;;  %v3830_v36 = vrot.slane %v3820_v46, %v6238_v38  ;;  %v3813_v54 = vrot.slane %v3803_v20, %v6238_v38  ;;  %v3834_v4 = vrot.slane %v3824_v50, %v6238_v38 }
 0x2a6   : > { %v3859_v35 = vrot.slane %v3849_v29, %v6238_v38  ;;  %v3882_v22 = vrot.slane %v3872_v11, %v6238_v38  ;;  %v3863_v39 = vrot.slane %v3853_v61, %v6238_v38  ;;  %v3886_v50 = vrot.slane %v3876_v33, %v6238_v38 }
 0x2c4   : > { %v3784_v47 = vpop.f32.mrf.mxu1 }
 0x2c5   : > { %v3814_v30 = vmul.f32 %v3809_v5, %v3784_v47  ;;  %v3835_v43 = vmul.f32 %v3830_v36, %v3784_v47 }
 0x2c6   : > { %v3786_v58 = vpop.f32.mrf.mxu1 }
 0x2c7   : > { %v3839_v3 = vrot.slane %v3835_v43, 4  ;;  %v3815_v60 = vmul.f32 %v3813_v54, %v3786_v58  ;;  %v3836_v56 = vmul.f32 %v3834_v4, %v3786_v58  ;;  %v9294_v58 = vld [vmem:[#allocation44_spill] sm:$0xff] }
 0x2c8   : > { %v3790_v10 = vpop.f32.mrf.mxu1  ;;  %v4471_v61 = vadd.s32 1, %v9294_v58  ;;  %vm4472_vm7 = vcmp.ge.s32.totalorder %v9294_v58, 0  ;;  %vm4473_vm9 = vcmp.lt.s32.totalorder %v9294_v58, 16 }
 0x2c9   : > { %v3843_v19 = vadd.f32 %v3839_v3, %v3814_v30  ;;  %v3840_v46 = vrot.slane %v3836_v56, 4  ;;  %v3864_v8 = vmul.f32 %v3859_v35, %v3790_v10  ;;  %v3887_v5 = vmul.f32 %v3882_v22, %v3790_v10  ;;  %v9295_v30 = vld [vmem:[#allocation18_spill] sm:$0xff]  ;;  %vm8053_vm5 = vmand %vm4472_vm7, %vm4473_vm9 }
 0x2ca   : > { %v3792_v20 = vpop.f32.mrf.mxu1  ;;  %vm4475_vm15 = vcmp.ge.s32.totalorder %v4471_v61, 0  ;;  %vm4476_vm3 = vcmp.lt.s32.totalorder %v4471_v61, 16  ;;  %v4478_v35 = vsub.f32 1.0, %v9295_v30  ;;  %v9305_v61 = vld [vmem:[#allocation9_spill] sm:$0xff] }
 0x2cb   : > { %v3844_v36 = vadd.f32 %v3840_v46, %v3815_v60  ;;  %v3866_v47 = vadd.f32 %v3864_v8, %v3843_v19  ;;  %v3891_v29 = vrot.slane %v3887_v5, 4  ;;  %v3865_v21 = vmul.f32 %v3863_v39, %v3792_v20  ;;  %vm8057_vm6 = vmand %vm4475_vm15, %vm4476_vm3  ;;  %v9300_v5 = vld [vmem:[#allocation6_spill] sm:$0xff] }
 0x2cc   : > { %v3888_v9 = vmul.f32 %v3886_v50, %v3792_v20  ;;  %v4479_v60 = vsel %vm8053_vm5, 1, %v9248_v16  ;;  %v4485_v56 = vrot.slane %v4478_v35, 7  ;;  %v4493_v22 = vsel %vm8057_vm6, 1, %v9248_v16 }
 0x2cd   : > { %v8045_v43 = vadd.f32 %v3891_v29, %v3866_v47  ;;  %v3867_v54 = vadd.f32 %v3865_v21, %v3844_v36  ;;  %v4499_v21 = vrot.slane %v9295_v30, 7  ;;  %v5686_v10 = vrot.slane %v4479_v60, 9 }
 0x2ce   : > { %v3892_v4 = vrot.slane %v3888_v9, 4  ;;  %v4486_v19 = vrot.slane %v4485_v56, 2  ;;  %v5687_v46 = vrot.slane %v4493_v22, 9  ;;  %v4489_v8 = vcombine.high %v8003_v6, %v8003_v6 }
 0x2cf   : > { %9292 = vst [vmem:[#allocation28_spill] sm:$0xff] %v8045_v43  ;;  %v4500_v39 = vrot.slane %v4499_v21, 2  ;;  %v1117_v20 = vadd.s32 1, %v9300_v5  ;;  %vm8071_vm10 = vcmp.ne.s32.totalorder %v5686_v10, 0  ;;  %vm1124_vm12 = vcmp.ge.s32.totalorder %v9300_v5, 0 }
 0x2d0   : > { %v8047_v11 = vadd.f32 %v3892_v4, %v3867_v54  ;;  %v4488_v47 = vmul.f32 %v4486_v19, %v4478_v35  ;;  %vm8075_vm1 = vcmp.ne.s32.totalorder %v5687_v46, 0  ;;  %v4506_v54 = vmul.f32 %v4486_v19, %v9295_v30  ;;  %vm4483_vm11 = vmand %vm8053_vm5, %vm8071_vm10 }
 0x2d1   : > { %v4502_v36 = vmul.f32 %v4500_v39, %v4478_v35  ;;  %vm1125_vm13 = vcmp.lt.s32.totalorder %v9300_v5, 16  ;;  %v4510_v58 = vmul.f32 %v4500_v39, %v9295_v30  ;;  %vm1127_vm14 = vcmp.ge.s32.totalorder %v1117_v20, 0  ;;  %vm4497_vm2 = vmand %vm8053_vm5, %vm8075_vm1  ;;  %v9306_v30 = vld [vmem:[#allocation8_spill] sm:$0xff] }
 0x2d2   : > { %9293 = vst [vmem:[#allocation26_spill] sm:$0xff] %v8047_v11  ;;  %v4491_v4 = vmul.f32 %v4489_v8, %v4488_v47  ;;  %vm1128_vm8 = vcmp.lt.s32.totalorder %v1117_v20, 16  ;;  %v9160_v35 = vfloor.f32 %v9305_v61  ;;  %v4507_v21 = vmul.f32 %v4506_v54, %v4489_v8  ;;  %vm1126_vm7 = vmand %vm1124_vm12, %vm1125_vm13  ;;  %v9308_v20 = vld [vmem:[#allocation7_spill] sm:$0xff]  ;;  %v9316_v61 = vld [vmem:[#allocation29_spill] sm:$0xff] }
 0x2d3   : > { %v4503_v9 = vmul.f32 %v4502_v36, %v4489_v8  ;;  %v4511_v60 = vmul.f32 %v4510_v58, %v4489_v8  ;;  %vm1129_vm9 = vmand %vm1127_vm14, %vm1128_vm8  ;;  %v9307_v10 = vfloor.f32 %v9306_v30  ;;  %v1132_v33 = vsel %vm1126_vm7, 1, %v9248_v16 }
 0x2d4   : > { %v4492_v22 = vsel %vm4483_vm11, %v4491_v4, 0.0  ;;  %vm4505_vm15 = vmand %vm8057_vm6, %vm8071_vm10  ;;  %v5778_v19 = vtrunc.f32 %v9160_v35  ;;  %v1142_v50 = vrot.slane %v9308_v20, 7  ;;  %v1147_v36 = vsel %vm1129_vm9, 1, %v9248_v16  ;;  %v9310_v20 = vld [vmem:[#allocation10_spill] sm:$0xff] }
 0x2d5   : > { %v4504_v56 = vsel %vm4497_vm2, %v4503_v9, 0.0  ;;  %v5776_v39 = vtrunc.f32 %v9307_v10  ;;  %v4508_v46 = vsel %vm4505_vm15, %v4507_v21, 0.0  ;;  %vm4509_vm3 = vmand %vm8057_vm6, %vm8075_vm1  ;;  %v4745_v47 = vrot.slane %v4492_v22, %v6238_v38 }
 0x2d6   : > { %v4766_v8 = vrot.slane %v4504_v56, %v6238_v38  ;;  %v4512_v5 = vsel %vm4509_vm3, %v4511_v60, 0.0  ;;  %v4749_v9 = vrot.slane %v4492_v22, %v6243_v41  ;;  %v4770_v54 = vrot.slane %v4504_v56, %v6243_v41 }
 0x2d7   : > { %v4795_v29 = vrot.slane %v4508_v46, %v6238_v38  ;;  %v4799_v3 = vrot.slane %v4508_v46, %v6243_v41  ;;  %v8113_v4 = vcvt.f32.s32 %v5776_v39  ;;  %v4818_v58 = vrot.slane %v4512_v5, %v6238_v38 }
 0x2d8   : > { %v5189_v21 = vrot.slane %v1132_v33, 9  ;;  %v5190_v60 = vrot.slane %v1147_v36, 9  ;;  %v8116_v30 = vcvt.f32.s32 %v5778_v19  ;;  %v4776_v10 = vrot.slane %v4766_v8, %v6238_v38 }
 0x2d9   : > { %9309 = vst [vmem:[#allocation12_spill] sm:$0xff] %v8113_v4  ;;  %vm1118_vm5 = vcmp.ge.s32.totalorder %v9310_v20, 0  ;;  %v1143_v35 = vrot.slane %v1142_v50, 2  ;;  %v4755_v56 = vrot.slane %v4745_v47, %v6238_v38  ;;  %v4759_v6 = vrot.slane %v4749_v9, %v6238_v38 }
 0x2da   : > { %vm1119_vm6 = vcmp.lt.s32.totalorder %v9310_v20, 16  ;;  %v1116_v39 = vadd.s32 1, %v9310_v20  ;;  %v4780_v33 = vrot.slane %v4770_v54, %v6238_v38  ;;  %v4805_v19 = vrot.slane %v4795_v29, %v6238_v38 }
 0x2db   : > { %v4809_v36 = vrot.slane %v4799_v3, %v6238_v38  ;;  %v4828_v43 = vrot.slane %v4818_v58, %v6238_v38  ;;  %v4822_v50 = vrot.slane %v4512_v5, %v6243_v41  ;;  %vm8129_vm10 = vcmp.ne.s32.totalorder %v5189_v21, 0  ;;  %vm8143_vm11 = vmand %vm1118_vm5, %vm1119_vm6 }
 0x2dc   : > { %vm8133_vm1 = vcmp.ne.s32.totalorder %v5190_v60, 0  ;;  %v1157_v29 = vmul.f32 %v9315_v28, %v1143_v35  ;;  %v1145_v23 = vmul.f32 %v1143_v35, %v9316_v61  ;;  %vm1121_vm12 = vcmp.ge.s32.totalorder %v1116_v39, 0  ;;  %vm1136_vm8 = vmand %vm8143_vm11, %vm8129_vm10 }
 0x2dd   : > { %vm1122_vm13 = vcmp.lt.s32.totalorder %v1116_v39, 16  ;;  %v4832_v28 = vrot.slane %v4822_v50, %v6238_v38  ;;  %vm1151_vm14 = vmand %vm8143_vm11, %vm8133_vm1  ;;  %v8162_v50 = vpop.f32.mrf.mxu0 }
 0x2de   : > { %v1158_v20 = vsel %vm1151_vm14, %v1157_v29, 0.0  ;;  %vm1123_vm2 = vmand %vm1121_vm12, %vm1122_vm13 }
 0x2df   : > { %vm1159_vm7 = vmand %vm1123_vm2, %vm8129_vm10 }
 0x2e0   : > { %vm1163_vm9 = vmand %vm1123_vm2, %vm8133_vm1 }
 0x304   : > { %v4730_v22 = vpop.f32.mrf.mxu1 }
 0x305   : > { %v4781_v46 = vmul.f32 %v4776_v10, %v4730_v22  ;;  %v4760_v10 = vmul.f32 %v4755_v56, %v4730_v22  ;;  %v9320_v56 = vld [vmem:[#allocation32_spill] sm:$0xff] }
 0x306   : > { %v4732_v8 = vpop.f32.mrf.mxu1 }
 0x307   : > { %v4785_v11 = vrot.slane %v4781_v46, 4  ;;  %v4782_v54 = vmul.f32 %v4780_v33, %v4732_v8  ;;  %v4761_v16 = vmul.f32 %v4759_v6, %v4732_v8  ;;  %v9319_v6 = vld [vmem:[#allocation30_spill] sm:$0xff]  ;;  %v1165_v46 = vmul.f32 %v9320_v56, %v1143_v35 }
 0x308   : > { %v4736_v3 = vpop.f32.mrf.mxu1  ;;  %v2131_v33 = vmul.u32 16, %v8113_v4 }
 0x309   : > { %v4789_v5 = vadd.f32 %v4785_v11, %v4760_v10  ;;  %v4786_v58 = vrot.slane %v4782_v54, 4  ;;  %v4810_v21 = vmul.f32 %v4805_v19, %v4736_v3  ;;  %v4833_v40 = vmul.f32 %v4828_v43, %v4736_v3 }
 0x30a   : > { %v4738_v22 = vpop.f32.mrf.mxu1  ;;  %v1161_v11 = vmul.f32 %v9319_v6, %v1143_v35  ;;  %v5333_v19 = vrot.slane %v8116_v30, 9  ;;  %v1146_v54 = vsel %vm1136_vm8, %v1145_v23, 0.0  ;;  %v1420_v35 = vrot.slane %v1158_v20, %v6238_v38 }
 0x30b   : > { %v4790_v61 = vadd.f32 %v4786_v58, %v4761_v16  ;;  %v4811_v43 = vmul.f32 %v4809_v36, %v4738_v22  ;;  %v4834_v8 = vmul.f32 %v4832_v28, %v4738_v22  ;;  %v4812_v16 = vadd.f32 %v4810_v21, %v4789_v5 }
 0x30c   : > { %v4837_v36 = vrot.slane %v4833_v40, 4  ;;  %v1162_v3 = vsel %vm1159_vm7, %v1161_v11, 0.0  ;;  %v1166_v58 = vsel %vm1163_vm9, %v1165_v46, 0.0  ;;  %v2134_v60 = vadd.s32 %v5333_v19, %v2131_v33  ;;  %v8171_v40 = vpop.f32.mrf.mxu0 }
 0x30d   : > { %v4813_v10 = vadd.f32 %v4811_v43, %v4790_v61  ;;  %v4838_v29 = vrot.slane %v4834_v8, 4  ;;  %v1399_v22 = vrot.slane %v1146_v54, %v6238_v38  ;;  %v1424_v5 = vrot.slane %v1158_v20, %v6243_v41 }
 0x30e   : > { %v4841_v23 = vadd.f32 %v4837_v36, %v4812_v16  ;;  %v1403_v47 = vrot.slane %v1146_v54, %v6243_v41  ;;  %v1449_v21 = vrot.slane %v1162_v3, %v6238_v38  ;;  %v1430_v28 = vrot.slane %v1420_v35, %v6238_v38 }
 0x30f   : > { %v4842_v39 = vadd.f32 %v4838_v29, %v4813_v10  ;;  %v1472_v9 = vrot.slane %v1166_v58, %v6238_v38  ;;  %v1453_v11 = vrot.slane %v1162_v3, %v6243_v41  ;;  %vm2135_vm15 = vcmp.lt.s32.totalorder %v2134_v60, 0 }
 0x310   : > { %v1409_v61 = vrot.slane %v1399_v22, %v6238_v38  ;;  %v1434_v20 = vrot.slane %v1424_v5, %v6238_v38  ;;  %v2136_v56 = vadd.s32 256, %v2134_v60  ;;  %v1413_v33 = vrot.slane %v1403_v47, %v6238_v38 }
 0x311   : > { %5754 = vmatprep.subr.msk.mxu1 %vm452_vm0, %v4842_v39  ;;  %v1459_v19 = vrot.slane %v1449_v21, %v6238_v38  ;;  %v1476_v8 = vrot.slane %v1166_v58, %v6243_v41  ;;  %v1482_v54 = vrot.slane %v1472_v9, %v6238_v38  ;;  %v1463_v3 = vrot.slane %v1453_v11, %v6238_v38 }
 0x312   : > { %5755 = vmatpush1.msk.msra.mxu1 %vm452_vm0, %v4841_v23 }
 0x313   : > { %v1486_v21 = vrot.slane %v1476_v8, %v6238_v38  ;;  %v9321_v8 = vmov 1.0  }
 0x314   : > { %v1384_v6 = vpop.f32.mrf.mxu0 }
 0x315   : > { %v1435_v43 = vmul.f32 %v1430_v28, %v1384_v6  ;;  %v1414_v16 = vmul.f32 %v1409_v61, %v1384_v6  ;;  %v2137_v28 = vsel %vm2135_vm15, %v2136_v56, %v2134_v60  ;;  %v5256_v60 = vld [vmem:[%s9102_s5 + $0x4] sm:$0xf] }
 0x316   : > { %v1386_v46 = vpop.f32.mrf.mxu0  ;;  %v2145_v9 = vrot.slane %v2137_v28, %v6243_v41  ;;  %v2141_v11 = vrot.slane %v2137_v28, %v6238_v38 }
 0x317   : > { %v1439_v36 = vrot.slane %v1435_v43, 4  ;;  %v1436_v10 = vmul.f32 %v1434_v20, %v1386_v46  ;;  %v1415_v29 = vmul.f32 %v1413_v33, %v1386_v46 }
 0x318   : > { %v1390_v35 = vpop.f32.mrf.mxu0  ;;  %v8200_v56 = vrot.slane %v2141_v11, %v6238_v38  ;;  %v9334_v11 = vld [vmem:[#allocation35_spill] sm:$0xff] }
 0x319   : > { %v1443_v39 = vadd.f32 %v1439_v36, %v1414_v16  ;;  %v1440_v22 = vrot.slane %v1436_v10, 4  ;;  %v1464_v5 = vmul.f32 %v1459_v19, %v1390_v35  ;;  %v1487_v23 = vmul.f32 %v1482_v54, %v1390_v35  ;;  %v9325_v36 = vld [vmem:[#allocation24_spill] sm:$0xff]  ;;  %v9326_v10 = vld [vmem:[#allocation25_spill] sm:$0xff]  ;;  %v8406_v54 = vld [vmem:[%s6114_s23] sm:$0xff] }
 0x31a   : > { %v1392_v47 = vpop.f32.mrf.mxu0  ;;  %v8192_v19 = vrot.slane %v2145_v9, %v6238_v38  ;;  %vm2184_vm5 = vcmp.eq.s32.totalorder %v6277_v15, %v8200_v56  ;;  %vm2182_vm10 = vcmp.eq.s32.totalorder %v6283_v18, %v8200_v56  ;;  %vm2180_vm12 = vcmp.eq.s32.totalorder %v6291_v52, %v8200_v56  ;;  %9327 = vst [vmem:[#allocation34_spill] sm:$0xff] %v8406_v54  ;;  %v8414_v35 = vld [vmem:[%s6114_s23 + $0x10] sm:$0xff] }
 0x31b   : > { %v1444_v4 = vadd.f32 %v1440_v22, %v1415_v29  ;;  %v1466_v58 = vadd.f32 %v1464_v5, %v1443_v39  ;;  %v1491_v6 = vrot.slane %v1487_v23, 4  ;;  %v1465_v61 = vmul.f32 %v1463_v3, %v1392_v47  ;;  %v8410_v29 = vld [vmem:[%s6114_s23 + $0x18] sm:$0xff]  ;;  %9329 = vst [vmem:[#allocation5_spill] sm:$0xff] %v8414_v35  ;;  %v620_v3 = vpop.permute.xlu0 %619  ;;  %v9332_v9 = vld [vmem:[#allocation9_spill] sm:$0xff] }
 0x31c   : > { %v1488_v43 = vmul.f32 %v1486_v21, %v1392_v47  ;;  %vm2185_vm3 = vcmp.eq.s32.totalorder %v6277_v15, %v8192_v19  ;;  %vm2183_vm6 = vcmp.eq.s32.totalorder %v6283_v18, %v8192_v19  ;;  %vm2181_vm1 = vcmp.eq.s32.totalorder %v6291_v52, %v8192_v19  ;;  %9328 = vst [vmem:[#allocation33_spill] sm:$0xff] %v8410_v29 }
 0x31d   : > { %v1495_v20 = vadd.f32 %v1491_v6, %v1466_v58  ;;  %v1467_v46 = vadd.f32 %v1465_v61, %v1444_v4  ;;  %v5327_v4 = vld [vmem:[%s9102_s5 + $0x8] sm:$0xf]  ;;  %vm2179_vm13 = vcmp.eq.s32.totalorder %v6303_v27, %v8192_v19  ;;  %vm2178_vm11 = vcmp.eq.s32.totalorder %v6303_v27, %v8200_v56 }
 0x31e   : > { %v1492_v33 = vrot.slane %v1488_v43, 4  ;;  %vm2177_vm14 = vcmp.eq.s32.totalorder %v6312_v31, %v8192_v19  ;;  %vm2176_vm8 = vcmp.eq.s32.totalorder %v6312_v31, %v8200_v56  ;;  %vm2175_vm2 = vcmp.eq.s32.totalorder %v6321_v34, %v8192_v19 }
 0x31f   : > { %vm2174_vm7 = vcmp.eq.s32.totalorder %v6321_v34, %v8200_v56  ;;  %vm2173_vm9 = vcmp.eq.s32.totalorder %v6330_v48, %v8192_v19  ;;  %vm2172_vm15 = vcmp.eq.s32.totalorder %v6330_v48, %v8200_v56  ;;  %v1103_v39 = vadd.f32 %v8162_v50, %v620_v3 }
 0x320   : > { %v1496_v16 = vadd.f32 %v1492_v33, %v1467_v46  ;;  %v1104_v5 = vadd.f32 %v8171_v40, %v620_v3  ;;  %v2081_v43 = vadd.s32 1, %v8116_v30  ;;  %v9336_v3 = vld [vmem:[#allocation11_spill] sm:$0xff] }
 0x322   : > { %5257 = vmatprep.subr.msk.mxu0 %vm452_vm0, %v1496_v16  ;;  %v2106_v16 = vrot.slane %v9334_v11, 7 }
 0x323   : > { %5258 = vmatpush1.msk.msra.mxu0 %vm452_vm0, %v1495_v20  ;;  %v9333_v20 = vfloor.f32 %v9332_v9 }
 0x324   : > { %5259 = vmatmul.mubr.msk.f32.vlgmr.msra.gmra.mxu0 %vm1022_vm4, %v5256_v60  ;;  %5328 = vmatprep.subr.msk.mxu0 %vm452_vm0, %v7909_v62  ;;  %v9324_v62 = vld [vmem:[#allocation23_spill] sm:$0xff] }
 0x325   : > { %5329 = vmatpush1.msk.msra.mxu0 %vm452_vm0, %v7898_v17  ;;  %2061 = vmatprep.mubr.f32.mxu0 %v9267_v12  ;;  %v9323_v17 = vld [vmem:[#allocation22_spill] sm:$0xff]  ;;  %v2077_v46 = vsub.f32 %v9332_v9, %v9333_v20 }
 0x326   : > { %5334 = vmatprep.subr.msk.mxu0 %vm2185_vm3, %v9321_v8  ;;  %vm2171_vm3 = vcmp.eq.s32.totalorder %v6339_v53, %v8192_v19  ;;  %v9340_v20 = vld [vmem:[#allocation14_spill] sm:$0xff] }
 0x327   : > { %v2095_v50 = vsub.f32 1.0, %v2077_v46  ;;  %v2117_v40 = vrot.slane %v2077_v46, 7  ;;  %v9341_v46 = vfloor.f32 %v9340_v20 }
 0x328   : > { %5330 = vmatmul.mubr.msk.f32.vlgmr.msra.gmra.mxu0 %vm1022_vm4, %v5327_v4 }
 0x329   : > { %5335 = vmatpush1.msk.msra.mxu0 %vm2184_vm5, %v9321_v8  ;;  %2346 = vmatprep.mubr.f32.mxu0 %v7873_v57  ;;  %vm2170_vm5 = vcmp.eq.s32.totalorder %v6339_v53, %v8200_v56  ;;  %v9322_v57 = vld [vmem:[#allocation21_spill] sm:$0xff]  ;;  %v2102_v33 = vrot.slane %v2095_v50, 7  ;;  %v5784_v50 = vtrunc.f32 %v9341_v46 }
 0x32a   : > { %5336 = vmatprep.subr.msk.mxu0 %vm2183_vm6, %v9321_v8  ;;  %vm2169_vm6 = vcmp.eq.s32.totalorder %v6348_v55, %v8192_v19 }
 0x32b   : > { %5337 = vmatpush1.msk.msra.mxu0 %vm2182_vm10, %v9321_v8  ;;  %vm2168_vm10 = vcmp.eq.s32.totalorder %v6348_v55, %v8200_v56 }
 0x32c   : > { %5338 = vmatprep.subr.msk.mxu0 %vm2181_vm1, %v9321_v8  ;;  %vm2167_vm1 = vcmp.eq.s32.totalorder %v6357_v14, %v8192_v19 }
 0x32d   : > { %5339 = vmatpush1.msk.msra.mxu0 %vm2180_vm12, %v9321_v8  ;;  %vm2166_vm12 = vcmp.eq.s32.totalorder %v6357_v14, %v8200_v56 }
 0x32e   : > { %5340 = vmatprep.subr.msk.mxu0 %vm2179_vm13, %v9321_v8  ;;  %vm2165_vm13 = vcmp.eq.s32.totalorder %v6366_v24, %v8192_v19 }
 0x32f   : > { %5341 = vmatpush1.msk.msra.mxu0 %vm2178_vm11, %v9321_v8  ;;  %vm2164_vm11 = vcmp.eq.s32.totalorder %v6366_v24, %v8200_v56 }
 0x330   : > { %5342 = vmatprep.subr.msk.mxu0 %vm2177_vm14, %v9321_v8  ;;  %vm2163_vm14 = vcmp.eq.s32.totalorder %v6375_v32, %v8192_v19 }
 0x331   : > { %5343 = vmatpush1.msk.msra.mxu0 %vm2176_vm8, %v9321_v8  ;;  %vm2162_vm8 = vcmp.eq.s32.totalorder %v6375_v32, %v8200_v56 }
 0x332   : > { %5344 = vmatprep.subr.msk.mxu0 %vm2175_vm2, %v9321_v8  ;;  %vm2161_vm2 = vcmp.eq.s32.totalorder %v6384_v44, %v8192_v19 }
 0x333   : > { %5345 = vmatpush1.msk.msra.mxu0 %vm2174_vm7, %v9321_v8  ;;  %vm2160_vm7 = vcmp.eq.s32.totalorder %v6384_v44, %v8200_v56 }
 0x334   : > { %5346 = vmatprep.subr.msk.mxu0 %vm2173_vm9, %v9321_v8  ;;  %vm2159_vm9 = vcmp.eq.s32.totalorder %v6395_v51, %v8192_v19 }
 0x335   : > { %5347 = vmatpush1.msk.msra.mxu0 %vm2172_vm15, %v9321_v8  ;;  %vm2158_vm15 = vcmp.eq.s32.totalorder %v6395_v51, %v8200_v56 }
 0x336   : > { %5348 = vmatprep.subr.msk.mxu0 %vm2171_vm3, %v9321_v8  ;;  %vm2157_vm3 = vcmp.eq.s32.totalorder %v6408_v7, %v8192_v19 }
 0x337   : > { %5349 = vmatpush1.msk.msra.mxu0 %vm2170_vm5, %v9321_v8  ;;  %vm2156_vm5 = vcmp.eq.s32.totalorder %v6408_v7, %v8200_v56 }
 0x338   : > { %5350 = vmatprep.subr.msk.mxu0 %vm2169_vm6, %v9321_v8  ;;  %vm2155_vm6 = vcmp.eq.s32.totalorder %v6121_v25, %v8192_v19 }
 0x339   : > { %5351 = vmatpush1.msk.msra.mxu0 %vm2168_vm10, %v9321_v8  ;;  %vm2154_vm10 = vcmp.eq.s32.totalorder %v6121_v25, %v8200_v56 }
 0x33a   : > { %5352 = vmatprep.subr.msk.mxu0 %vm2167_vm1, %v9321_v8  ;;  %vm2217_vm1 = vcmp.eq.s32.totalorder %v6423_v0, %v8192_v19 }
 0x33b   : > { %5353 = vmatpush1.msk.msra.mxu0 %vm2166_vm12, %v9321_v8  ;;  %vm2216_vm12 = vcmp.eq.s32.totalorder %v6423_v0, %v8200_v56 }
 0x33c   : > { %5354 = vmatprep.subr.msk.mxu0 %vm2165_vm13, %v9321_v8  ;;  %vm2215_vm13 = vcmp.eq.s32.totalorder %v6432_v2, %v8192_v19 }
 0x33d   : > { %5355 = vmatpush1.msk.msra.mxu0 %vm2164_vm11, %v9321_v8  ;;  %vm2214_vm11 = vcmp.eq.s32.totalorder %v6432_v2, %v8200_v56 }
 0x33e   : > { %5356 = vmatprep.subr.msk.mxu0 %vm2163_vm14, %v9321_v8  ;;  %vm2213_vm14 = vcmp.eq.s32.totalorder %v6441_v1, %v8192_v19 }
 0x33f   : > { %5357 = vmatpush1.msk.msra.mxu0 %vm2162_vm8, %v9321_v8  ;;  %vm2212_vm8 = vcmp.eq.s32.totalorder %v6441_v1, %v8200_v56 }
 0x340   : > { %5358 = vmatprep.subr.msk.mxu0 %vm2161_vm2, %v9321_v8  ;;  %vm2211_vm2 = vcmp.eq.s32.totalorder %v6454_v26, %v8192_v19 }
 0x341   : > { %5359 = vmatpush1.msk.msra.mxu0 %vm2160_vm7, %v9321_v8  ;;  %vm2210_vm7 = vcmp.eq.s32.totalorder %v6454_v26, %v8200_v56 }
 0x342   : > { %5360 = vmatprep.subr.msk.mxu0 %vm2159_vm9, %v9321_v8  ;;  %vm2209_vm9 = vcmp.eq.s32.totalorder %v6463_v49, %v8192_v19 }
 0x343   : > { %5361 = vmatpush1.msk.msra.mxu0 %vm2158_vm15, %v9321_v8  ;;  %vm2208_vm15 = vcmp.eq.s32.totalorder %v6463_v49, %v8200_v56 }
 0x344   : > { %5362 = vmatprep.subr.msk.mxu0 %vm2157_vm3, %v9321_v8  ;;  %vm2207_vm3 = vcmp.eq.s32.totalorder %v6476_v59, %v8192_v19 }
 0x345   : > { %5363 = vmatpush1.msk.msra.mxu0 %vm2156_vm5, %v9321_v8  ;;  %vm2206_vm5 = vcmp.eq.s32.totalorder %v6476_v59, %v8200_v56 }
 0x346   : > { %5364 = vmatprep.subr.msk.mxu0 %vm2155_vm6, %v9321_v8  ;;  %vm2205_vm6 = vcmp.eq.s32.totalorder %v6485_v63, %v8192_v19 }
 0x347   : > { %5365 = vmatpush1.msk.msra.mxu0 %vm2154_vm10, %v9321_v8  ;;  %vm2204_vm10 = vcmp.eq.s32.totalorder %v6485_v63, %v8200_v56 }
 0x348   : > { %5366 = vmatprep.subr.msk.mxu0 %vm2217_vm1, %v9321_v8  ;;  %vm2203_vm1 = vcmp.eq.s32.totalorder %v6496_v37, %v8192_v19 }
 0x349   : > { %5367 = vmatpush2.msk.msra.mxu0 %vm2216_vm12, %v9321_v8  ;;  %vm2202_vm12 = vcmp.eq.s32.totalorder %v6496_v37, %v8200_v56 }
 0x34a   : > { %5368 = vmatprep.subr.msk.mxu0 %vm2215_vm13, %v9321_v8  ;;  %vm2201_vm13 = vcmp.eq.s32.totalorder %v6505_v13, %v8192_v19 }
 0x34b   : > { %5369 = vmatpush2.msk.msra.mxu0 %vm2214_vm11, %v9321_v8  ;;  %vm2200_vm11 = vcmp.eq.s32.totalorder %v6505_v13, %v8200_v56 }
 0x34c   : > { %5370 = vmatprep.subr.msk.mxu0 %vm2213_vm14, %v9321_v8  ;;  %vm2199_vm14 = vcmp.eq.s32.totalorder %v6514_v45, %v8192_v19 }
 0x34d   : > { %5371 = vmatpush2.msk.msra.mxu0 %vm2212_vm8, %v9321_v8  ;;  %vm2198_vm8 = vcmp.eq.s32.totalorder %v6514_v45, %v8200_v56 }
 0x34e   : > { %5372 = vmatprep.subr.msk.mxu0 %vm2211_vm2, %v9321_v8  ;;  %vm2197_vm2 = vcmp.eq.s32.totalorder %v6523_v42, %v8192_v19 }
 0x34f   : > { %5373 = vmatpush2.msk.msra.mxu0 %vm2210_vm7, %v9321_v8  ;;  %vm2196_vm7 = vcmp.eq.s32.totalorder %v6523_v42, %v8200_v56 }
 0x350   : > { %5374 = vmatprep.subr.msk.mxu0 %vm2209_vm9, %v9321_v8  ;;  %vm2195_vm9 = vcmp.eq.s32.totalorder %v9322_v57, %v8192_v19 }
 0x351   : > { %5375 = vmatpush2.msk.msra.mxu0 %vm2208_vm15, %v9321_v8  ;;  %vm2194_vm15 = vcmp.eq.s32.totalorder %v9322_v57, %v8200_v56 }
 0x352   : > { %5376 = vmatprep.subr.msk.mxu0 %vm2207_vm3, %v9321_v8  ;;  %vm2193_vm3 = vcmp.eq.s32.totalorder %v9323_v17, %v8192_v19 }
 0x353   : > { %5377 = vmatpush2.msk.msra.mxu0 %vm2206_vm5, %v9321_v8  ;;  %vm2192_vm5 = vcmp.eq.s32.totalorder %v9323_v17, %v8200_v56 }
 0x354   : > { %5378 = vmatprep.subr.msk.mxu0 %vm2205_vm6, %v9321_v8  ;;  %vm2191_vm6 = vcmp.eq.s32.totalorder %v9324_v62, %v8192_v19 }
 0x355   : > { %5379 = vmatpush2.msk.msra.mxu0 %vm2204_vm10, %v9321_v8  ;;  %vm2190_vm10 = vcmp.eq.s32.totalorder %v9324_v62, %v8200_v56 }
 0x356   : > { %5380 = vmatprep.subr.msk.mxu0 %vm2203_vm1, %v9321_v8  ;;  %vm2189_vm1 = vcmp.eq.s32.totalorder %v9325_v36, %v8192_v19 }
 0x357   : > { %5381 = vmatpush2.msk.msra.mxu0 %vm2202_vm12, %v9321_v8  ;;  %vm2188_vm12 = vcmp.eq.s32.totalorder %v9325_v36, %v8200_v56 }
 0x358   : > { %5382 = vmatprep.subr.msk.mxu0 %vm2201_vm13, %v9321_v8  ;;  %vm2187_vm13 = vcmp.eq.s32.totalorder %v9326_v10, %v8192_v19  ;;  %v9335_v19 = vmov 0  }
 0x359   : > { %5383 = vmatpush2.msk.msra.mxu0 %vm2200_vm11, %v9321_v8  ;;  %vm2186_vm11 = vcmp.eq.s32.totalorder %v9326_v10, %v8200_v56  ;;  %v2118_v56 = vrot.slane %v2117_v40, 2 }
 0x35a   : > { %5384 = vmatprep.subr.msk.mxu0 %vm2199_vm14, %v9321_v8  ;;  %vm2091_vm14 = vcmp.ge.s32.totalorder %v2081_v43, 0 }
 0x35b   : > { %5385 = vmatpush2.msk.msra.mxu0 %vm2198_vm8, %v9321_v8  ;;  %vm2092_vm8 = vcmp.lt.s32.totalorder %v2081_v43, 16 }
 0x35c   : > { %5386 = vmatprep.subr.msk.mxu0 %vm2197_vm2, %v9321_v8  ;;  %vm2088_vm2 = vcmp.ge.s32.totalorder %v8116_v30, 0 }
 0x35d   : > { %5387 = vmatpush2.msk.msra.mxu0 %vm2196_vm7, %v9321_v8  ;;  %vm2089_vm7 = vcmp.lt.s32.totalorder %v8116_v30, 16 }
 0x35e   : > { %5388 = vmatprep.subr.msk.mxu0 %vm2195_vm9, %v9321_v8  ;;  %vm2093_vm9 = vmand %vm2091_vm14, %vm2092_vm8 }
 0x35f   : > { %5389 = vmatpush2.msk.msra.mxu0 %vm2194_vm15, %v9321_v8  ;;  %vm2090_vm15 = vmand %vm2088_vm2, %vm2089_vm7  ;;  %v2111_v60 = vsel %vm2093_vm9, 1, %v9335_v19 }
 0x360   : > { %5390 = vmatprep.subr.msk.mxu0 %vm2193_vm3, %v9321_v8  ;;  %v2096_v4 = vsel %vm2090_vm15, 1, %v9335_v19 }
 0x361   : > { %5391 = vmatpush2.msk.msra.mxu0 %vm2192_vm5, %v9321_v8 }
 0x362   : > { %5392 = vmatprep.subr.msk.mxu0 %vm2191_vm6, %v9321_v8 }
 0x363   : > { %5393 = vmatpush2.msk.msra.mxu0 %vm2190_vm10, %v9321_v8 }
 0x364   : > { %5394 = vmatprep.subr.msk.mxu0 %vm2189_vm1, %v9321_v8 }
 0x365   : > { %5395 = vmatpush2.msk.msra.mxu0 %vm2188_vm12, %v9321_v8 }
 0x366   : > { %5396 = vmatprep.subr.msk.mxu0 %vm2187_vm13, %v9321_v8 }
 0x367   : > { %5397 = vmatpush2.msk.msra.mxu0 %vm2186_vm11, %v9321_v8 }
 0x368   : > { %2347 = vmatmul.mubr.f32.vlgmr.msra.gmra.mxu0 %v8406_v54 }
 0x369   : > { %2352 = vmatprep.mubr.f32.mxu0 %v8410_v29 }
 0x36c   : > { %2353 = vmatmul.mubr.f32.gmra.mxu0 %v8414_v35 }
 0x36d   : > { %2536 = vmatprep.mubr.f32.mxu0 %v9267_v12 }
 0x3e4   : > { %v1574_v22 = vpop.f32.mrf.mxu0 }
 0x3e5   : > { %v1579_v23 = vadd.f32 %v1574_v22, %v1103_v39  ;;  %v2094_v39 = vsub.f32 1.0, %v9336_v3  ;;  %v2103_v22 = vrot.slane %v2102_v33, 2 }
 0x3e6   : > { %v1576_v28 = vpop.f32.mrf.mxu0 }
 0x3e7   : > { %v1580_v47 = vadd.f32 %v1576_v28, %v1104_v5  ;;  %v2107_v5 = vrot.slane %v2106_v16, 2  ;;  %v9337_v28 = vld [vmem:[#allocation12_spill] sm:$0xff]  ;;  %v2120_v30 = vmul.f32 %v2118_v56, %v2094_v39  ;;  %v2105_v40 = vmul.f32 %v2103_v22, %v2094_v39 }
 0x3e8   : > { %v2063_v21 = vpop.f32.mrf.mxu0  ;;  %vm2082_vm3 = vcmp.ge.s32.totalorder %v9337_v28, 0  ;;  %vm2083_vm5 = vcmp.lt.s32.totalorder %v9337_v28, 16  ;;  %v2124_v16 = vmul.f32 %v2103_v22, %v9336_v3  ;;  %v8453_v39 = vcvt.f32.s32 %v5784_v50 }
 0x3e9   : > { %v8420_v58 = vadd.f32 %v2063_v21, %v1579_v23  ;;  %v5332_v23 = vrot.slane %v2111_v60, 9  ;;  %v5331_v21 = vrot.slane %v2096_v4, 9  ;;  %v2121_v33 = vmul.f32 %v2120_v30, %v2107_v5  ;;  %vm2084_vm12 = vmand %vm2082_vm3, %vm2083_vm5 }
 0x3ea   : > { %v2065_v6 = vpop.f32.mrf.mxu0  ;;  %v2109_v4 = vmul.f32 %v2107_v5, %v2105_v40  ;;  %9347 = vst [vmem:[#allocation41_spill] sm:$0xff] %v8453_v39 }
 0x3eb   : > { %9330 = vst [vmem:[#allocation42_spill] sm:$0xff] %v8420_v58  ;;  %v8422_v61 = vadd.f32 %v2065_v6, %v1580_v47  ;;  %v2080_v47 = vadd.s32 1, %v9337_v28  ;;  %v9338_v6 = vld [vmem:[#allocation13_spill] sm:$0xff]  ;;  %vm8441_vm6 = vcmp.ne.s32.totalorder %v5332_v23, 0  ;;  %vm8446_vm13 = vcmp.ne.s32.totalorder %v5331_v21, 0 }
 0x3ec   : > { %v9339_v43 = vfloor.f32 %v9338_v6  ;;  %v2128_v6 = vmul.f32 %v2118_v56, %v9336_v3  ;;  %vm2115_vm11 = vmand %vm2084_vm12, %vm8441_vm6  ;;  %v2125_v23 = vmul.f32 %v2124_v16, %v2107_v5  ;;  %v5475_v21 = vrot.slane %v8453_v39, 9 }
 0x3ed   : > { %9331 = vst [vmem:[#allocation43_spill] sm:$0xff] %v8422_v61  ;;  %vm2085_vm10 = vcmp.ge.s32.totalorder %v2080_v47, 0  ;;  %vm2086_vm1 = vcmp.lt.s32.totalorder %v2080_v47, 16  ;;  %v2122_v28 = vsel %vm2115_vm11, %v2121_v33, 0.0  ;;  %vm2100_vm8 = vmand %vm2084_vm12, %vm8446_vm13 }
 0x3ee   : > { %v5782_v9 = vtrunc.f32 %v9339_v43  ;;  %vm2087_vm14 = vmand %vm2085_vm10, %vm2086_vm1  ;;  %v2129_v47 = vmul.f32 %v2128_v6, %v2107_v5  ;;  %v2110_v30 = vsel %vm2100_vm8, %v2109_v4, 0.0  ;;  %v2384_v56 = vrot.slane %v2122_v28, %v6238_v38 }
 0x3ef   : > { %vm2123_vm2 = vmand %vm2087_vm14, %vm8446_vm13  ;;  %v2363_v5 = vrot.slane %v2110_v30, %v6238_v38  ;;  %v2388_v46 = vrot.slane %v2122_v28, %v6243_v41  ;;  %v2367_v50 = vrot.slane %v2110_v30, %v6243_v41 }
 0x3f0   : > { %v8451_v43 = vcvt.f32.s32 %v5782_v9  ;;  %v2126_v3 = vsel %vm2123_vm2, %v2125_v23, 0.0  ;;  %vm2127_vm7 = vmand %vm2087_vm14, %vm8441_vm6  ;;  %v2394_v33 = vrot.slane %v2384_v56, %v6238_v38 }
 0x3f1   : > { %v2130_v9 = vsel %vm2127_vm7, %v2129_v47, 0.0  ;;  %v2413_v40 = vrot.slane %v2126_v3, %v6238_v38  ;;  %v2417_v4 = vrot.slane %v2126_v3, %v6243_v41  ;;  %v2373_v11 = vrot.slane %v2363_v5, %v6238_v38 }
 0x3f2   : > { %9346 = vst [vmem:[#allocation40_spill] sm:$0xff] %v8451_v43  ;;  %v3077_v22 = vmul.u32 16, %v8451_v43  ;;  %v2436_v16 = vrot.slane %v2130_v9, %v6238_v38  ;;  %v2398_v23 = vrot.slane %v2388_v46, %v6238_v38  ;;  %v2377_v28 = vrot.slane %v2367_v50, %v6238_v38 }
 0x3f3   : > { %v2440_v30 = vrot.slane %v2130_v9, %v6243_v41  ;;  %v2427_v5 = vrot.slane %v2417_v4, %v6238_v38 }
 0x3f4   : > { %v3080_v20 = vadd.s32 %v5475_v21, %v3077_v22  ;;  %v2423_v21 = vrot.slane %v2413_v40, %v6238_v38  ;;  %v2446_v39 = vrot.slane %v2436_v16, %v6238_v38 }
 0x3f5   : > { %v2450_v40 = vrot.slane %v2440_v30, %v6238_v38 }
 0x3f6   : > { %vm3081_vm9 = vcmp.lt.s32.totalorder %v3080_v20, 0  ;;  %v3082_v47 = vadd.s32 256, %v3080_v20 }
 0x3f8   : > { %v3083_v29 = vsel %vm3081_vm9, %v3082_v47, %v3080_v20  ;;  %v8514_v20 = vld [vmem:[%s6114_s23 + $0x8] sm:$0xff]  ;;  %v9350_v47 = vld [vmem:[#allocation34_spill] sm:$0xff]  ;;  %s5763_s23 = sshll.u32 %s5951_s30, 7  ;;  %s5889_s30 = scalar_lea.vmem %s5888_s26, 256 }
 0x3f9   : > { %v3087_v4 = vrot.slane %v3083_v29, %v6238_v38  ;;  %s4956_s20 = scalar_lea.hbm %s9104_s7, %s5763_s23  ;;  %p5891_p2 = scmp.lt.s32.totalorder %s5889_s30, %s5883_s24 }
 0x3fb   : > { %p5892_p3 = por %p5891_p2, %p5890_p1 }
 0x3fd   : > { %p5893_p5 = pnand %p5892_p3, %p5886_p0 }
 0x428   : > { %v2348_v60 = vpop.f32.mrf.mxu0 }
 0x429   : > { %v2399_v6 = vmul.f32 %v2394_v33, %v2348_v60  ;;  %v2378_v56 = vmul.f32 %v2373_v11, %v2348_v60  ;;  %v3091_v11 = vrot.slane %v3083_v29, %v6243_v41  ;;  %v9349_v29 = vld [vmem:[#allocation20_spill] sm:$0xff] }
 0x42a   : > { %v2350_v22 = vpop.f32.mrf.mxu0 }
 0x42b   : > { %v2403_v43 = vrot.slane %v2399_v6, 4  ;;  %v2400_v19 = vmul.f32 %v2398_v23, %v2350_v22  ;;  %v2379_v3 = vmul.f32 %v2377_v28, %v2350_v22  ;;  %v9351_v28 = vld [vmem:[#allocation33_spill] sm:$0xff] }
 0x42c   : > { %v2354_v61 = vpop.f32.mrf.mxu0 }
 0x42d   : > { %v2407_v33 = vadd.f32 %v2403_v43, %v2378_v56  ;;  %v2404_v58 = vrot.slane %v2400_v19, 4  ;;  %v2428_v46 = vmul.f32 %v2423_v21, %v2354_v61  ;;  %v2451_v35 = vmul.f32 %v2446_v39, %v2354_v61  ;;  %v5469_v39 = vld [vmem:[%s9102_s5 + $0x10] sm:$0xf]  ;;  %v9353_v56 = vld [vmem:[#allocation42_spill] sm:$0xff] }
 0x42e   : > { %v2356_v50 = vpop.f32.mrf.mxu0  ;;  %v8485_v19 = vrot.slane %v3091_v11, %v6238_v38  ;;  %v9352_v21 = vld [vmem:[#allocation5_spill] sm:$0xff] }
 0x42f   : > { %v2408_v54 = vadd.f32 %v2404_v58, %v2379_v3  ;;  %v2429_v9 = vmul.f32 %v2427_v5, %v2356_v50  ;;  %v2452_v60 = vmul.f32 %v2450_v40, %v2356_v50  ;;  %v2430_v6 = vadd.f32 %v2428_v46, %v2407_v33  ;;  %v5398_v58 = vld [vmem:[%s9102_s5 + $0xc] sm:$0xf]  ;;  %v9354_v33 = vld [vmem:[#allocation43_spill] sm:$0xff]  ;;  %v9357_v11 = vld [vmem:[#allocation41_spill] sm:$0xff] }
 0x430   : > { %v2455_v16 = vrot.slane %v2451_v35, 4  ;;  %v8493_v35 = vrot.slane %v3087_v4, %v6238_v38  ;;  %vm3131_vm15 = vcmp.eq.s32.totalorder %v6277_v15, %v8485_v19  ;;  %vm3129_vm5 = vcmp.eq.s32.totalorder %v6283_v18, %v8485_v19 }
 0x431   : > { %v2431_v23 = vadd.f32 %v2429_v9, %v2408_v54  ;;  %v2456_v22 = vrot.slane %v2452_v60, 4  ;;  %v9348_v54 = vld [vmem:[#allocation19_spill] sm:$0xff]  ;;  %vm3127_vm10 = vcmp.eq.s32.totalorder %v6291_v52, %v8485_v19  ;;  %vm3125_vm12 = vcmp.eq.s32.totalorder %v6303_v27, %v8485_v19 }
 0x432   : > { %v2459_v61 = vadd.f32 %v2455_v16, %v2430_v6  ;;  %vm3130_vm3 = vcmp.eq.s32.totalorder %v6277_v15, %v8493_v35  ;;  %vm3128_vm6 = vcmp.eq.s32.totalorder %v6283_v18, %v8493_v35  ;;  %vm3126_vm1 = vcmp.eq.s32.totalorder %v6291_v52, %v8493_v35  ;;  %v5882_v16 = vld [vmem:[%s9099_s2] sm:$0xf] }
 0x433   : > { %v2460_v43 = vadd.f32 %v2456_v22, %v2431_v23  ;;  %vm3124_vm13 = vcmp.eq.s32.totalorder %v6303_v27, %v8493_v35  ;;  %vm3123_vm11 = vcmp.eq.s32.totalorder %v6312_v31, %v8485_v19  ;;  %vm3122_vm14 = vcmp.eq.s32.totalorder %v6312_v31, %v8493_v35  ;;  %v9358_v23 = vld [vmem:[#allocation15_spill] sm:$0xff] }
 0x434   : > { %vm3121_vm8 = vcmp.eq.s32.totalorder %v6321_v34, %v8485_v19  ;;  %vm3120_vm2 = vcmp.eq.s32.totalorder %v6321_v34, %v8493_v35  ;;  %vm3119_vm7 = vcmp.eq.s32.totalorder %v6330_v48, %v8485_v19  ;;  %vm3118_vm9 = vcmp.eq.s32.totalorder %v6330_v48, %v8493_v35 }
 0x435   : > { %5399 = vmatprep.subr.msk.mxu0 %vm452_vm0, %v2460_v43  ;;  %v3027_v6 = vadd.s32 1, %v9357_v11  ;;  %v8718_v22 = vadd.f32 %v5882_v16, %v9358_v23  ;;  %v9360_v4 = vmov 0   ;;  %v9371_v23 = vld [vmem:[#allocation38_spill] sm:$0xff] }
 0x436   : > { %5400 = vmatpush1.msk.msra.mxu0 %vm452_vm0, %v2459_v61  ;;  %v9361_v61 = vld [vmem:[#allocation40_spill] sm:$0xff] }
 0x437   : > { %5401 = vmatmul.mubr.msk.f32.vlgmr.msra.gmra.mxu0 %vm1022_vm4, %v5398_v58  ;;  %5470 = vmatprep.subr.msk.mxu0 %vm452_vm0, %v9348_v54  ;;  %9359 = vst [vmem:[#allocation6_spill] sm:$0xff] %v8718_v22  ;;  %v3026_v58 = vadd.s32 1, %v9361_v61  ;;  %v9181_v54 = vfloor.f32 %v8718_v22 }
 0x438   : > { %5471 = vmatpush1.msk.msra.mxu0 %vm452_vm0, %v9349_v29  ;;  %3007 = vmatprep.mubr.f32.mxu0 %v9267_v12 }
 0x439   : > { %5476 = vmatprep.subr.msk.mxu0 %vm3131_vm15, %v9321_v8  ;;  %vm3117_vm15 = vcmp.eq.s32.totalorder %v6339_v53, %v8485_v19 }
 0x43b   : > { %5472 = vmatmul.mubr.msk.f32.vlgmr.msra.gmra.mxu0 %vm1022_vm4, %v5469_v39 }
 0x43c   : > { %5477 = vmatpush1.msk.msra.mxu0 %vm3130_vm3, %v9321_v8  ;;  %3292 = vmatprep.mubr.f32.mxu0 %v8514_v20  ;;  %vm3116_vm3 = vcmp.eq.s32.totalorder %v6339_v53, %v8493_v35 }
 0x43d   : > { %5478 = vmatprep.subr.msk.mxu0 %vm3129_vm5, %v9321_v8  ;;  %vm3115_vm5 = vcmp.eq.s32.totalorder %v6348_v55, %v8485_v19 }
 0x43e   : > { %5479 = vmatpush1.msk.msra.mxu0 %vm3128_vm6, %v9321_v8  ;;  %vm3114_vm6 = vcmp.eq.s32.totalorder %v6348_v55, %v8493_v35 }
 0x43f   : > { %5480 = vmatprep.subr.msk.mxu0 %vm3127_vm10, %v9321_v8  ;;  %vm3113_vm10 = vcmp.eq.s32.totalorder %v6357_v14, %v8485_v19 }
 0x440   : > { %5481 = vmatpush1.msk.msra.mxu0 %vm3126_vm1, %v9321_v8  ;;  %vm3112_vm1 = vcmp.eq.s32.totalorder %v6357_v14, %v8493_v35 }
 0x441   : > { %5482 = vmatprep.subr.msk.mxu0 %vm3125_vm12, %v9321_v8  ;;  %vm3111_vm12 = vcmp.eq.s32.totalorder %v6366_v24, %v8485_v19 }
 0x442   : > { %5483 = vmatpush1.msk.msra.mxu0 %vm3124_vm13, %v9321_v8  ;;  %vm3110_vm13 = vcmp.eq.s32.totalorder %v6366_v24, %v8493_v35 }
 0x443   : > { %5484 = vmatprep.subr.msk.mxu0 %vm3123_vm11, %v9321_v8  ;;  %vm3109_vm11 = vcmp.eq.s32.totalorder %v6375_v32, %v8485_v19 }
 0x444   : > { %5485 = vmatpush1.msk.msra.mxu0 %vm3122_vm14, %v9321_v8  ;;  %vm3108_vm14 = vcmp.eq.s32.totalorder %v6375_v32, %v8493_v35 }
 0x445   : > { %5486 = vmatprep.subr.msk.mxu0 %vm3121_vm8, %v9321_v8  ;;  %vm3107_vm8 = vcmp.eq.s32.totalorder %v6384_v44, %v8485_v19 }
 0x446   : > { %5487 = vmatpush1.msk.msra.mxu0 %vm3120_vm2, %v9321_v8  ;;  %vm3106_vm2 = vcmp.eq.s32.totalorder %v6384_v44, %v8493_v35 }
 0x447   : > { %5488 = vmatprep.subr.msk.mxu0 %vm3119_vm7, %v9321_v8  ;;  %vm3105_vm7 = vcmp.eq.s32.totalorder %v6395_v51, %v8485_v19 }
 0x448   : > { %5489 = vmatpush1.msk.msra.mxu0 %vm3118_vm9, %v9321_v8  ;;  %vm3104_vm9 = vcmp.eq.s32.totalorder %v6395_v51, %v8493_v35 }
 0x449   : > { %5490 = vmatprep.subr.msk.mxu0 %vm3117_vm15, %v9321_v8  ;;  %vm3103_vm15 = vcmp.eq.s32.totalorder %v6408_v7, %v8485_v19 }
 0x44a   : > { %5491 = vmatpush1.msk.msra.mxu0 %vm3116_vm3, %v9321_v8  ;;  %vm3102_vm3 = vcmp.eq.s32.totalorder %v6408_v7, %v8493_v35 }
 0x44b   : > { %5492 = vmatprep.subr.msk.mxu0 %vm3115_vm5, %v9321_v8  ;;  %vm3101_vm5 = vcmp.eq.s32.totalorder %v6121_v25, %v8485_v19 }
 0x44c   : > { %5493 = vmatpush1.msk.msra.mxu0 %vm3114_vm6, %v9321_v8  ;;  %vm3100_vm6 = vcmp.eq.s32.totalorder %v6121_v25, %v8493_v35 }
 0x44d   : > { %5494 = vmatprep.subr.msk.mxu0 %vm3113_vm10, %v9321_v8  ;;  %vm3163_vm10 = vcmp.eq.s32.totalorder %v6423_v0, %v8485_v19 }
 0x44e   : > { %5495 = vmatpush1.msk.msra.mxu0 %vm3112_vm1, %v9321_v8  ;;  %vm3162_vm1 = vcmp.eq.s32.totalorder %v6423_v0, %v8493_v35 }
 0x44f   : > { %5496 = vmatprep.subr.msk.mxu0 %vm3111_vm12, %v9321_v8  ;;  %vm3161_vm12 = vcmp.eq.s32.totalorder %v6432_v2, %v8485_v19 }
 0x450   : > { %5497 = vmatpush1.msk.msra.mxu0 %vm3110_vm13, %v9321_v8  ;;  %vm3160_vm13 = vcmp.eq.s32.totalorder %v6432_v2, %v8493_v35 }
 0x451   : > { %5498 = vmatprep.subr.msk.mxu0 %vm3109_vm11, %v9321_v8  ;;  %vm3159_vm11 = vcmp.eq.s32.totalorder %v6441_v1, %v8485_v19 }
 0x452   : > { %5499 = vmatpush1.msk.msra.mxu0 %vm3108_vm14, %v9321_v8  ;;  %vm3158_vm14 = vcmp.eq.s32.totalorder %v6441_v1, %v8493_v35 }
 0x453   : > { %5500 = vmatprep.subr.msk.mxu0 %vm3107_vm8, %v9321_v8  ;;  %vm3157_vm8 = vcmp.eq.s32.totalorder %v6454_v26, %v8485_v19 }
 0x454   : > { %5501 = vmatpush1.msk.msra.mxu0 %vm3106_vm2, %v9321_v8  ;;  %vm3156_vm2 = vcmp.eq.s32.totalorder %v6454_v26, %v8493_v35 }
 0x455   : > { %5502 = vmatprep.subr.msk.mxu0 %vm3105_vm7, %v9321_v8  ;;  %vm3155_vm7 = vcmp.eq.s32.totalorder %v6463_v49, %v8485_v19 }
 0x456   : > { %5503 = vmatpush1.msk.msra.mxu0 %vm3104_vm9, %v9321_v8  ;;  %vm3154_vm9 = vcmp.eq.s32.totalorder %v6463_v49, %v8493_v35 }
 0x457   : > { %5504 = vmatprep.subr.msk.mxu0 %vm3103_vm15, %v9321_v8  ;;  %vm3153_vm15 = vcmp.eq.s32.totalorder %v6476_v59, %v8485_v19 }
 0x458   : > { %5505 = vmatpush1.msk.msra.mxu0 %vm3102_vm3, %v9321_v8  ;;  %vm3152_vm3 = vcmp.eq.s32.totalorder %v6476_v59, %v8493_v35 }
 0x459   : > { %5506 = vmatprep.subr.msk.mxu0 %vm3101_vm5, %v9321_v8  ;;  %vm3151_vm5 = vcmp.eq.s32.totalorder %v6485_v63, %v8485_v19 }
 0x45a   : > { %5507 = vmatpush1.msk.msra.mxu0 %vm3100_vm6, %v9321_v8  ;;  %vm3150_vm6 = vcmp.eq.s32.totalorder %v6485_v63, %v8493_v35 }
 0x45b   : > { %5508 = vmatprep.subr.msk.mxu0 %vm3163_vm10, %v9321_v8  ;;  %vm3149_vm10 = vcmp.eq.s32.totalorder %v6496_v37, %v8485_v19 }
 0x45c   : > { %5509 = vmatpush2.msk.msra.mxu0 %vm3162_vm1, %v9321_v8  ;;  %vm3148_vm1 = vcmp.eq.s32.totalorder %v6496_v37, %v8493_v35 }
 0x45d   : > { %5510 = vmatprep.subr.msk.mxu0 %vm3161_vm12, %v9321_v8  ;;  %vm3147_vm12 = vcmp.eq.s32.totalorder %v6505_v13, %v8485_v19 }
 0x45e   : > { %5511 = vmatpush2.msk.msra.mxu0 %vm3160_vm13, %v9321_v8  ;;  %vm3146_vm13 = vcmp.eq.s32.totalorder %v6505_v13, %v8493_v35 }
 0x45f   : > { %5512 = vmatprep.subr.msk.mxu0 %vm3159_vm11, %v9321_v8  ;;  %vm3145_vm11 = vcmp.eq.s32.totalorder %v6514_v45, %v8485_v19 }
 0x460   : > { %5513 = vmatpush2.msk.msra.mxu0 %vm3158_vm14, %v9321_v8  ;;  %vm3144_vm14 = vcmp.eq.s32.totalorder %v6514_v45, %v8493_v35 }
 0x461   : > { %5514 = vmatprep.subr.msk.mxu0 %vm3157_vm8, %v9321_v8  ;;  %vm3143_vm8 = vcmp.eq.s32.totalorder %v6523_v42, %v8485_v19 }
 0x462   : > { %5515 = vmatpush2.msk.msra.mxu0 %vm3156_vm2, %v9321_v8  ;;  %vm3142_vm2 = vcmp.eq.s32.totalorder %v6523_v42, %v8493_v35 }
 0x463   : > { %5516 = vmatprep.subr.msk.mxu0 %vm3155_vm7, %v9321_v8  ;;  %vm3141_vm7 = vcmp.eq.s32.totalorder %v9322_v57, %v8485_v19 }
 0x464   : > { %5517 = vmatpush2.msk.msra.mxu0 %vm3154_vm9, %v9321_v8  ;;  %vm3140_vm9 = vcmp.eq.s32.totalorder %v9322_v57, %v8493_v35 }
 0x465   : > { %5518 = vmatprep.subr.msk.mxu0 %vm3153_vm15, %v9321_v8  ;;  %vm3139_vm15 = vcmp.eq.s32.totalorder %v9323_v17, %v8485_v19 }
 0x466   : > { %5519 = vmatpush2.msk.msra.mxu0 %vm3152_vm3, %v9321_v8  ;;  %vm3138_vm3 = vcmp.eq.s32.totalorder %v9323_v17, %v8493_v35 }
 0x467   : > { %5520 = vmatprep.subr.msk.mxu0 %vm3151_vm5, %v9321_v8  ;;  %vm3137_vm5 = vcmp.eq.s32.totalorder %v9324_v62, %v8485_v19 }
 0x468   : > { %5521 = vmatpush2.msk.msra.mxu0 %vm3150_vm6, %v9321_v8  ;;  %vm3136_vm6 = vcmp.eq.s32.totalorder %v9324_v62, %v8493_v35 }
 0x469   : > { %5522 = vmatprep.subr.msk.mxu0 %vm3149_vm10, %v9321_v8  ;;  %vm3135_vm10 = vcmp.eq.s32.totalorder %v9325_v36, %v8485_v19 }
 0x46a   : > { %5523 = vmatpush2.msk.msra.mxu0 %vm3148_vm1, %v9321_v8  ;;  %vm3134_vm1 = vcmp.eq.s32.totalorder %v9325_v36, %v8493_v35 }
 0x46b   : > { %5524 = vmatprep.subr.msk.mxu0 %vm3147_vm12, %v9321_v8  ;;  %vm3133_vm12 = vcmp.eq.s32.totalorder %v9326_v10, %v8485_v19 }
 0x46c   : > { %5525 = vmatpush2.msk.msra.mxu0 %vm3146_vm13, %v9321_v8  ;;  %vm3132_vm13 = vcmp.eq.s32.totalorder %v9326_v10, %v8493_v35 }
 0x46d   : > { %5526 = vmatprep.subr.msk.mxu0 %vm3145_vm11, %v9321_v8  ;;  %vm3037_vm11 = vcmp.ge.s32.totalorder %v3027_v6, 0 }
 0x46e   : > { %5527 = vmatpush2.msk.msra.mxu0 %vm3144_vm14, %v9321_v8  ;;  %vm3038_vm14 = vcmp.lt.s32.totalorder %v3027_v6, 16 }
 0x46f   : > { %5528 = vmatprep.subr.msk.mxu0 %vm3143_vm8, %v9321_v8  ;;  %vm3034_vm8 = vcmp.ge.s32.totalorder %v9357_v11, 0 }
 0x470   : > { %5529 = vmatpush2.msk.msra.mxu0 %vm3142_vm2, %v9321_v8  ;;  %vm3035_vm2 = vcmp.lt.s32.totalorder %v9357_v11, 16 }
 0x471   : > { %5530 = vmatprep.subr.msk.mxu0 %vm3141_vm7, %v9321_v8  ;;  %vm3039_vm7 = vmand %vm3037_vm11, %vm3038_vm14 }
 0x472   : > { %5531 = vmatpush2.msk.msra.mxu0 %vm3140_vm9, %v9321_v8  ;;  %vm3036_vm9 = vmand %vm3034_vm8, %vm3035_vm2  ;;  %v3057_v43 = vsel %vm3039_vm7, 1, %v9360_v4 }
 0x473   : > { %5532 = vmatprep.subr.msk.mxu0 %vm3139_vm15, %v9321_v8  ;;  %v3042_v19 = vsel %vm3036_vm9, 1, %v9360_v4  ;;  %v5474_v35 = vrot.slane %v3057_v43, 9  ;;  %vm3028_vm15 = vcmp.ge.s32.totalorder %v9361_v61, 0 }
 0x474   : > { %5533 = vmatpush2.msk.msra.mxu0 %vm3138_vm3, %v9321_v8  ;;  %vm3029_vm3 = vcmp.lt.s32.totalorder %v9361_v61, 16  ;;  %v5473_v29 = vrot.slane %v3042_v19, 9  ;;  %v9372_v61 = vld [vmem:[#allocation37_spill] sm:$0xff] }
 0x475   : > { %5534 = vmatprep.subr.msk.mxu0 %vm3137_vm5, %v9321_v8  ;;  %vm3031_vm5 = vcmp.ge.s32.totalorder %v3026_v58, 0 }
 0x476   : > { %5535 = vmatpush2.msk.msra.mxu0 %vm3136_vm6, %v9321_v8  ;;  %vm3032_vm6 = vcmp.lt.s32.totalorder %v3026_v58, 16 }
 0x477   : > { %5536 = vmatprep.subr.msk.mxu0 %vm3135_vm10, %v9321_v8  ;;  %vm8726_vm10 = vmand %vm3028_vm15, %vm3029_vm3 }
 0x478   : > { %5537 = vmatpush2.msk.msra.mxu0 %vm3134_vm1, %v9321_v8  ;;  %vm8730_vm1 = vcmp.ne.s32.totalorder %v5474_v35, 0  ;;  %v9373_v35 = vld [vmem:[#allocation39_spill] sm:$0xff] }
 0x479   : > { %5538 = vmatprep.subr.msk.mxu0 %vm3133_vm12, %v9321_v8  ;;  %vm3045_vm12 = vcmp.ne.s32.totalorder %v5473_v29, 0  ;;  %vm3061_vm11 = vmand %vm8726_vm10, %vm8730_vm1 }
 0x47a   : > { %5539 = vmatpush2.msk.msra.mxu0 %vm3132_vm13, %v9321_v8  ;;  %vm3033_vm13 = vmand %vm3031_vm5, %vm3032_vm6 }
 0x47b   : > { %3293 = vmatmul.mubr.f32.vlgmr.msra.gmra.mxu0 %v9350_v47  ;;  %vm3046_vm14 = vmand %vm8726_vm10, %vm3045_vm12 }
 0x47c   : > { %3298 = vmatprep.mubr.f32.mxu0 %v9351_v28  ;;  %vm3073_vm8 = vmand %vm3033_vm13, %vm8730_vm1  ;;  %v3056_v43 = vsel %vm3046_vm14, %v9371_v23, 0.0 }
 0x47d   : > { %vm3069_vm2 = vmand %vm3033_vm13, %vm3045_vm12  ;;  %v3076_v58 = vsel %vm3073_vm8, %v9372_v61, 0.0 }
 0x47e   : > { %v3072_v29 = vsel %vm3069_vm2, %v9373_v35, 0.0  ;;  %v3386_v4 = vrot.slane %v3076_v58, %v6243_v41 }
 0x47f   : > { %3299 = vmatmul.mubr.f32.gmra.mxu0 %v9352_v21 }
 0x480   : > { %3482 = vmatprep.mubr.f32.mxu0 %v9267_v12 }
 0x4f7   : > { %v2538_v30 = vpop.f32.mrf.mxu0 }
 0x4f8   : > { %v2543_v3 = vadd.f32 %v2538_v30, %v9353_v56  ;;  %v9366_v56 = vld [vmem:[#allocation16_spill] sm:$0xff]  ;;  %v3313_v30 = vrot.slane %v3056_v43, %v6243_v41 }
 0x4f9   : > { %v2540_v5 = vpop.f32.mrf.mxu0 }
 0x4fa   : > { %v2544_v46 = vadd.f32 %v2540_v5, %v9354_v33  ;;  %v5792_v33 = vtrunc.f32 %v9181_v54  ;;  %v3363_v54 = vrot.slane %v3072_v29, %v6243_v41 }
 0x4fb   : > { %v3009_v50 = vpop.f32.mrf.mxu0 }
 0x4fc   : > { %v8707_v40 = vadd.f32 %v3009_v50, %v2543_v3  ;;  %v9367_v3 = vfloor.f32 %v9366_v56  ;;  %v8744_v50 = vcvt.f32.s32 %v5792_v33  ;;  %v3309_v56 = vrot.slane %v3056_v43, %v6238_v38 }
 0x4fd   : > { %v3011_v9 = vpop.f32.mrf.mxu0 }
 0x4fe   : > { %9355 = vst [vmem:[#allocation44_spill] sm:$0xff] %v8707_v40  ;;  %v8709_v60 = vadd.f32 %v3011_v9, %v2544_v46  ;;  %v5790_v5 = vtrunc.f32 %v9367_v3  ;;  %9369 = vst [vmem:[#allocation7_spill] sm:$0xff] %v8744_v50  ;;  %v9370_v9 = vld [vmem:[#allocation36_spill] sm:$0xff]  ;;  %v5617_v16 = vrot.slane %v8744_v50, 9  ;;  %v3319_v61 = vrot.slane %v3309_v56, %v6238_v38 }
 0x4ff   : > { %v3068_v11 = vsel %vm3061_vm11, %v9370_v9, 0.0  ;;  %v3359_v9 = vrot.slane %v3072_v29, %v6238_v38  ;;  %v3373_v56 = vrot.slane %v3363_v54, %v6238_v38 }
 0x500   : > { %9356 = vst [vmem:[#allocation18_spill] sm:$0xff] %v8709_v60  ;;  %v8742_v46 = vcvt.f32.s32 %v5790_v5  ;;  %v3330_v19 = vrot.slane %v3068_v11, %v6238_v38  ;;  %v3334_v3 = vrot.slane %v3068_v11, %v6243_v41  ;;  %v3382_v5 = vrot.slane %v3076_v58, %v6238_v38 }
 0x501   : > { %v3323_v11 = vrot.slane %v3313_v30, %v6238_v38  ;;  %v3369_v60 = vrot.slane %v3359_v9, %v6238_v38 }
 0x502   : > { %9368 = vst [vmem:[#allocation8_spill] sm:$0xff] %v8742_v46  ;;  %v4042_v6 = vmul.u32 16, %v8742_v46  ;;  %v3340_v33 = vrot.slane %v3330_v19, %v6238_v38  ;;  %v3392_v43 = vrot.slane %v3382_v5, %v6238_v38  ;;  %v3396_v5 = vrot.slane %v3386_v4, %v6238_v38 }
 0x504   : > { %v4045_v39 = vadd.s32 %v5617_v16, %v4042_v6  ;;  %v3344_v6 = vrot.slane %v3334_v3, %v6238_v38 }
 0x506   : > { %vm4046_vm7 = vcmp.lt.s32.totalorder %v4045_v39, 0  ;;  %v4047_v16 = vadd.s32 256, %v4045_v39 }
 0x508   : > { %v4048_v47 = vsel %vm4046_vm7, %v4047_v16, %v4045_v39 }
 0x509   : > { %v4056_v9 = vrot.slane %v4048_v47, %v6243_v41  ;;  %v4052_v54 = vrot.slane %v4048_v47, %v6238_v38  ;;  %v9375_v47 = vld [vmem:[#allocation28_spill] sm:$0xff] }
 0x53b   : > { %v3294_v23 = vpop.f32.mrf.mxu0 }
 0x53c   : > { %v3345_v35 = vmul.f32 %v3340_v33, %v3294_v23  ;;  %v3324_v19 = vmul.f32 %v3319_v61, %v3294_v23 }
 0x53d   : > { %v3296_v46 = vpop.f32.mrf.mxu0 }
 0x53e   : > { %v3349_v50 = vrot.slane %v3345_v35, 4  ;;  %v3346_v22 = vmul.f32 %v3344_v6, %v3296_v46  ;;  %v3325_v29 = vmul.f32 %v3323_v11, %v3296_v46 }
 0x53f   : > { %v3300_v40 = vpop.f32.mrf.mxu0 }
 0x540   : > { %v3353_v33 = vadd.f32 %v3349_v50, %v3324_v19  ;;  %v3350_v21 = vrot.slane %v3346_v22, 4  ;;  %v3374_v3 = vmul.f32 %v3369_v60, %v3300_v40  ;;  %v3397_v28 = vmul.f32 %v3392_v43, %v3300_v40  ;;  %v5540_v60 = vld [vmem:[%s9102_s5 + $0x14] sm:$0xf] }
 0x541   : > { %v3302_v30 = vpop.f32.mrf.mxu0  ;;  %v8776_v40 = vrot.slane %v4056_v9, %v6238_v38 }
 0x542   : > { %v3354_v10 = vadd.f32 %v3350_v21, %v3325_v29  ;;  %v3376_v58 = vadd.f32 %v3374_v3, %v3353_v33  ;;  %v3401_v23 = vrot.slane %v3397_v28, 4  ;;  %v3375_v61 = vmul.f32 %v3373_v56, %v3302_v30  ;;  %v5611_v21 = vld [vmem:[%s9102_s5 + $0x18] sm:$0xf] }
 0x543   : > { %v3398_v35 = vmul.f32 %v3396_v5, %v3302_v30  ;;  %v8784_v28 = vrot.slane %v4052_v54, %v6238_v38  ;;  %vm4096_vm9 = vcmp.eq.s32.totalorder %v6277_v15, %v8776_v40  ;;  %vm4094_vm3 = vcmp.eq.s32.totalorder %v6283_v18, %v8776_v40 }
 0x544   : > { %v3405_v46 = vadd.f32 %v3401_v23, %v3376_v58  ;;  %v3377_v6 = vadd.f32 %v3375_v61, %v3354_v10  ;;  %v9374_v10 = vld [vmem:[#allocation26_spill] sm:$0xff]  ;;  %vm4092_vm6 = vcmp.eq.s32.totalorder %v6291_v52, %v8776_v40  ;;  %vm4090_vm1 = vcmp.eq.s32.totalorder %v6303_v27, %v8776_v40 }
 0x545   : > { %v3402_v11 = vrot.slane %v3398_v35, 4  ;;  %vm4095_vm15 = vcmp.eq.s32.totalorder %v6277_v15, %v8784_v28  ;;  %vm4093_vm5 = vcmp.eq.s32.totalorder %v6283_v18, %v8784_v28  ;;  %vm4091_vm10 = vcmp.eq.s32.totalorder %v6291_v52, %v8784_v28 }
 0x546   : > { %vm4089_vm12 = vcmp.eq.s32.totalorder %v6303_v27, %v8784_v28  ;;  %vm4088_vm13 = vcmp.eq.s32.totalorder %v6312_v31, %v8776_v40  ;;  %vm4087_vm11 = vcmp.eq.s32.totalorder %v6312_v31, %v8784_v28  ;;  %vm4086_vm14 = vcmp.eq.s32.totalorder %v6321_v34, %v8776_v40 }
 0x547   : > { %v3406_v22 = vadd.f32 %v3402_v11, %v3377_v6  ;;  %vm4085_vm8 = vcmp.eq.s32.totalorder %v6321_v34, %v8784_v28  ;;  %vm4084_vm2 = vcmp.eq.s32.totalorder %v6330_v48, %v8776_v40  ;;  %vm4083_vm7 = vcmp.eq.s32.totalorder %v6330_v48, %v8784_v28  ;;  %v9382_v34 = vld [vmem:[#allocation6_spill] sm:$0xff] }
 0x548   : > { %v9383_v48 = vfloor.f32 %v9382_v34 }
 0x549   : > { %5541 = vmatprep.subr.msk.mxu0 %vm452_vm0, %v3406_v22 }
 0x54a   : > { %5542 = vmatpush1.msk.msra.mxu0 %vm452_vm0, %v3405_v46 }
 0x54b   : > { %5543 = vmatmul.mubr.msk.f32.vlgmr.msra.gmra.mxu0 %vm1022_vm4, %v5540_v60  ;;  %5612 = vmatprep.subr.msk.mxu0 %vm452_vm0, %v9374_v10 }
 0x54c   : > { %5613 = vmatpush1.msk.msra.mxu0 %vm452_vm0, %v9375_v47  ;;  %3972 = vmatprep.mubr.f32.mxu0 %v9267_v12 }
 0x54d   : > { %5618 = vmatprep.subr.msk.mxu0 %vm4096_vm9, %v9321_v8  ;;  %vm4082_vm9 = vcmp.eq.s32.totalorder %v6339_v53, %v8776_v40 }
 0x54f   : > { %5614 = vmatmul.mubr.msk.f32.vlgmr.msra.gmra.mxu0 %vm1022_vm4, %v5611_v21 }
 0x550   : > { %5619 = vmatpush1.msk.msra.mxu0 %vm4095_vm15, %v9321_v8  ;;  %4257 = vmatprep.mubr.f32.mxu0 %v8514_v20  ;;  %vm4081_vm15 = vcmp.eq.s32.totalorder %v6339_v53, %v8784_v28  ;;  %v3988_v53 = vsub.f32 %v9382_v34, %v9383_v48 }
 0x551   : > { %5620 = vmatprep.subr.msk.mxu0 %vm4094_vm3, %v9321_v8  ;;  %vm4080_vm3 = vcmp.eq.s32.totalorder %v6348_v55, %v8776_v40 }
 0x552   : > { %5621 = vmatpush1.msk.msra.mxu0 %vm4093_vm5, %v9321_v8  ;;  %vm4079_vm5 = vcmp.eq.s32.totalorder %v6348_v55, %v8784_v28  ;;  %v9384_v55 = vld [vmem:[#allocation7_spill] sm:$0xff] }
 0x553   : > { %5622 = vmatprep.subr.msk.mxu0 %vm4092_vm6, %v9321_v8  ;;  %vm4078_vm6 = vcmp.eq.s32.totalorder %v6357_v14, %v8776_v40 }
 0x554   : > { %5623 = vmatpush1.msk.msra.mxu0 %vm4091_vm10, %v9321_v8  ;;  %vm4077_vm10 = vcmp.eq.s32.totalorder %v6357_v14, %v8784_v28  ;;  %v3992_v14 = vadd.s32 1, %v9384_v55 }
 0x555   : > { %5624 = vmatprep.subr.msk.mxu0 %vm4090_vm1, %v9321_v8  ;;  %vm4076_vm1 = vcmp.eq.s32.totalorder %v6366_v24, %v8776_v40 }
 0x556   : > { %5625 = vmatpush1.msk.msra.mxu0 %vm4089_vm12, %v9321_v8  ;;  %vm4075_vm12 = vcmp.eq.s32.totalorder %v6366_v24, %v8784_v28  ;;  %v4006_v24 = vsub.f32 1.0, %v3988_v53 }
 0x557   : > { %5626 = vmatprep.subr.msk.mxu0 %vm4088_vm13, %v9321_v8  ;;  %vm4074_vm13 = vcmp.eq.s32.totalorder %v6375_v32, %v8776_v40 }
 0x558   : > { %5627 = vmatpush1.msk.msra.mxu0 %vm4087_vm11, %v9321_v8  ;;  %vm4073_vm11 = vcmp.eq.s32.totalorder %v6375_v32, %v8784_v28  ;;  %v4028_v32 = vrot.slane %v3988_v53, 7 }
 0x559   : > { %5628 = vmatprep.subr.msk.mxu0 %vm4086_vm14, %v9321_v8  ;;  %vm4072_vm14 = vcmp.eq.s32.totalorder %v6384_v44, %v8776_v40 }
 0x55a   : > { %5629 = vmatpush1.msk.msra.mxu0 %vm4085_vm8, %v9321_v8  ;;  %vm4071_vm8 = vcmp.eq.s32.totalorder %v6384_v44, %v8784_v28  ;;  %v4013_v44 = vrot.slane %v4006_v24, 7 }
 0x55b   : > { %5630 = vmatprep.subr.msk.mxu0 %vm4084_vm2, %v9321_v8  ;;  %vm4070_vm2 = vcmp.eq.s32.totalorder %v6395_v51, %v8776_v40 }
 0x55c   : > { %5631 = vmatpush1.msk.msra.mxu0 %vm4083_vm7, %v9321_v8  ;;  %vm4069_vm7 = vcmp.eq.s32.totalorder %v6395_v51, %v8784_v28  ;;  %v9381_v51 = vld [vmem:[#allocation18_spill] sm:$0xff]  ;;  %v4014_v20 = vrot.slane %v4013_v44, 2 }
 0x55d   : > { %5632 = vmatprep.subr.msk.mxu0 %vm4082_vm9, %v9321_v8  ;;  %vm4068_vm9 = vcmp.eq.s32.totalorder %v6408_v7, %v8776_v40 }
 0x55e   : > { %5633 = vmatpush1.msk.msra.mxu0 %vm4081_vm15, %v9321_v8  ;;  %vm4067_vm15 = vcmp.eq.s32.totalorder %v6408_v7, %v8784_v28  ;;  %v5753_v7 = vld [vmem:[%s9102_s5 + $0x20] sm:$0xf] }
 0x55f   : > { %5634 = vmatprep.subr.msk.mxu0 %vm4080_vm3, %v9321_v8  ;;  %vm4066_vm3 = vcmp.eq.s32.totalorder %v6121_v25, %v8776_v40  ;;  %5756 = vmatmul.mubr.msk.f32.vlgmr.msra.gmra.mxu1 %vm1022_vm4, %v5753_v7 }
 0x560   : > { %5635 = vmatpush1.msk.msra.mxu0 %vm4079_vm5, %v9321_v8  ;;  %vm4065_vm5 = vcmp.eq.s32.totalorder %v6121_v25, %v8784_v28  ;;  %v9378_v25 = vld [vmem:[#allocation33_spill] sm:$0xff] }
 0x561   : > { %5636 = vmatprep.subr.msk.mxu0 %vm4078_vm6, %v9321_v8  ;;  %vm4128_vm6 = vcmp.eq.s32.totalorder %v6423_v0, %v8776_v40 }
 0x562   : > { %5637 = vmatpush1.msk.msra.mxu0 %vm4077_vm10, %v9321_v8  ;;  %vm4127_vm10 = vcmp.eq.s32.totalorder %v6423_v0, %v8784_v28  ;;  %v9376_v0 = vld [vmem:[#allocation25_spill] sm:$0xff] }
 0x563   : > { %5638 = vmatprep.subr.msk.mxu0 %vm4076_vm1, %v9321_v8  ;;  %vm4126_vm1 = vcmp.eq.s32.totalorder %v6432_v2, %v8776_v40 }
 0x564   : > { %5639 = vmatpush1.msk.msra.mxu0 %vm4075_vm12, %v9321_v8  ;;  %vm4125_vm12 = vcmp.eq.s32.totalorder %v6432_v2, %v8784_v28  ;;  %v9377_v2 = vld [vmem:[#allocation34_spill] sm:$0xff] }
 0x565   : > { %5640 = vmatprep.subr.msk.mxu0 %vm4074_vm13, %v9321_v8  ;;  %vm4124_vm13 = vcmp.eq.s32.totalorder %v6441_v1, %v8776_v40 }
 0x566   : > { %5641 = vmatpush1.msk.msra.mxu0 %vm4073_vm11, %v9321_v8  ;;  %vm4123_vm11 = vcmp.eq.s32.totalorder %v6441_v1, %v8784_v28  ;;  %v9379_v1 = vld [vmem:[#allocation5_spill] sm:$0xff] }
 0x567   : > { %5642 = vmatprep.subr.msk.mxu0 %vm4072_vm14, %v9321_v8  ;;  %vm4122_vm14 = vcmp.eq.s32.totalorder %v6454_v26, %v8776_v40 }
 0x568   : > { %5643 = vmatpush1.msk.msra.mxu0 %vm4071_vm8, %v9321_v8  ;;  %vm4121_vm8 = vcmp.eq.s32.totalorder %v6454_v26, %v8784_v28  ;;  %v9380_v26 = vld [vmem:[#allocation44_spill] sm:$0xff] }
 0x569   : > { %5644 = vmatprep.subr.msk.mxu0 %vm4070_vm2, %v9321_v8  ;;  %vm4120_vm2 = vcmp.eq.s32.totalorder %v6463_v49, %v8776_v40 }
 0x56a   : > { %5645 = vmatpush1.msk.msra.mxu0 %vm4069_vm7, %v9321_v8  ;;  %vm4119_vm7 = vcmp.eq.s32.totalorder %v6463_v49, %v8784_v28  ;;  %v9385_v49 = vld [vmem:[#allocation17_spill] sm:$0xff] }
 0x56b   : > { %5646 = vmatprep.subr.msk.mxu0 %vm4068_vm9, %v9321_v8  ;;  %vm4118_vm9 = vcmp.eq.s32.totalorder %v6476_v59, %v8776_v40  ;;  %v4035_v29 = vmul.f32 %v4014_v20, %v9385_v49 }
 0x56c   : > { %5647 = vmatpush1.msk.msra.mxu0 %vm4067_vm15, %v9321_v8  ;;  %vm4117_vm15 = vcmp.eq.s32.totalorder %v6476_v59, %v8784_v28  ;;  %v4005_v59 = vsub.f32 1.0, %v9385_v49 }
 0x56d   : > { %5648 = vmatprep.subr.msk.mxu0 %vm4066_vm3, %v9321_v8  ;;  %vm4116_vm3 = vcmp.eq.s32.totalorder %v6485_v63, %v8776_v40 }
 0x56e   : > { %5649 = vmatpush1.msk.msra.mxu0 %vm4065_vm5, %v9321_v8  ;;  %vm4115_vm5 = vcmp.eq.s32.totalorder %v6485_v63, %v8784_v28  ;;  %v9386_v63 = vmov 0   ;;  %v4016_v43 = vmul.f32 %v4014_v20, %v4005_v59 }
 0x56f   : > { %5650 = vmatprep.subr.msk.mxu0 %vm4128_vm6, %v9321_v8  ;;  %vm4114_vm6 = vcmp.eq.s32.totalorder %v6496_v37, %v8776_v40 }
 0x570   : > { %5651 = vmatpush2.msk.msra.mxu0 %vm4127_vm10, %v9321_v8  ;;  %vm4113_vm10 = vcmp.eq.s32.totalorder %v6496_v37, %v8784_v28 }
 0x571   : > { %5652 = vmatprep.subr.msk.mxu0 %vm4126_vm1, %v9321_v8  ;;  %vm4112_vm1 = vcmp.eq.s32.totalorder %v6505_v13, %v8776_v40 }
 0x572   : > { %5653 = vmatpush2.msk.msra.mxu0 %vm4125_vm12, %v9321_v8  ;;  %vm4111_vm12 = vcmp.eq.s32.totalorder %v6505_v13, %v8784_v28 }
 0x573   : > { %5654 = vmatprep.subr.msk.mxu0 %vm4124_vm13, %v9321_v8  ;;  %vm4110_vm13 = vcmp.eq.s32.totalorder %v6514_v45, %v8776_v40 }
 0x574   : > { %5655 = vmatpush2.msk.msra.mxu0 %vm4123_vm11, %v9321_v8  ;;  %vm4109_vm11 = vcmp.eq.s32.totalorder %v6514_v45, %v8784_v28 }
 0x575   : > { %5656 = vmatprep.subr.msk.mxu0 %vm4122_vm14, %v9321_v8  ;;  %vm4108_vm14 = vcmp.eq.s32.totalorder %v6523_v42, %v8776_v40 }
 0x576   : > { %5657 = vmatpush2.msk.msra.mxu0 %vm4121_vm8, %v9321_v8  ;;  %vm4107_vm8 = vcmp.eq.s32.totalorder %v6523_v42, %v8784_v28 }
 0x577   : > { %5658 = vmatprep.subr.msk.mxu0 %vm4120_vm2, %v9321_v8  ;;  %vm4106_vm2 = vcmp.eq.s32.totalorder %v9322_v57, %v8776_v40 }
 0x578   : > { %5659 = vmatpush2.msk.msra.mxu0 %vm4119_vm7, %v9321_v8  ;;  %vm4105_vm7 = vcmp.eq.s32.totalorder %v9322_v57, %v8784_v28 }
 0x579   : > { %5660 = vmatprep.subr.msk.mxu0 %vm4118_vm9, %v9321_v8  ;;  %vm4104_vm9 = vcmp.eq.s32.totalorder %v9323_v17, %v8776_v40 }
 0x57a   : > { %5661 = vmatpush2.msk.msra.mxu0 %vm4117_vm15, %v9321_v8  ;;  %vm4103_vm15 = vcmp.eq.s32.totalorder %v9323_v17, %v8784_v28  ;;  %v9388_v17 = vld [vmem:[#allocation27_spill] sm:$0xff] }
 0x57b   : > { %5662 = vmatprep.subr.msk.mxu0 %vm4116_vm3, %v9321_v8  ;;  %vm4102_vm3 = vcmp.eq.s32.totalorder %v9324_v62, %v8776_v40 }
 0x57c   : > { %5663 = vmatpush2.msk.msra.mxu0 %vm4115_vm5, %v9321_v8  ;;  %vm4101_vm5 = vcmp.eq.s32.totalorder %v9324_v62, %v8784_v28  ;;  %v4017_v62 = vrot.slane %v9388_v17, 7 }
 0x57d   : > { %5664 = vmatprep.subr.msk.mxu0 %vm4114_vm6, %v9321_v8  ;;  %vm4100_vm6 = vcmp.eq.s32.totalorder %v9325_v36, %v8776_v40 }
 0x57e   : > { %5665 = vmatpush2.msk.msra.mxu0 %vm4113_vm10, %v9321_v8  ;;  %vm4099_vm10 = vcmp.eq.s32.totalorder %v9325_v36, %v8784_v28  ;;  %v4029_v36 = vrot.slane %v4028_v32, 2  ;;  %v4018_v19 = vrot.slane %v4017_v62, 2 }
 0x57f   : > { %5666 = vmatprep.subr.msk.mxu0 %vm4112_vm1, %v9321_v8  ;;  %vm4098_vm1 = vcmp.eq.s32.totalorder %v9376_v0, %v8776_v40 }
 0x580   : > { %5667 = vmatpush2.msk.msra.mxu0 %vm4111_vm12, %v9321_v8  ;;  %vm4097_vm12 = vcmp.eq.s32.totalorder %v9376_v0, %v8784_v28  ;;  %v4031_v50 = vmul.f32 %v4029_v36, %v4005_v59  ;;  %v4039_v3 = vmul.f32 %v4029_v36, %v9385_v49  ;;  %v4020_v30 = vmul.f32 %v4018_v19, %v4016_v43 }
 0x581   : > { %5668 = vmatprep.subr.msk.mxu0 %vm4110_vm13, %v9321_v8  ;;  %vm4002_vm13 = vcmp.ge.s32.totalorder %v3992_v14, 0  ;;  %v4036_v5 = vmul.f32 %v4035_v29, %v4018_v19 }
 0x582   : > { %5669 = vmatpush2.msk.msra.mxu0 %vm4109_vm11, %v9321_v8  ;;  %vm4003_vm11 = vcmp.lt.s32.totalorder %v3992_v14, 16  ;;  %v4032_v33 = vmul.f32 %v4031_v50, %v4018_v19  ;;  %v4040_v23 = vmul.f32 %v4039_v3, %v4018_v19 }
 0x583   : > { %5670 = vmatprep.subr.msk.mxu0 %vm4108_vm14, %v9321_v8  ;;  %vm3999_vm14 = vcmp.ge.s32.totalorder %v9384_v55, 0 }
 0x584   : > { %5671 = vmatpush2.msk.msra.mxu0 %vm4107_vm8, %v9321_v8  ;;  %vm4000_vm8 = vcmp.lt.s32.totalorder %v9384_v55, 16 }
 0x585   : > { %5672 = vmatprep.subr.msk.mxu0 %vm4106_vm2, %v9321_v8  ;;  %vm4004_vm2 = vmand %vm4002_vm13, %vm4003_vm11 }
 0x586   : > { %5673 = vmatpush2.msk.msra.mxu0 %vm4105_vm7, %v9321_v8  ;;  %vm4001_vm7 = vmand %vm3999_vm14, %vm4000_vm8  ;;  %v4022_v42 = vsel %vm4004_vm2, 1, %v9386_v63 }
 0x587   : > { %5674 = vmatprep.subr.msk.mxu0 %vm4104_vm9, %v9321_v8  ;;  %v4007_v57 = vsel %vm4001_vm7, 1, %v9386_v63  ;;  %v5616_v4 = vrot.slane %v4022_v42, 9 }
 0x588   : > { %5675 = vmatpush2.msk.msra.mxu0 %vm4103_vm15, %v9321_v8  ;;  %v5615_v39 = vrot.slane %v4007_v57, 9 }
 0x589   : > { %5676 = vmatprep.subr.msk.mxu0 %vm4102_vm3, %v9321_v8 }
 0x58a   : > { %5677 = vmatpush2.msk.msra.mxu0 %vm4101_vm5, %v9321_v8 }
 0x58b   : > { %5678 = vmatprep.subr.msk.mxu0 %vm4100_vm6, %v9321_v8 }
 0x58c   : > { %5679 = vmatpush2.msk.msra.mxu0 %vm4099_vm10, %v9321_v8  ;;  %vm9021_vm10 = vcmp.ne.s32.totalorder %v5616_v4, 0 }
 0x58d   : > { %5680 = vmatprep.subr.msk.mxu0 %vm4098_vm1, %v9321_v8 }
 0x58e   : > { %5681 = vmatpush2.msk.msra.mxu0 %vm4097_vm12, %v9321_v8  ;;  %vm4010_vm12 = vcmp.ne.s32.totalorder %v5615_v39, 0 }
 0x58f   : > { %4258 = vmatmul.mubr.f32.vlgmr.msra.gmra.mxu0 %v9377_v2 }
 0x590   : > { %4263 = vmatprep.mubr.f32.mxu0 %v9378_v25 }
 0x593   : > { %4264 = vmatmul.mubr.f32.gmra.mxu0 %v9379_v1 }
 0x594   : > { %4447 = vmatprep.mubr.f32.mxu0 %v9267_v12  ;;  %v9387_v12 = vld [vmem:[#allocation8_spill] sm:$0xff] }
 0x595   : > { %v3991_v8 = vadd.s32 1, %v9387_v12  ;;  %vm3993_vm9 = vcmp.ge.s32.totalorder %v9387_v12, 0  ;;  %vm3994_vm15 = vcmp.lt.s32.totalorder %v9387_v12, 16 }
 0x596   : > { %vm9016_vm6 = vmand %vm3993_vm9, %vm3994_vm15 }
 0x597   : > { %vm3996_vm3 = vcmp.ge.s32.totalorder %v3991_v8, 0  ;;  %vm3997_vm5 = vcmp.lt.s32.totalorder %v3991_v8, 16  ;;  %vm4026_vm13 = vmand %vm9016_vm6, %vm9021_vm10  ;;  %v5682_v8 = vld [vmem:[%s9102_s5 + $0x1c] sm:$0xf] }
 0x598   : > { %vm3998_vm1 = vmand %vm3996_vm3, %vm3997_vm5  ;;  %v4033_v58 = vsel %vm4026_vm13, %v4032_v33, 0.0 }
 0x599   : > { %vm4011_vm11 = vmand %vm9016_vm6, %vm4010_vm12  ;;  %v4295_v35 = vrot.slane %v4033_v58, %v6238_v38  ;;  %v4299_v11 = vrot.slane %v4033_v58, %v6243_v41 }
 0x59a   : > { %vm4034_vm14 = vmand %vm3998_vm1, %vm4010_vm12  ;;  %v4021_v61 = vsel %vm4011_vm11, %v4020_v30, 0.0 }
 0x59b   : > { %vm4038_vm8 = vmand %vm3998_vm1, %vm9021_vm10  ;;  %v4037_v9 = vsel %vm4034_vm14, %v4036_v5, 0.0  ;;  %v4274_v6 = vrot.slane %v4021_v61, %v6238_v38  ;;  %v4278_v54 = vrot.slane %v4021_v61, %v6243_v41  ;;  %v4305_v40 = vrot.slane %v4295_v35, %v6238_v38 }
 0x59c   : > { %v4041_v46 = vsel %vm4038_vm8, %v4040_v23, 0.0  ;;  %v4324_v22 = vrot.slane %v4037_v9, %v6238_v38  ;;  %v4328_v10 = vrot.slane %v4037_v9, %v6243_v41  ;;  %v4309_v0 = vrot.slane %v4299_v11, %v6238_v38 }
 0x59d   : > { %v4347_v60 = vrot.slane %v4041_v46, %v6238_v38  ;;  %v4284_v47 = vrot.slane %v4274_v6, %v6238_v38  ;;  %v4288_v25 = vrot.slane %v4278_v54, %v6238_v38  ;;  %v4351_v7 = vrot.slane %v4041_v46, %v6243_v41 }
 0x59e   : > { %v4334_v1 = vrot.slane %v4324_v22, %v6238_v38 }
 0x59f   : > { %v4361_v14 = vrot.slane %v4351_v7, %v6238_v38 }
 0x60b   : > { %v3484_v13 = vpop.f32.mrf.mxu0 }
 0x60c   : > { %v3489_v37 = vadd.f32 %v3484_v13, %v9380_v26 }
 0x60d   : > { %v3486_v45 = vpop.f32.mrf.mxu0 }
 0x60e   : > { %v3490_v15 = vadd.f32 %v3486_v45, %v9381_v51  ;;  %v4357_v45 = vrot.slane %v4347_v60, %v6238_v38 }
 0x60f   : > { %v3974_v18 = vpop.f32.mrf.mxu0 }
 0x610   : > { %v8999_v52 = vadd.f32 %v3974_v18, %v3489_v37  ;;  %v4338_v18 = vrot.slane %v4328_v10, %v6238_v38 }
 0x611   : > { %v3976_v27 = vpop.f32.mrf.mxu0 }
 0x612   : > { %v9001_v31 = vadd.f32 %v3976_v27, %v3490_v15 }
 0x61f   : > { %v4920_v57 = vpop.f32.mrf.mxu1 }
 0x621   : > { %v4922_v20 = vpop.f32.mrf.mxu1 }
 0x64f   : > { %v4259_v28 = vpop.f32.mrf.mxu0 }
 0x650   : > { %v4310_v21 = vmul.f32 %v4305_v40, %v4259_v28  ;;  %v4289_v13 = vmul.f32 %v4284_v47, %v4259_v28 }
 0x651   : > { %v4261_v2 = vpop.f32.mrf.mxu0 }
 0x652   : > { %v4314_v26 = vrot.slane %v4310_v21, 4  ;;  %v4311_v37 = vmul.f32 %v4309_v0, %v4261_v2  ;;  %v4290_v51 = vmul.f32 %v4288_v25, %v4261_v2 }
 0x653   : > { %v4265_v15 = vpop.f32.mrf.mxu0 }
 0x654   : > { %v4318_v27 = vadd.f32 %v4314_v26, %v4289_v13  ;;  %v4315_v34 = vrot.slane %v4311_v37, 4  ;;  %v4339_v48 = vmul.f32 %v4334_v1, %v4265_v15  ;;  %v4362_v53 = vmul.f32 %v4357_v45, %v4265_v15 }
 0x655   : > { %v4267_v55 = vpop.f32.mrf.mxu0 }
 0x656   : > { %v4319_v24 = vadd.f32 %v4315_v34, %v4290_v51  ;;  %v4340_v32 = vmul.f32 %v4338_v18, %v4267_v55  ;;  %v4363_v41 = vmul.f32 %v4361_v14, %v4267_v55  ;;  %v4341_v44 = vadd.f32 %v4339_v48, %v4318_v27 }
 0x657   : > { %v4366_v49 = vrot.slane %v4362_v53, 4 }
 0x658   : > { %v4342_v59 = vadd.f32 %v4340_v32, %v4319_v24  ;;  %v4367_v63 = vrot.slane %v4363_v41, 4 }
 0x659   : > { %v4370_v12 = vadd.f32 %v4366_v49, %v4341_v44 }
 0x65a   : > { %v4371_v42 = vadd.f32 %v4367_v63, %v4342_v59 }
 0x65c   : > { %5683 = vmatprep.subr.msk.mxu0 %vm452_vm0, %v4371_v42 }
 0x65d   : > { %5684 = vmatpush1.msk.msra.mxu0 %vm452_vm0, %v4370_v12 }
 0x65e   : > { %5685 = vmatmul.mubr.msk.f32.vlgmr.msra.gmra.mxu0 %vm1022_vm4, %v5682_v8 }
 0x71e   : > { %v4449_v38 = vpop.f32.mrf.mxu0 }
 0x71f   : > { %v4454_v17 = vadd.f32 %v4449_v38, %v8999_v52 }
 0x720   : > { %v4451_v62 = vpop.f32.mrf.mxu0 }
 0x721   : > { %v4455_v36 = vadd.f32 %v4451_v62, %v9001_v31  ;;  %v4925_v4 = vadd.f32 %v4920_v57, %v4454_v17 }
 0x723   : > { %v4926_v50 = vadd.f32 %v4922_v20, %v4455_v36 }
 0x725   : > { %v4929_v39 = vcombine.low %v4925_v4, %v4926_v50 }
 0x727   : > { %4931 = vst [vmem:[%s357_s14] sm:$0xff] %v4929_v39 }
 0x728   : > { %5896 = shalt.err (!%p5893_p5)
}
 0x729   : > { %s5897_s12 = scalar_lea.hbm %s4956_s20, 128  ;;  %s5901_s14 = scalar_lea.hbm %s9104_s7, 256 }
 0x72a   : > { %p5898_p6 = scmp.ne.s32.totalorder %s4956_s20, %s5897_s12  ;;  %p5902_p10 = scmp.lt.s32.totalorder %s4956_s20, %s9104_s7 }
 0x72b   : > { %p5903_p11 = scmp.lt.s32.totalorder %s5901_s14, %s5897_s12 }
 0x72c   : > { %p5899_p7 = pnand %p5898_p6, %p6051_p4 }
 0x72d   : > { %p5904_p12 = por %p5903_p11, %p5902_p10 }
 0x72e   : > { %p5900_p9 = pneg %p5899_p7 }
 0x730   : > { %p5905_p13 = pnand %p5904_p12, %p5900_p9 }
 0x732   : > { %5908 = shalt.err (!%p5905_p13)
}
 0x733   : > { %5796 = dma.vmem_to_hbm [thread:$0]  (%p6051_p4), %s4959_s21, 128, %s4956_s20, %s4933_s22  }
 0x734 PF: > { %p5802_p0 = scmp.ge.s32.totalorder %s5959_s10, 2  ;;  %s4974_s24 = sand.u32 1, %s5939_s27  }
 0x735   : > { %s4975_s25 = scalar_lea.sflag [#allocation3], %s4974_s24 }
 0x736   : > { %p5799_p1 = pnand %p5802_p0, %p6058_p8 }
 0x738   : > { %p5800_p2 = pneg %p5799_p1 }
 0x73a   : > { %5934 = dma.done.wait (%p5800_p2), %s4975_s25, 128  }
 0x73b   : > { %5936 = vsyncadd (%p5800_p2), %s4975_s25, 4294967168  ;;  %s22_s10 = sadd.s32 1, %s5959_s10   ;;  %s9393_s27 = smov %s5943_s28 }
 0x73c   : > { %p19_p3 = scmp.ge.s32.totalorder %s22_s10, 4   ;;  %s9394_s28 = smov %s5947_s29 }
 0x73d   : > { %s9395_s29 = smov %s6064_s18  ;;  %s9396_s30 = smov %s5955_s9 }
 0x73e   : > { %s9397_s9 = smov %s9399_s13  ;;  %21 = sbr.rel (!%p19_p3) target bundleno = 4 (0x4), region = 109 }
 0x743   :  { %4992 = vsyncpa [#allocation3], 1 }
 0x744   :  { %4994 = vsyncpa [#allocation3 + $0x1], 1 }

</bundles_post_ra>
